<compile_context>
chip_gen: v7x
topology: tpu7x:2x2x1
jax: 0.10.0
libtpu: 0.0.40
codegen_flags: <defaults>
</compile_context>

<pallas_src>
import functools

import jax
import jax.numpy as jnp
from jax.experimental import pallas as pl
from jax.experimental.pallas import tpu as pltpu


_LANE = 128
_EDGE_TILE = 128       # edges per grid step in edge_struct
_EDGE_CHUNK = 8        # rows gathered per DMA wave (per double-buffer slot)

_SMEM_SPEC = pl.BlockSpec(memory_space=pltpu.MemorySpace.SMEM)

_VMEM_LIMIT_CACHE = None


def _vmem_limit():
    """Generation-aware scoped-VMEM limit (~half of physical VMEM)."""
    global _VMEM_LIMIT_CACHE
    if _VMEM_LIMIT_CACHE is None:
        try:
            cap = int(pltpu.get_tpu_info().vmem_capacity_bytes)
        except Exception:                      # pragma: no cover - safe default
            cap = 64 * 1024 * 1024
        _VMEM_LIMIT_CACHE = int(max(32 * 1024 * 1024,
                                    min(cap // 2, 96 * 1024 * 1024)))
    return _VMEM_LIMIT_CACHE


def _round_up(v, m):
    return ((v + m - 1) // m) * m


def _pad2(x, rows, cols):
    pr = rows - x.shape[0]
    pc = cols - x.shape[1]
    if pr or pc:
        x = jnp.pad(x, ((0, pr), (0, pc)))
    return x


def _choose_tile_and_pad(dim, pref=512):
    """Pick a tile (multiple of 128) and pad `dim` up to a multiple of it.

    Prefers large tiles; pads the dim (<=25% waste) instead of dropping to
    128-wide tiles (per review: 128 tiles reach ~29% of roofline vs ~85% @512).
    """
    d128 = _round_up(max(dim, 1), _LANE)
    for t in (1024, 512, 256, 128):
        if t > pref:
            continue
        padded = _round_up(d128, t)
        if padded - d128 <= max(d128 // 4, 0):
            return t, padded
    return _LANE, d128


def _divisor_tile(dim, pref=512):
    """Largest multiple of 128 that divides `dim` (dim is a multiple of 128)."""
    best = _LANE
    t = _LANE
    while t <= min(dim, pref):
        if dim % t == 0:
            best = t
        t += _LANE
    return best


# ---------------------------------------------------------------------------
# Kernel 1: fused GCN layer.
#   out = [relu]( (A @ X) @ W + b )
# A tiles stream over (i, k); the (tm, f_in) partial product stays resident in
# an f32 VMEM accumulator; the second (small) matmul + bias + relu run in the
# epilogue so the intermediate never round-trips HBM.
# ---------------------------------------------------------------------------
def _gcn_fused_kernel(a_ref, x_ref, w_ref, b_ref, o_ref, acc_ref, *, apply_relu):
    k = pl.program_id(1)

    @pl.when(k == 0)
    def _():
        acc_ref[...] = jnp.zeros_like(acc_ref)

    acc_ref[...] += jnp.dot(a_ref[...], x_ref[...],
                            preferred_element_type=jnp.float32)

    @pl.when(k == pl.num_programs(1) - 1)
    def _():
        z = acc_ref[...].astype(jnp.bfloat16)
        out = jnp.dot(z, w_ref[...],
                      preferred_element_type=jnp.float32) + b_ref[...]
        if apply_relu:
            out = jnp.maximum(out, 0.0)
        o_ref[...] = out.astype(o_ref.dtype)


def gcn_layer_fused(adj_p, h_p, w, b, apply_relu, out_dtype, t_a):
    n_gcn = adj_p.shape[0]
    f_in_p = h_p.shape[1]
    f_out_p = _round_up(w.shape[1], _LANE)
    w_p = _pad2(w, f_in_p, f_out_p).astype(jnp.bfloat16)
    b_p = _pad2(b.reshape(1, -1).astype(jnp.float32), 1, f_out_p)

    grid = (n_gcn // t_a, n_gcn // t_a)
    cost = pl.CostEstimate(
        flops=2 * n_gcn * n_gcn * f_in_p + 2 * n_gcn * f_in_p * f_out_p,
        transcendentals=0,
        bytes_accessed=(n_gcn * n_gcn + n_gcn * f_in_p + f_in_p * f_out_p) * 2
        + n_gcn * f_out_p * 4)

    return pl.pallas_call(
        functools.partial(_gcn_fused_kernel, apply_relu=apply_relu),
        grid=grid,
        in_specs=[pl.BlockSpec((t_a, t_a), lambda i, k: (i, k)),       # A
                  pl.BlockSpec((t_a, f_in_p), lambda i, k: (k, 0)),    # X
                  pl.BlockSpec((f_in_p, f_out_p), lambda i, k: (0, 0)),  # W
                  pl.BlockSpec((1, f_out_p), lambda i, k: (0, 0))],    # bias
        out_specs=pl.BlockSpec((t_a, f_out_p), lambda i, k: (i, 0)),
        out_shape=jax.ShapeDtypeStruct((n_gcn, f_out_p), out_dtype),
        scratch_shapes=[pltpu.VMEM((t_a, f_in_p), jnp.float32)],
        compiler_params=pltpu.CompilerParams(
            dimension_semantics=("parallel", "arbitrary"),
            vmem_limit_bytes=_vmem_limit()),
        cost_estimate=cost,
    )(adj_p, h_p, w_p, b_p)


# ---------------------------------------------------------------------------
# Kernel 2: tiled matmul with fused bias + optional relu epilogue.
# (fallback for GCN layers where f_in_pad > f_out_pad: A @ (X @ W) is cheaper)
# ---------------------------------------------------------------------------
def _matmul_kernel(a_ref, b_ref, bias_ref, o_ref, acc_ref, *, apply_relu):
    k = pl.program_id(2)

    @pl.when(k == 0)
    def _():
        acc_ref[...] = jnp.zeros_like(acc_ref)

    acc_ref[...] += jnp.dot(a_ref[...], b_ref[...],
                            preferred_element_type=jnp.float32)

    @pl.when(k == pl.num_programs(2) - 1)
    def _():
        out = acc_ref[...] + bias_ref[...]
        if apply_relu:
            out = jnp.maximum(out, 0.0)
        o_ref[...] = out.astype(o_ref.dtype)


def matmul_bias_act(a, b, bias=None, apply_relu=False,
                    out_dtype=jnp.float32, compute_dtype=jnp.bfloat16):
    m, k = a.shape
    k2, n = b.shape
    assert k == k2
    big_vmem = _vmem_limit() >= 64 * 1024 * 1024
    tm, mp = _choose_tile_and_pad(m, 512)
    tk, kp = _choose_tile_and_pad(k, 1024 if big_vmem else 512)
    tn, np_ = _choose_tile_and_pad(n, 512)

    a_p = _pad2(a, mp, kp).astype(compute_dtype)
    b_p = _pad2(b, kp, np_).astype(compute_dtype)
    if bias is None:
        bias_p = jnp.zeros((1, np_), jnp.float32)
    else:
        bias_p = _pad2(bias.reshape(1, -1).astype(jnp.float32), 1, np_)

    grid = (mp // tm, np_ // tn, kp // tk)
    cost = pl.CostEstimate(
        flops=2 * mp * np_ * kp,
        transcendentals=0,
        bytes_accessed=(mp * kp + kp * np_) * 2 + mp * np_ * 4)

    out = pl.pallas_call(
        functools.partial(_matmul_kernel, apply_relu=apply_relu),
        grid=grid,
        in_specs=[pl.BlockSpec((tm, tk), lambda i, j, kk: (i, kk)),
                  pl.BlockSpec((tk, tn), lambda i, j, kk: (kk, j)),
                  pl.BlockSpec((1, tn), lambda i, j, kk: (0, j))],
        out_specs=pl.BlockSpec((tm, tn), lambda i, j, kk: (i, j)),
        out_shape=jax.ShapeDtypeStruct((mp, np_), out_dtype),
        scratch_shapes=[pltpu.VMEM((tm, tn), jnp.float32)],
        compiler_params=pltpu.CompilerParams(
            dimension_semantics=("parallel", "parallel", "arbitrary"),
            vmem_limit_bytes=_vmem_limit()),
        cost_estimate=cost,
    )(a_p, b_p, bias_p)
    return out[:m, :n]


# ---------------------------------------------------------------------------
# Kernel 3: fused structure-branch preamble.
#   node_struct[c] = sum_r  mask(A[r,c] != 0) * f_edge(A[r,c])
# (torch's scatter_add of f_edge(A.data) over column indices, as a masked,
#  tiled column-sum with the output block resident over the row axis)
# ---------------------------------------------------------------------------
def _fedge_colsum_kernel(a_ref, w1_ref, b1_ref, w2_ref, b2_ref, o_ref, *, d):
    i = pl.program_id(1)                 # row-tile (reduction) axis, innermost

    @pl.when(i == 0)
    def _():
        o_ref[...] = jnp.zeros_like(o_ref)

    a = a_ref[...]
    val = jnp.zeros_like(a) + b2_ref[0]
    for dd in range(d):                  # 1->8->1 pointwise MLP, VPU unroll
        h = jnp.maximum(a * w1_ref[dd] + b1_ref[dd], 0.0)
        val = val + h * w2_ref[dd]
    val = jnp.where(a != 0.0, val, 0.0)  # only nonzero A entries contribute
    o_ref[...] += jnp.sum(val, axis=0, keepdims=True)


def fedge_colsum(a_pad, params):
    w1, b1, w2, b2 = params
    d = w1.shape[0]
    n_pad = a_pad.shape[0]
    t = _divisor_tile(n_pad, 512)
    cost = pl.CostEstimate(flops=n_pad * n_pad * (3 * d + 3),
                           transcendentals=0,
                           bytes_accessed=n_pad * n_pad * 4 + n_pad * 4)
    return pl.pallas_call(
        functools.partial(_fedge_colsum_kernel, d=d),
        grid=(n_pad // t, n_pad // t),
        in_specs=[pl.BlockSpec((t, t), lambda j, i: (i, j)),
                  _SMEM_SPEC, _SMEM_SPEC, _SMEM_SPEC, _SMEM_SPEC],
        out_specs=pl.BlockSpec((1, t), lambda j, i: (0, j)),
        out_shape=jax.ShapeDtypeStruct((1, n_pad), jnp.float32),
        compiler_params=pltpu.CompilerParams(
            dimension_semantics=("parallel", "arbitrary"),
            vmem_limit_bytes=_vmem_limit()),
        cost_estimate=cost,
    )(a_pad, w1.reshape(d), b1, w2.reshape(d), b2)


# ---------------------------------------------------------------------------
# Kernel 4: vectorized f_node, emitting fn(x)^2 directly.
#   fn = b2 + sum_d relu(x * w1[d] + b1[d]) * w2[d],  out = fn*fn
# Evaluated as a dense (d, TC) broadcast MLP (all lanes populated) instead of
# a d-step scalar unroll on a 1-sublane slab.
# ---------------------------------------------------------------------------
def _fnode_sq_kernel(x_ref, w1_ref, b1_ref, w2_ref, b2_ref, o_ref):
    x = x_ref[...]                                               # (1, tc)
    h = jnp.maximum(x * w1_ref[...] + b1_ref[...], 0.0)          # (d, tc)
    fn = jnp.sum(h * w2_ref[...], axis=0, keepdims=True) + b2_ref[0]
    o_ref[...] = fn * fn


def fnode_sq(node_struct, params):
    w1, b1, w2, b2 = params
    d = w1.shape[0]
    n_pad = node_struct.shape[1]
    tc = _divisor_tile(n_pad, 512)
    w1_col = w1.reshape(d, 1).astype(jnp.float32)
    b1_col = b1.reshape(d, 1).astype(jnp.float32)
    w2_col = w2.reshape(d, 1).astype(jnp.float32)
    return pl.pallas_call(
        _fnode_sq_kernel,
        grid=(n_pad // tc,),
        in_specs=[pl.BlockSpec((1, tc), lambda j: (0, j)),
                  pl.BlockSpec((d, 1), lambda j: (0, 0)),
                  pl.BlockSpec((d, 1), lambda j: (0, 0)),
                  pl.BlockSpec((d, 1), lambda j: (0, 0)),
                  _SMEM_SPEC],
        out_specs=pl.BlockSpec((1, tc), lambda j: (0, j)),
        out_shape=jax.ShapeDtypeStruct((1, n_pad), jnp.float32),
        compiler_params=pltpu.CompilerParams(
            dimension_semantics=("parallel",),
            vmem_limit_bytes=_vmem_limit()),
    )(node_struct, w1_col, b1_col, w2_col, b2.reshape(1).astype(jnp.float32))


# ---------------------------------------------------------------------------
# Kernel 5: edge-tiled out_struct path.
#   For a tile of TB query edges b:
#     s[b]   = sum_n A[e0[b],n] * A[e1[b],n] * fn2[n]   (== diag(mat_src@mat_dst^T))
#     raw[b] = g_phi(s[b]);   sig[b] = sigmoid(raw[b])
# Rows of A are gathered with manual double-buffered DMAs in 8-row chunks
# (bounded in-flight DMAs / semaphores); g_phi runs once per tile as a dense
# (TB, 128) MLP.
# ---------------------------------------------------------------------------
def _edge_struct_kernel(edge_ref, a_hbm, fn2_ref, w1_ref, b1_ref, w2_ref,
                        b2_ref, raw_ref, sig_ref,
                        src_buf, dst_buf, sem_src, sem_dst, acc_ref,
                        *, tb, tn, chunk):
    eb = pl.program_id(0)
    nj = pl.program_id(1)
    col0 = pl.multiple_of(nj * tn, tn)
    nchunks = tb // chunk

    def start_chunk(ch, slot):
        for cc in range(chunk):
            b = eb * tb + ch * chunk + cc
            e0 = edge_ref[0, b]
            e1 = edge_ref[1, b]
            pltpu.make_async_copy(a_hbm.at[e0, pl.ds(col0, tn)],
                                  src_buf.at[slot, cc],
                                  sem_src.at[slot, cc]).start()
            pltpu.make_async_copy(a_hbm.at[e1, pl.ds(col0, tn)],
                                  dst_buf.at[slot, cc],
                                  sem_dst.at[slot, cc]).start()

    def wait_chunk(slot):
        for cc in range(chunk):
            pltpu.make_async_copy(a_hbm.at[0, pl.ds(0, tn)],
                                  src_buf.at[slot, cc],
                                  sem_src.at[slot, cc]).wait()
            pltpu.make_async_copy(a_hbm.at[0, pl.ds(0, tn)],
                                  dst_buf.at[slot, cc],
                                  sem_dst.at[slot, cc]).wait()

    @pl.when(nj == 0)
    def _():
        acc_ref[...] = jnp.zeros_like(acc_ref)

    start_chunk(0, 0)
    fn2b = jnp.broadcast_to(fn2_ref[...], (chunk, tn))   # hoisted broadcast

    @pl.loop(0, nchunks)
    def _(ch):
        slot = ch % 2
        wait_chunk(slot)

        @pl.when(ch + 1 < nchunks)
        def _():
            start_chunk(ch + 1, 1 - slot)

        prod = src_buf[slot] * dst_buf[slot] * fn2b               # (chunk, tn)
        part = jnp.sum(prod, axis=-1, keepdims=True)              # (chunk, 1)
        row0 = pl.multiple_of(ch * chunk, chunk)
        acc_ref[pl.ds(row0, chunk), :] += part

    @pl.when(nj == pl.num_programs(1) - 1)
    def _():
        s = acc_ref[...]                                          # (tb, 1)
        h = jnp.maximum(s * w1_ref[...] + b1_ref[...], 0.0)       # (tb, d)
        g = jnp.sum(h * w2_ref[...], axis=-1, keepdims=True) + b2_ref[0]
        raw_ref[...] = g
        sig_ref[...] = jax.nn.sigmoid(g)


def edge_struct(edge_i32, a_pad, fn2, params):
    w1, b1, w2, b2 = params
    d = w1.shape[0]
    n_pad = a_pad.shape[1]
    b_edges = edge_i32.shape[1]
    tb = _EDGE_TILE
    chunk = _EDGE_CHUNK
    b_pad = _round_up(b_edges, tb)
    # pad with index 0 (valid row); padded lanes are sliced away afterwards
    edge_pad = jnp.zeros((2, b_pad), jnp.int32).at[:, :b_edges].set(edge_i32)
    tn = _divisor_tile(n_pad, 2048)

    w1_row = w1.reshape(1, d).astype(jnp.float32)
    b1_row = b1.reshape(1, d).astype(jnp.float32)
    w2_row = w2.reshape(1, d).astype(jnp.float32)
    b2_s = b2.reshape(1).astype(jnp.float32)

    grid = (b_pad // tb, n_pad // tn)

    raw, sig = pl.pallas_call(
        functools.partial(_edge_struct_kernel, tb=tb, tn=tn, chunk=chunk),
        grid_spec=pltpu.PrefetchScalarGridSpec(
            num_scalar_prefetch=1,
            grid=grid,
            in_specs=[pl.BlockSpec(memory_space=pl.ANY),                  # A (HBM)
                      pl.BlockSpec((1, tn), lambda eb, nj, e: (0, nj)),   # fn^2
                      pl.BlockSpec((1, d), lambda eb, nj, e: (0, 0)),     # w1
                      pl.BlockSpec((1, d), lambda eb, nj, e: (0, 0)),     # b1
                      pl.BlockSpec((1, d), lambda eb, nj, e: (0, 0)),     # w2
                      _SMEM_SPEC],                                        # b2
            out_specs=(pl.BlockSpec((tb, 1), lambda eb, nj, e: (eb, 0)),
                       pl.BlockSpec((tb, 1), lambda eb, nj, e: (eb, 0))),
            scratch_shapes=[pltpu.VMEM((2, chunk, tn), jnp.float32),
                            pltpu.VMEM((2, chunk, tn), jnp.float32),
                            pltpu.SemaphoreType.DMA((2, chunk)),
                            pltpu.SemaphoreType.DMA((2, chunk)),
                            pltpu.VMEM((tb, 1), jnp.float32)]),
        out_shape=(jax.ShapeDtypeStruct((b_pad, 1), jnp.float32),
                   jax.ShapeDtypeStruct((b_pad, 1), jnp.float32)),
        compiler_params=pltpu.CompilerParams(
            dimension_semantics=("parallel", "arbitrary"),
            vmem_limit_bytes=_vmem_limit()),
    )(edge_pad, a_pad, fn2, w1_row, b1_row, w2_row, b2_s)
    return raw[:b_edges], sig[:b_edges]


# ---------------------------------------------------------------------------
# Parameter construction (deterministic, synthetic)
# ---------------------------------------------------------------------------
def init_params(key, in_c, hid, out_c, num_layers,
                f_edge_dim=8, f_node_dim=128, g_phi_dim=128):
    dims = [in_c] + [hid] * (num_layers - 1) + [out_c]
    keys = jax.random.split(key, num_layers + 6)
    gcn_w, gcn_b = [], []
    for l in range(num_layers):
        fan_in, fan_out = dims[l], dims[l + 1]
        scale = 1.0 / jnp.sqrt(jnp.float32(fan_in))
        gcn_w.append(jax.random.uniform(keys[l], (fan_in, fan_out),
                                        minval=-scale, maxval=scale,
                                        dtype=jnp.float32))
        gcn_b.append(jnp.zeros((fan_out,), jnp.float32))

    def mlp_params(k, d):
        k1, k2 = jax.random.split(k)
        w1 = jax.random.uniform(k1, (d, 1), minval=-1.0, maxval=1.0,
                                dtype=jnp.float32)
        b1 = jnp.zeros((d,), jnp.float32)
        s = 1.0 / jnp.sqrt(jnp.float32(d))
        w2 = jax.random.uniform(k2, (1, d), minval=-s, maxval=s,
                                dtype=jnp.float32)
        b2 = jnp.zeros((1,), jnp.float32)
        return (w1, b1, w2, b2)

    return {
        "gcn_w": gcn_w,
        "gcn_b": gcn_b,
        "f_edge": mlp_params(keys[num_layers + 0], f_edge_dim),
        "f_node": mlp_params(keys[num_layers + 1], f_node_dim),
        "g_phi": mlp_params(keys[num_layers + 2], g_phi_dim),
        "alpha": jnp.zeros((2,), jnp.float32),    # torch init: [0, 0]
    }


# ---------------------------------------------------------------------------
# NeoGNN forward (default branch: name not in ['ppa','citation2'],
#                 predictor=None, emb=None, only_feature/only_structure=False,
#                 node_struct_feat=None, dropout=0)
# ---------------------------------------------------------------------------
def neognn_forward(edge, x, adj_norm, A_dense, params):
    n = x.shape[0]
    n_layers = len(params["gcn_w"])

    # ---- feature branch: fused GCN layers, bf16 operands / f32 accumulate --
    t_a, n_gcn = _choose_tile_and_pad(n, 512)
    adj_p = _pad2(adj_norm, n_gcn, n_gcn).astype(jnp.bfloat16)
    h = _pad2(x, n_gcn, _round_up(x.shape[1], _LANE)).astype(jnp.bfloat16)
    for l in range(n_layers):
        w = params["gcn_w"][l]
        b = params["gcn_b"][l]
        relu = l < n_layers - 1
        out_dtype = jnp.bfloat16 if relu else jnp.float32   # bf16 intermediates
        f_in_p = h.shape[1]
        f_out_p = _round_up(w.shape[1], _LANE)
        if f_in_p <= f_out_p:
            # fused (A @ X) @ W + b, intermediate resident in VMEM
            h = gcn_layer_fused(adj_p, h, w, b, relu, out_dtype, t_a)
        else:
            # cheaper association when narrowing: A @ (X @ W) + b
            w_p = _pad2(w, f_in_p, f_out_p).astype(jnp.bfloat16)
            b_p = jnp.pad(b, (0, f_out_p - w.shape[1])).astype(jnp.float32)
            z = matmul_bias_act(h, w_p, out_dtype=jnp.bfloat16)
            h = matmul_bias_act(adj_p, z, bias=b_p, apply_relu=relu,
                                out_dtype=out_dtype)
        # dropout p=0 -> no-op

    out_c = params["gcn_w"][-1].shape[1]
    h_real = h[:n, :out_c].astype(jnp.float32)
    xe0 = h_real[edge[0]]
    xe1 = h_real[edge[1]]
    # torch: torch.sum(x[edge[0]] * x[edge[1]], dim=0) -> (C,); tiny, keep in XLA
    out_feat = jnp.sum(xe0 * xe1, axis=0)

    # ---- structure branch (dense-masked equivalent of the sparse torch path)
    n_pad = _round_up(n, _LANE)
    a_pad = _pad2(A_dense, n_pad, n_pad).astype(jnp.float32)
    node_struct = fedge_colsum(a_pad, params["f_edge"])          # (1, n_pad)
    fn2 = fnode_sq(node_struct, params["f_node"])                # (1, n_pad)
    out_struct_raw, out_struct_sig = edge_struct(
        edge.astype(jnp.int32), a_pad, fn2, params["g_phi"])     # (B,1) each

    alpha = jax.nn.softmax(params["alpha"], axis=0)
    # broadcast (B,1) with (C,) exactly as in torch
    out = alpha[0] * out_struct_sig + alpha[1] * out_feat + 1e-15
    return out, out_struct_sig, out_feat, out_struct_raw


if __name__ == "__main__":
    N = 16        # num nodes
    IN_C = 8      # dataset.data.num_features
    HID = 32      # hidden_channels
    OUT_C = 16    # out_channels
    NUM_LAYERS = 3
    B = 8         # batch of query edges

    key = jax.random.PRNGKey(0)
    k_adj, k_x, k_edge, k_par = jax.random.split(key, 4)

    # random symmetric binary adjacency (no self-loops); also used as sparse A
    upper = (jax.random.uniform(k_adj, (N, N)) < 0.3).astype(jnp.float32)
    adj = jnp.triu(upper, 1)
    A_dense = adj + adj.T

    # GCN-normalised adjacency: D^-1/2 (A + I) D^-1/2  (data.adj_t)
    a_hat = A_dense + jnp.eye(N, dtype=jnp.float32)
    deg = jnp.sum(a_hat, axis=1)
    d_inv_sqrt = 1.0 / jnp.sqrt(deg)
    adj_norm = a_hat * d_inv_sqrt[:, None] * d_inv_sqrt[None, :]

    x = jax.random.normal(k_x, (N, IN_C), dtype=jnp.float32)      # data.x
    edge = jax.random.randint(k_edge, (2, B), 0, N)               # query edges

    params = init_params(k_par, IN_C, HID, OUT_C, NUM_LAYERS)

    fwd = jax.jit(neognn_forward)
    out, out_struct, out_feat, out_struct_raw = fwd(
        edge, x, adj_norm, A_dense, params)
    jax.block_until_ready((out, out_struct, out_feat, out_struct_raw))

    assert out.shape == (B, OUT_C)          # (B,1) broadcast with (C,)
    assert out_struct.shape == (B, 1)
    assert out_feat.shape == (OUT_C,)
    assert out_struct_raw.shape == (B, 1)
    print("KERNEL_OK")
</pallas_src>

<mosaic_0001>
module attributes {stable_mosaic.version = 11 : i64} {
  func.func @_gcn_fused_kernel(%arg0: i32, %arg1: i32, %arg2: memref<128x128xbf16, #tpu.memory_space<vmem>>, %arg3: memref<128x128xbf16, #tpu.memory_space<vmem>>, %arg4: memref<128x128xbf16, #tpu.memory_space<vmem>>, %arg5: memref<1x128xf32, #tpu.memory_space<vmem>>, %arg6: memref<128x128xbf16, #tpu.memory_space<vmem>>, %arg7: memref<128x128xf32, #tpu.memory_space<vmem>>) attributes {dimension_semantics = [#tpu.dimension_semantics<parallel>, #tpu.dimension_semantics<arbitrary>], iteration_bounds = array<i64: 1, 1>, scalar_prefetch = 0 : i64, scratch_operands = 1 : i64, tpu.core_type = #tpu.core_type<tc>, window_params = [{transform_indices = @transform_0, window_bounds = array<i64: 128, 128>}, {transform_indices = @transform_1, window_bounds = array<i64: 128, 128>}, {pipeline_mode = #tpu.pipeline_mode<synchronous>, transform_indices = @transform_2, window_bounds = array<i64: 128, 128>}, {pipeline_mode = #tpu.pipeline_mode<synchronous>, transform_indices = @transform_3, window_bounds = array<i64: 1, 128>}, {transform_indices = @transform_4, window_bounds = array<i64: 128, 128>}]} {
    %c0_i32 = arith.constant 0 : i32
    %0 = arith.cmpi eq, %arg1, %c0_i32 : i32
    %1 = arith.extui %0 : i1 to i32
    %c0_i32_0 = arith.constant 0 : i32
    %2 = arith.cmpi ne, %1, %c0_i32_0 : i32
    scf.if %2 {
      %cst_10 = arith.constant 0.000000e+00 : f32
      %12 = vector.broadcast %cst_10 : f32 to vector<128x128xf32>
      %c0_11 = arith.constant 0 : index
      %c0_12 = arith.constant 0 : index
      %13 = vector.load %arg7[%c0_11, %c0_12] : memref<128x128xf32, #tpu.memory_space<vmem>>, vector<128x128xf32>
      tpu.vector_store %arg7[%c0_11, %c0_12], %12 {strides = array<i32>} : memref<128x128xf32, #tpu.memory_space<vmem>>, vector<128x128xf32>,
    } else {
    }
    %c0 = arith.constant 0 : index
    %c0_1 = arith.constant 0 : index
    %3 = vector.load %arg7[%c0, %c0_1] : memref<128x128xf32, #tpu.memory_space<vmem>>, vector<128x128xf32>
    %c0_2 = arith.constant 0 : index
    %c0_3 = arith.constant 0 : index
    %4 = vector.load %arg2[%c0_2, %c0_3] : memref<128x128xbf16, #tpu.memory_space<vmem>>, vector<128x128xbf16>
    %c0_4 = arith.constant 0 : index
    %c0_5 = arith.constant 0 : index
    %5 = vector.load %arg3[%c0_4, %c0_5] : memref<128x128xbf16, #tpu.memory_space<vmem>>, vector<128x128xbf16>
    %cst = arith.constant dense<0.000000e+00> : vector<128x128xf32>
    %6 = tpu.matmul %4, %5, %cst {dimension_numbers = #tpu.dot_dimension_numbers<[1], [0], [0], [1], [0, 0, 1, 1], [], []>} : vector<128x128xbf16>, vector<128x128xbf16>, vector<128x128xf32> -> vector<128x128xf32>
    %7 = arith.addf %3, %6 : vector<128x128xf32>
    %c0_6 = arith.constant 0 : index
    %c0_7 = arith.constant 0 : index
    %8 = vector.load %arg7[%c0_6, %c0_7] : memref<128x128xf32, #tpu.memory_space<vmem>>, vector<128x128xf32>
    tpu.vector_store %arg7[%c0_6, %c0_7], %7 {strides = array<i32>} : memref<128x128xf32, #tpu.memory_space<vmem>>, vector<128x128xf32>,
    %c0_i32_8 = arith.constant 0 : i32
    %9 = arith.cmpi eq, %arg1, %c0_i32_8 : i32
    %10 = arith.extui %9 : i1 to i32
    %c0_i32_9 = arith.constant 0 : i32
    %11 = arith.cmpi ne, %10, %c0_i32_9 : i32
    scf.if %11 {
      %c0_10 = arith.constant 0 : index
      %c0_11 = arith.constant 0 : index
      %12 = vector.load %arg7[%c0_10, %c0_11] : memref<128x128xf32, #tpu.memory_space<vmem>>, vector<128x128xf32>
      %13 = arith.truncf %12 : vector<128x128xf32> to vector<128x128xbf16>
      %c0_12 = arith.constant 0 : index
      %c0_13 = arith.constant 0 : index
      %14 = vector.load %arg4[%c0_12, %c0_13] : memref<128x128xbf16, #tpu.memory_space<vmem>>, vector<128x128xbf16>
      %cst_14 = arith.constant dense<0.000000e+00> : vector<128x128xf32>
      %15 = tpu.matmul %13, %14, %cst_14 {dimension_numbers = #tpu.dot_dimension_numbers<[1], [0], [0], [1], [0, 0, 1, 1], [], []>} : vector<128x128xbf16>, vector<128x128xbf16>, vector<128x128xf32> -> vector<128x128xf32>
      %c0_15 = arith.constant 0 : index
      %c0_16 = arith.constant 0 : index
      %16 = vector.load %arg5[%c0_15, %c0_16] : memref<1x128xf32, #tpu.memory_space<vmem>>, vector<1x128xf32>
      %17 = vector.broadcast %16 : vector<1x128xf32> to vector<128x128xf32>
      %18 = arith.addf %15, %17 : vector<128x128xf32>
      %cst_17 = arith.constant 0.000000e+00 : f32
      %19 = vector.broadcast %cst_17 : f32 to vector<128x128xf32>
      %20 = arith.maximumf %18, %19 : vector<128x128xf32>
      %21 = arith.truncf %20 : vector<128x128xf32> to vector<128x128xbf16>
      %c0_18 = arith.constant 0 : index
      %c0_19 = arith.constant 0 : index
      %22 = vector.load %arg6[%c0_18, %c0_19] : memref<128x128xbf16, #tpu.memory_space<vmem>>, vector<128x128xbf16>
      tpu.vector_store %arg6[%c0_18, %c0_19], %21 {strides = array<i32>} : memref<128x128xbf16, #tpu.memory_space<vmem>>, vector<128x128xbf16>,
    } else {
    }
    return
  }
  func.func @transform_0(%arg0: i32, %arg1: i32) -> (i32, i32) {
    %c0_i32 = arith.constant 0 : i32
    return %arg0, %arg1 : i32, i32
  }
  func.func @transform_1(%arg0: i32, %arg1: i32) -> (i32, i32) {
    %c0_i32 = arith.constant 0 : i32
    %c0_i32_0 = arith.constant 0 : i32
    return %arg1, %c0_i32 : i32, i32
  }
  func.func @transform_2(%arg0: i32, %arg1: i32) -> (i32, i32) {
    %c0_i32 = arith.constant 0 : i32
    %c0_i32_0 = arith.constant 0 : i32
    %c0_i32_1 = arith.constant 0 : i32
    return %c0_i32, %c0_i32_0 : i32, i32
  }
  func.func @transform_3(%arg0: i32, %arg1: i32) -> (i32, i32) {
    %c0_i32 = arith.constant 0 : i32
    %c0_i32_0 = arith.constant 0 : i32
    %c0_i32_1 = arith.constant 0 : i32
    return %c0_i32, %c0_i32_0 : i32, i32
  }
  func.func @transform_4(%arg0: i32, %arg1: i32) -> (i32, i32) {
    %c0_i32 = arith.constant 0 : i32
    %c0_i32_0 = arith.constant 0 : i32
    return %arg0, %c0_i32 : i32, i32
  }
}

module attributes {stable_mosaic.version = 11 : i64} {
  func.func @_gcn_fused_kernel(%arg0: i32, %arg1: i32, %arg2: memref<128x128xbf16, #tpu.memory_space<vmem>>, %arg3: memref<128x128xbf16, #tpu.memory_space<vmem>>, %arg4: memref<128x128xbf16, #tpu.memory_space<vmem>>, %arg5: memref<1x128xf32, #tpu.memory_space<vmem>>, %arg6: memref<128x128xf32, #tpu.memory_space<vmem>>, %arg7: memref<128x128xf32, #tpu.memory_space<vmem>>) attributes {dimension_semantics = [#tpu.dimension_semantics<parallel>, #tpu.dimension_semantics<arbitrary>], iteration_bounds = array<i64: 1, 1>, scalar_prefetch = 0 : i64, scratch_operands = 1 : i64, tpu.core_type = #tpu.core_type<tc>, window_params = [{transform_indices = @transform_0, window_bounds = array<i64: 128, 128>}, {transform_indices = @transform_1, window_bounds = array<i64: 128, 128>}, {pipeline_mode = #tpu.pipeline_mode<synchronous>, transform_indices = @transform_2, window_bounds = array<i64: 128, 128>}, {pipeline_mode = #tpu.pipeline_mode<synchronous>, transform_indices = @transform_3, window_bounds = array<i64: 1, 128>}, {transform_indices = @transform_4, window_bounds = array<i64: 128, 128>}]} {
    %c0_i32 = arith.constant 0 : i32
    %0 = arith.cmpi eq, %arg1, %c0_i32 : i32
    %1 = arith.extui %0 : i1 to i32
    %c0_i32_0 = arith.constant 0 : i32
    %2 = arith.cmpi ne, %1, %c0_i32_0 : i32
    scf.if %2 {
      %cst_10 = arith.constant 0.000000e+00 : f32
      %12 = vector.broadcast %cst_10 : f32 to vector<128x128xf32>
      %c0_11 = arith.constant 0 : index
      %c0_12 = arith.constant 0 : index
      %13 = vector.load %arg7[%c0_11, %c0_12] : memref<128x128xf32, #tpu.memory_space<vmem>>, vector<128x128xf32>
      tpu.vector_store %arg7[%c0_11, %c0_12], %12 {strides = array<i32>} : memref<128x128xf32, #tpu.memory_space<vmem>>, vector<128x128xf32>,
    } else {
    }
    %c0 = arith.constant 0 : index
    %c0_1 = arith.constant 0 : index
    %3 = vector.load %arg7[%c0, %c0_1] : memref<128x128xf32, #tpu.memory_space<vmem>>, vector<128x128xf32>
    %c0_2 = arith.constant 0 : index
    %c0_3 = arith.constant 0 : index
    %4 = vector.load %arg2[%c0_2, %c0_3] : memref<128x128xbf16, #tpu.memory_space<vmem>>, vector<128x128xbf16>
    %c0_4 = arith.constant 0 : index
    %c0_5 = arith.constant 0 : index
    %5 = vector.load %arg3[%c0_4, %c0_5] : memref<128x128xbf16, #tpu.memory_space<vmem>>, vector<128x128xbf16>
    %cst = arith.constant dense<0.000000e+00> : vector<128x128xf32>
    %6 = tpu.matmul %4, %5, %cst {dimension_numbers = #tpu.dot_dimension_numbers<[1], [0], [0], [1], [0, 0, 1, 1], [], []>} : vector<128x128xbf16>, vector<128x128xbf16>, vector<128x128xf32> -> vector<128x128xf32>
    %7 = arith.addf %3, %6 : vector<128x128xf32>
    %c0_6 = arith.constant 0 : index
    %c0_7 = arith.constant 0 : index
    %8 = vector.load %arg7[%c0_6, %c0_7] : memref<128x128xf32, #tpu.memory_space<vmem>>, vector<128x128xf32>
    tpu.vector_store %arg7[%c0_6, %c0_7], %7 {strides = array<i32>} : memref<128x128xf32, #tpu.memory_space<vmem>>, vector<128x128xf32>,
    %c0_i32_8 = arith.constant 0 : i32
    %9 = arith.cmpi eq, %arg1, %c0_i32_8 : i32
    %10 = arith.extui %9 : i1 to i32
    %c0_i32_9 = arith.constant 0 : i32
    %11 = arith.cmpi ne, %10, %c0_i32_9 : i32
    scf.if %11 {
      %c0_10 = arith.constant 0 : index
      %c0_11 = arith.constant 0 : index
      %12 = vector.load %arg7[%c0_10, %c0_11] : memref<128x128xf32, #tpu.memory_space<vmem>>, vector<128x128xf32>
      %13 = arith.truncf %12 : vector<128x128xf32> to vector<128x128xbf16>
      %c0_12 = arith.constant 0 : index
      %c0_13 = arith.constant 0 : index
      %14 = vector.load %arg4[%c0_12, %c0_13] : memref<128x128xbf16, #tpu.memory_space<vmem>>, vector<128x128xbf16>
      %cst_14 = arith.constant dense<0.000000e+00> : vector<128x128xf32>
      %15 = tpu.matmul %13, %14, %cst_14 {dimension_numbers = #tpu.dot_dimension_numbers<[1], [0], [0], [1], [0, 0, 1, 1], [], []>} : vector<128x128xbf16>, vector<128x128xbf16>, vector<128x128xf32> -> vector<128x128xf32>
      %c0_15 = arith.constant 0 : index
      %c0_16 = arith.constant 0 : index
      %16 = vector.load %arg5[%c0_15, %c0_16] : memref<1x128xf32, #tpu.memory_space<vmem>>, vector<1x128xf32>
      %17 = vector.broadcast %16 : vector<1x128xf32> to vector<128x128xf32>
      %18 = arith.addf %15, %17 : vector<128x128xf32>
      %c0_17 = arith.constant 0 : index
      %c0_18 = arith.constant 0 : index
      %19 = vector.load %arg6[%c0_17, %c0_18] : memref<128x128xf32, #tpu.memory_space<vmem>>, vector<128x128xf32>
      tpu.vector_store %arg6[%c0_17, %c0_18], %18 {strides = array<i32>} : memref<128x128xf32, #tpu.memory_space<vmem>>, vector<128x128xf32>,
    } else {
    }
    return
  }
  func.func @transform_0(%arg0: i32, %arg1: i32) -> (i32, i32) {
    %c0_i32 = arith.constant 0 : i32
    return %arg0, %arg1 : i32, i32
  }
  func.func @transform_1(%arg0: i32, %arg1: i32) -> (i32, i32) {
    %c0_i32 = arith.constant 0 : i32
    %c0_i32_0 = arith.constant 0 : i32
    return %arg1, %c0_i32 : i32, i32
  }
  func.func @transform_2(%arg0: i32, %arg1: i32) -> (i32, i32) {
    %c0_i32 = arith.constant 0 : i32
    %c0_i32_0 = arith.constant 0 : i32
    %c0_i32_1 = arith.constant 0 : i32
    return %c0_i32, %c0_i32_0 : i32, i32
  }
  func.func @transform_3(%arg0: i32, %arg1: i32) -> (i32, i32) {
    %c0_i32 = arith.constant 0 : i32
    %c0_i32_0 = arith.constant 0 : i32
    %c0_i32_1 = arith.constant 0 : i32
    return %c0_i32, %c0_i32_0 : i32, i32
  }
  func.func @transform_4(%arg0: i32, %arg1: i32) -> (i32, i32) {
    %c0_i32 = arith.constant 0 : i32
    %c0_i32_0 = arith.constant 0 : i32
    return %arg0, %c0_i32 : i32, i32
  }
}

module attributes {stable_mosaic.version = 11 : i64} {
  func.func @_fedge_colsum_kernel(%arg0: i32, %arg1: i32, %arg2: memref<128x128xf32, #tpu.memory_space<vmem>>, %arg3: memref<8xf32, #tpu.memory_space<smem>>, %arg4: memref<8xf32, #tpu.memory_space<smem>>, %arg5: memref<8xf32, #tpu.memory_space<smem>>, %arg6: memref<1xf32, #tpu.memory_space<smem>>, %arg7: memref<1x128xf32, #tpu.memory_space<vmem>>) attributes {dimension_semantics = [#tpu.dimension_semantics<parallel>, #tpu.dimension_semantics<arbitrary>], iteration_bounds = array<i64: 1, 1>, scalar_prefetch = 0 : i64, scratch_operands = 0 : i64, tpu.core_type = #tpu.core_type<tc>, window_params = [{transform_indices = @transform_0, window_bounds = array<i64: 128, 128>}, {transform_indices = @transform_1, window_bounds = array<i64: 8>}, {transform_indices = @transform_2, window_bounds = array<i64: 8>}, {transform_indices = @transform_3, window_bounds = array<i64: 8>}, {transform_indices = @transform_4, window_bounds = array<i64: 1>}, {transform_indices = @transform_5, window_bounds = array<i64: 1, 128>}]} {
    %c0_i32 = arith.constant 0 : i32
    %0 = arith.cmpi eq, %arg1, %c0_i32 : i32
    %1 = arith.extui %0 : i1 to i32
    %c0_i32_0 = arith.constant 0 : i32
    %2 = arith.cmpi ne, %1, %c0_i32_0 : i32
    scf.if %2 {
      %cst_35 = arith.constant 0.000000e+00 : f32
      %113 = vector.broadcast %cst_35 : f32 to vector<1x128xf32>
      %c0_36 = arith.constant 0 : index
      %c0_37 = arith.constant 0 : index
      %114 = vector.load %arg7[%c0_36, %c0_37] : memref<1x128xf32, #tpu.memory_space<vmem>>, vector<1x128xf32>
      tpu.vector_store %arg7[%c0_36, %c0_37], %113 {strides = array<i32>} : memref<1x128xf32, #tpu.memory_space<vmem>>, vector<1x128xf32>,
    } else {
    }
    %c0 = arith.constant 0 : index
    %c0_1 = arith.constant 0 : index
    %3 = vector.load %arg2[%c0, %c0_1] : memref<128x128xf32, #tpu.memory_space<vmem>>, vector<128x128xf32>
    %cst = arith.constant 0.000000e+00 : f32
    %4 = vector.broadcast %cst : f32 to vector<128x128xf32>
    %c0_2 = arith.constant 0 : index
    %5 = memref.load %arg6[%c0_2] : memref<1xf32, #tpu.memory_space<smem>>
    %6 = vector.broadcast %5 : f32 to vector<128x128xf32>
    %7 = arith.addf %4, %6 : vector<128x128xf32>
    %c0_3 = arith.constant 0 : index
    %8 = memref.load %arg3[%c0_3] : memref<8xf32, #tpu.memory_space<smem>>
    %9 = vector.broadcast %8 : f32 to vector<128x128xf32>
    %10 = arith.mulf %3, %9 : vector<128x128xf32>
    %c0_4 = arith.constant 0 : index
    %11 = memref.load %arg4[%c0_4] : memref<8xf32, #tpu.memory_space<smem>>
    %12 = vector.broadcast %11 : f32 to vector<128x128xf32>
    %13 = arith.addf %10, %12 : vector<128x128xf32>
    %cst_5 = arith.constant 0.000000e+00 : f32
    %14 = vector.broadcast %cst_5 : f32 to vector<128x128xf32>
    %15 = arith.maximumf %13, %14 : vector<128x128xf32>
    %c0_6 = arith.constant 0 : index
    %16 = memref.load %arg5[%c0_6] : memref<8xf32, #tpu.memory_space<smem>>
    %17 = vector.broadcast %16 : f32 to vector<128x128xf32>
    %18 = arith.mulf %15, %17 : vector<128x128xf32>
    %19 = arith.addf %7, %18 : vector<128x128xf32>
    %c1 = arith.constant 1 : index
    %20 = memref.load %arg3[%c1] : memref<8xf32, #tpu.memory_space<smem>>
    %21 = vector.broadcast %20 : f32 to vector<128x128xf32>
    %22 = arith.mulf %3, %21 : vector<128x128xf32>
    %c1_7 = arith.constant 1 : index
    %23 = memref.load %arg4[%c1_7] : memref<8xf32, #tpu.memory_space<smem>>
    %24 = vector.broadcast %23 : f32 to vector<128x128xf32>
    %25 = arith.addf %22, %24 : vector<128x128xf32>
    %cst_8 = arith.constant 0.000000e+00 : f32
    %26 = vector.broadcast %cst_8 : f32 to vector<128x128xf32>
    %27 = arith.maximumf %25, %26 : vector<128x128xf32>
    %c1_9 = arith.constant 1 : index
    %28 = memref.load %arg5[%c1_9] : memref<8xf32, #tpu.memory_space<smem>>
    %29 = vector.broadcast %28 : f32 to vector<128x128xf32>
    %30 = arith.mulf %27, %29 : vector<128x128xf32>
    %31 = arith.addf %19, %30 : vector<128x128xf32>
    %c2 = arith.constant 2 : index
    %32 = memref.load %arg3[%c2] : memref<8xf32, #tpu.memory_space<smem>>
    %33 = vector.broadcast %32 : f32 to vector<128x128xf32>
    %34 = arith.mulf %3, %33 : vector<128x128xf32>
    %c2_10 = arith.constant 2 : index
    %35 = memref.load %arg4[%c2_10] : memref<8xf32, #tpu.memory_space<smem>>
    %36 = vector.broadcast %35 : f32 to vector<128x128xf32>
    %37 = arith.addf %34, %36 : vector<128x128xf32>
    %cst_11 = arith.constant 0.000000e+00 : f32
    %38 = vector.broadcast %cst_11 : f32 to vector<128x128xf32>
    %39 = arith.maximumf %37, %38 : vector<128x128xf32>
    %c2_12 = arith.constant 2 : index
    %40 = memref.load %arg5[%c2_12] : memref<8xf32, #tpu.memory_space<smem>>
    %41 = vector.broadcast %40 : f32 to vector<128x128xf32>
    %42 = arith.mulf %39, %41 : vector<128x128xf32>
    %43 = arith.addf %31, %42 : vector<128x128xf32>
    %c3 = arith.constant 3 : index
    %44 = memref.load %arg3[%c3] : memref<8xf32, #tpu.memory_space<smem>>
    %45 = vector.broadcast %44 : f32 to vector<128x128xf32>
    %46 = arith.mulf %3, %45 : vector<128x128xf32>
    %c3_13 = arith.constant 3 : index
    %47 = memref.load %arg4[%c3_13] : memref<8xf32, #tpu.memory_space<smem>>
    %48 = vector.broadcast %47 : f32 to vector<128x128xf32>
    %49 = arith.addf %46, %48 : vector<128x128xf32>
    %cst_14 = arith.constant 0.000000e+00 : f32
    %50 = vector.broadcast %cst_14 : f32 to vector<128x128xf32>
    %51 = arith.maximumf %49, %50 : vector<128x128xf32>
    %c3_15 = arith.constant 3 : index
    %52 = memref.load %arg5[%c3_15] : memref<8xf32, #tpu.memory_space<smem>>
    %53 = vector.broadcast %52 : f32 to vector<128x128xf32>
    %54 = arith.mulf %51, %53 : vector<128x128xf32>
    %55 = arith.addf %43, %54 : vector<128x128xf32>
    %c4 = arith.constant 4 : index
    %56 = memref.load %arg3[%c4] : memref<8xf32, #tpu.memory_space<smem>>
    %57 = vector.broadcast %56 : f32 to vector<128x128xf32>
    %58 = arith.mulf %3, %57 : vector<128x128xf32>
    %c4_16 = arith.constant 4 : index
    %59 = memref.load %arg4[%c4_16] : memref<8xf32, #tpu.memory_space<smem>>
    %60 = vector.broadcast %59 : f32 to vector<128x128xf32>
    %61 = arith.addf %58, %60 : vector<128x128xf32>
    %cst_17 = arith.constant 0.000000e+00 : f32
    %62 = vector.broadcast %cst_17 : f32 to vector<128x128xf32>
    %63 = arith.maximumf %61, %62 : vector<128x128xf32>
    %c4_18 = arith.constant 4 : index
    %64 = memref.load %arg5[%c4_18] : memref<8xf32, #tpu.memory_space<smem>>
    %65 = vector.broadcast %64 : f32 to vector<128x128xf32>
    %66 = arith.mulf %63, %65 : vector<128x128xf32>
    %67 = arith.addf %55, %66 : vector<128x128xf32>
    %c5 = arith.constant 5 : index
    %68 = memref.load %arg3[%c5] : memref<8xf32, #tpu.memory_space<smem>>
    %69 = vector.broadcast %68 : f32 to vector<128x128xf32>
    %70 = arith.mulf %3, %69 : vector<128x128xf32>
    %c5_19 = arith.constant 5 : index
    %71 = memref.load %arg4[%c5_19] : memref<8xf32, #tpu.memory_space<smem>>
    %72 = vector.broadcast %71 : f32 to vector<128x128xf32>
    %73 = arith.addf %70, %72 : vector<128x128xf32>
    %cst_20 = arith.constant 0.000000e+00 : f32
    %74 = vector.broadcast %cst_20 : f32 to vector<128x128xf32>
    %75 = arith.maximumf %73, %74 : vector<128x128xf32>
    %c5_21 = arith.constant 5 : index
    %76 = memref.load %arg5[%c5_21] : memref<8xf32, #tpu.memory_space<smem>>
    %77 = vector.broadcast %76 : f32 to vector<128x128xf32>
    %78 = arith.mulf %75, %77 : vector<128x128xf32>
    %79 = arith.addf %67, %78 : vector<128x128xf32>
    %c6 = arith.constant 6 : index
    %80 = memref.load %arg3[%c6] : memref<8xf32, #tpu.memory_space<smem>>
    %81 = vector.broadcast %80 : f32 to vector<128x128xf32>
    %82 = arith.mulf %3, %81 : vector<128x128xf32>
    %c6_22 = arith.constant 6 : index
    %83 = memref.load %arg4[%c6_22] : memref<8xf32, #tpu.memory_space<smem>>
    %84 = vector.broadcast %83 : f32 to vector<128x128xf32>
    %85 = arith.addf %82, %84 : vector<128x128xf32>
    %cst_23 = arith.constant 0.000000e+00 : f32
    %86 = vector.broadcast %cst_23 : f32 to vector<128x128xf32>
    %87 = arith.maximumf %85, %86 : vector<128x128xf32>
    %c6_24 = arith.constant 6 : index
    %88 = memref.load %arg5[%c6_24] : memref<8xf32, #tpu.memory_space<smem>>
    %89 = vector.broadcast %88 : f32 to vector<128x128xf32>
    %90 = arith.mulf %87, %89 : vector<128x128xf32>
    %91 = arith.addf %79, %90 : vector<128x128xf32>
    %c7 = arith.constant 7 : index
    %92 = memref.load %arg3[%c7] : memref<8xf32, #tpu.memory_space<smem>>
    %93 = vector.broadcast %92 : f32 to vector<128x128xf32>
    %94 = arith.mulf %3, %93 : vector<128x128xf32>
    %c7_25 = arith.constant 7 : index
    %95 = memref.load %arg4[%c7_25] : memref<8xf32, #tpu.memory_space<smem>>
    %96 = vector.broadcast %95 : f32 to vector<128x128xf32>
    %97 = arith.addf %94, %96 : vector<128x128xf32>
    %cst_26 = arith.constant 0.000000e+00 : f32
    %98 = vector.broadcast %cst_26 : f32 to vector<128x128xf32>
    %99 = arith.maximumf %97, %98 : vector<128x128xf32>
    %c7_27 = arith.constant 7 : index
    %100 = memref.load %arg5[%c7_27] : memref<8xf32, #tpu.memory_space<smem>>
    %101 = vector.broadcast %100 : f32 to vector<128x128xf32>
    %102 = arith.mulf %99, %101 : vector<128x128xf32>
    %103 = arith.addf %91, %102 : vector<128x128xf32>
    %cst_28 = arith.constant 0.000000e+00 : f32
    %104 = vector.broadcast %cst_28 : f32 to vector<128x128xf32>
    %105 = arith.cmpf one, %3, %104 : vector<128x128xf32>
    %cst_29 = arith.constant 0.000000e+00 : f32
    %106 = vector.broadcast %cst_29 : f32 to vector<128x128xf32>
    %107 = arith.select %105, %103, %106 : vector<128x128xi1>, vector<128x128xf32>
    %c0_30 = arith.constant 0 : index
    %c0_31 = arith.constant 0 : index
    %108 = vector.load %arg7[%c0_30, %c0_31] : memref<1x128xf32, #tpu.memory_space<vmem>>, vector<1x128xf32>
    %cst_32 = arith.constant dense<0.000000e+00> : vector<128xf32>
    %109 = vector.multi_reduction <add>, %107, %cst_32 [0] : vector<128x128xf32> to vector<128xf32>
    %110 = vector.shape_cast %109 : vector<128xf32> to vector<1x128xf32>
    %111 = arith.addf %108, %110 : vector<1x128xf32>
    %c0_33 = arith.constant 0 : index
    %c0_34 = arith.constant 0 : index
    %112 = vector.load %arg7[%c0_33, %c0_34] : memref<1x128xf32, #tpu.memory_space<vmem>>, vector<1x128xf32>
    tpu.vector_store %arg7[%c0_33, %c0_34], %111 {strides = array<i32>} : memref<1x128xf32, #tpu.memory_space<vmem>>, vector<1x128xf32>,
    return
  }
  func.func @transform_0(%arg0: i32, %arg1: i32) -> (i32, i32) {
    %c0_i32 = arith.constant 0 : i32
    return %arg1, %arg0 : i32, i32
  }
  func.func @transform_1(%arg0: i32, %arg1: i32) -> i32 {
    %c0_i32 = arith.constant 0 : i32
    %c0_i32_0 = arith.constant 0 : i32
    return %c0_i32 : i32
  }
  func.func @transform_2(%arg0: i32, %arg1: i32) -> i32 {
    %c0_i32 = arith.constant 0 : i32
    %c0_i32_0 = arith.constant 0 : i32
    return %c0_i32 : i32
  }
  func.func @transform_3(%arg0: i32, %arg1: i32) -> i32 {
    %c0_i32 = arith.constant 0 : i32
    %c0_i32_0 = arith.constant 0 : i32
    return %c0_i32 : i32
  }
  func.func @transform_4(%arg0: i32, %arg1: i32) -> i32 {
    %c0_i32 = arith.constant 0 : i32
    %c0_i32_0 = arith.constant 0 : i32
    return %c0_i32 : i32
  }
  func.func @transform_5(%arg0: i32, %arg1: i32) -> (i32, i32) {
    %c0_i32 = arith.constant 0 : i32
    %c0_i32_0 = arith.constant 0 : i32
    return %c0_i32, %arg0 : i32, i32
  }
}

module attributes {stable_mosaic.version = 11 : i64} {
  func.func @_fnode_sq_kernel(%arg0: i32, %arg1: memref<1x128xf32, #tpu.memory_space<vmem>>, %arg2: memref<128x1xf32, #tpu.memory_space<vmem>>, %arg3: memref<128x1xf32, #tpu.memory_space<vmem>>, %arg4: memref<128x1xf32, #tpu.memory_space<vmem>>, %arg5: memref<1xf32, #tpu.memory_space<smem>>, %arg6: memref<1x128xf32, #tpu.memory_space<vmem>>) attributes {dimension_semantics = [#tpu.dimension_semantics<parallel>], iteration_bounds = array<i64: 1>, scalar_prefetch = 0 : i64, scratch_operands = 0 : i64, tpu.core_type = #tpu.core_type<tc>, window_params = [{transform_indices = @transform_0, window_bounds = array<i64: 1, 128>}, {pipeline_mode = #tpu.pipeline_mode<synchronous>, transform_indices = @transform_1, window_bounds = array<i64: 128, 1>}, {pipeline_mode = #tpu.pipeline_mode<synchronous>, transform_indices = @transform_2, window_bounds = array<i64: 128, 1>}, {pipeline_mode = #tpu.pipeline_mode<synchronous>, transform_indices = @transform_3, window_bounds = array<i64: 128, 1>}, {transform_indices = @transform_4, window_bounds = array<i64: 1>}, {transform_indices = @transform_5, window_bounds = array<i64: 1, 128>}]} {
    %c0 = arith.constant 0 : index
    %c0_0 = arith.constant 0 : index
    %0 = vector.load %arg1[%c0, %c0_0] : memref<1x128xf32, #tpu.memory_space<vmem>>, vector<1x128xf32>
    %c0_1 = arith.constant 0 : index
    %c0_2 = arith.constant 0 : index
    %1 = vector.load %arg2[%c0_1, %c0_2] : memref<128x1xf32, #tpu.memory_space<vmem>>, vector<128x1xf32>
    %2 = vector.broadcast %0 : vector<1x128xf32> to vector<128x128xf32>
    %3 = vector.broadcast %1 : vector<128x1xf32> to vector<128x128xf32>
    %4 = arith.mulf %2, %3 : vector<128x128xf32>
    %c0_3 = arith.constant 0 : index
    %c0_4 = arith.constant 0 : index
    %5 = vector.load %arg3[%c0_3, %c0_4] : memref<128x1xf32, #tpu.memory_space<vmem>>, vector<128x1xf32>
    %6 = vector.broadcast %5 : vector<128x1xf32> to vector<128x128xf32>
    %7 = arith.addf %4, %6 : vector<128x128xf32>
    %cst = arith.constant 0.000000e+00 : f32
    %8 = vector.broadcast %cst : f32 to vector<128x128xf32>
    %9 = arith.maximumf %7, %8 : vector<128x128xf32>
    %c0_5 = arith.constant 0 : index
    %c0_6 = arith.constant 0 : index
    %10 = vector.load %arg4[%c0_5, %c0_6] : memref<128x1xf32, #tpu.memory_space<vmem>>, vector<128x1xf32>
    %11 = vector.broadcast %10 : vector<128x1xf32> to vector<128x128xf32>
    %12 = arith.mulf %9, %11 : vector<128x128xf32>
    %cst_7 = arith.constant dense<0.000000e+00> : vector<128xf32>
    %13 = vector.multi_reduction <add>, %12, %cst_7 [0] : vector<128x128xf32> to vector<128xf32>
    %14 = vector.shape_cast %13 : vector<128xf32> to vector<1x128xf32>
    %c0_8 = arith.constant 0 : index
    %15 = memref.load %arg5[%c0_8] : memref<1xf32, #tpu.memory_space<smem>>
    %16 = vector.broadcast %15 : f32 to vector<1x128xf32>
    %17 = arith.addf %14, %16 : vector<1x128xf32>
    %18 = arith.mulf %17, %17 : vector<1x128xf32>
    %c0_9 = arith.constant 0 : index
    %c0_10 = arith.constant 0 : index
    %19 = vector.load %arg6[%c0_9, %c0_10] : memref<1x128xf32, #tpu.memory_space<vmem>>, vector<1x128xf32>
    tpu.vector_store %arg6[%c0_9, %c0_10], %18 {strides = array<i32>} : memref<1x128xf32, #tpu.memory_space<vmem>>, vector<1x128xf32>,
    return
  }
  func.func @transform_0(%arg0: i32) -> (i32, i32) {
    %c0_i32 = arith.constant 0 : i32
    %c0_i32_0 = arith.constant 0 : i32
    return %c0_i32, %arg0 : i32, i32
  }
  func.func @transform_1(%arg0: i32) -> (i32, i32) {
    %c0_i32 = arith.constant 0 : i32
    %c0_i32_0 = arith.constant 0 : i32
    %c0_i32_1 = arith.constant 0 : i32
    return %c0_i32, %c0_i32_0 : i32, i32
  }
  func.func @transform_2(%arg0: i32) -> (i32, i32) {
    %c0_i32 = arith.constant 0 : i32
    %c0_i32_0 = arith.constant 0 : i32
    %c0_i32_1 = arith.constant 0 : i32
    return %c0_i32, %c0_i32_0 : i32, i32
  }
  func.func @transform_3(%arg0: i32) -> (i32, i32) {
    %c0_i32 = arith.constant 0 : i32
    %c0_i32_0 = arith.constant 0 : i32
    %c0_i32_1 = arith.constant 0 : i32
    return %c0_i32, %c0_i32_0 : i32, i32
  }
  func.func @transform_4(%arg0: i32) -> i32 {
    %c0_i32 = arith.constant 0 : i32
    %c0_i32_0 = arith.constant 0 : i32
    return %c0_i32 : i32
  }
  func.func @transform_5(%arg0: i32) -> (i32, i32) {
    %c0_i32 = arith.constant 0 : i32
    %c0_i32_0 = arith.constant 0 : i32
    return %c0_i32, %arg0 : i32, i32
  }
}

module attributes {stable_mosaic.version = 11 : i64} {
  func.func @_edge_struct_kernel(%arg0: i32, %arg1: i32, %arg2: memref<2x128xi32, #tpu.memory_space<smem>>, %arg3: memref<128x128xf32, #tpu.memory_space<any>>, %arg4: memref<1x128xf32, #tpu.memory_space<vmem>>, %arg5: memref<1x128xf32, #tpu.memory_space<vmem>>, %arg6: memref<1x128xf32, #tpu.memory_space<vmem>>, %arg7: memref<1x128xf32, #tpu.memory_space<vmem>>, %arg8: memref<1xf32, #tpu.memory_space<smem>>, %arg9: memref<128x1xf32, #tpu.memory_space<vmem>>, %arg10: memref<128x1xf32, #tpu.memory_space<vmem>>, %arg11: memref<2x8x128xf32, #tpu.memory_space<vmem>>, %arg12: memref<2x8x128xf32, #tpu.memory_space<vmem>>, %arg13: memref<2x8x!tpu.dma_semaphore, #tpu.memory_space<semaphore_mem>>, %arg14: memref<2x8x!tpu.dma_semaphore, #tpu.memory_space<semaphore_mem>>, %arg15: memref<128x1xf32, #tpu.memory_space<vmem>>) attributes {dimension_semantics = [#tpu.dimension_semantics<parallel>, #tpu.dimension_semantics<arbitrary>], iteration_bounds = array<i64: 1, 1>, scalar_prefetch = 1 : i64, scratch_operands = 5 : i64, tpu.core_type = #tpu.core_type<tc>, window_params = [{}, {transform_indices = @transform_1, window_bounds = array<i64: 1, 128>}, {pipeline_mode = #tpu.pipeline_mode<synchronous>, transform_indices = @transform_2, window_bounds = array<i64: 1, 128>}, {pipeline_mode = #tpu.pipeline_mode<synchronous>, transform_indices = @transform_3, window_bounds = array<i64: 1, 128>}, {pipeline_mode = #tpu.pipeline_mode<synchronous>, transform_indices = @transform_4, window_bounds = array<i64: 1, 128>}, {transform_indices = @transform_5, window_bounds = array<i64: 1>}, {transform_indices = @transform_6, window_bounds = array<i64: 128, 1>}, {transform_indices = @transform_7, window_bounds = array<i64: 128, 1>}]} {
    %c128_i32 = arith.constant 128 : i32
    %0 = arith.muli %arg1, %c128_i32 : i32
    %1 = tpu.assume_multiple %0, 128 : i32
    %c0_i32 = arith.constant 0 : i32
    %2 = arith.cmpi eq, %arg1, %c0_i32 : i32
    %3 = arith.extui %2 : i1 to i32
    %c0_i32_0 = arith.constant 0 : i32
    %4 = arith.cmpi ne, %3, %c0_i32_0 : i32
    scf.if %4 {
      %cst = arith.constant 0.000000e+00 : f32
      %164 = vector.broadcast %cst : f32 to vector<128x1xf32>
      %c0_119 = arith.constant 0 : index
      %c0_120 = arith.constant 0 : index
      %165 = vector.load %arg15[%c0_119, %c0_120] : memref<128x1xf32, #tpu.memory_space<vmem>>, vector<128x1xf32>
      tpu.vector_store %arg15[%c0_119, %c0_120], %164 {strides = array<i32>} : memref<128x1xf32, #tpu.memory_space<vmem>>, vector<128x1xf32>,
    } else {
    }
    %c128_i32_1 = arith.constant 128 : i32
    %5 = arith.muli %arg0, %c128_i32_1 : i32
    %c0_i32_2 = arith.constant 0 : i32
    %6 = arith.addi %5, %c0_i32_2 : i32
    %c0_i32_3 = arith.constant 0 : i32
    %7 = arith.addi %6, %c0_i32_3 : i32
    %c0 = arith.constant 0 : index
    %8 = arith.index_cast %7 : i32 to index
    %9 = memref.load %arg2[%c0, %8] : memref<2x128xi32, #tpu.memory_space<smem>>
    %c1 = arith.constant 1 : index
    %10 = arith.index_cast %7 : i32 to index
    %11 = memref.load %arg2[%c1, %10] : memref<2x128xi32, #tpu.memory_space<smem>>
    %c0_i32_4 = arith.constant 0 : i32
    %c0_i32_5 = arith.constant 0 : i32
    %c0_i32_6 = arith.constant 0 : i32
    %c0_i32_7 = arith.constant 0 : i32
    %12 = tpu.memref_slice %arg3[%9, %1] : memref<128x128xf32, #tpu.memory_space<any>> -> memref<1x128xf32, #tpu.memory_space<any>>
    %13 = tpu.memref_squeeze %12 : memref<1x128xf32, #tpu.memory_space<any>> -> memref<128xf32, #tpu.memory_space<any>>
    %c0_i32_8 = arith.constant 0 : i32
    %14 = tpu.memref_slice %arg11[%c0_i32_4, %c0_i32_5, %c0_i32_8] : memref<2x8x128xf32, #tpu.memory_space<vmem>> -> memref<1x1x128xf32, #tpu.memory_space<vmem>>
    %15 = tpu.memref_squeeze %14 : memref<1x1x128xf32, #tpu.memory_space<vmem>> -> memref<128xf32, #tpu.memory_space<vmem>>
    %16 = tpu.memref_slice %arg13[%c0_i32_6, %c0_i32_7] : memref<2x8x!tpu.dma_semaphore, #tpu.memory_space<semaphore_mem>> -> memref<1x1x!tpu.dma_semaphore, #tpu.memory_space<semaphore_mem>>
    %17 = tpu.memref_squeeze %16 : memref<1x1x!tpu.dma_semaphore, #tpu.memory_space<semaphore_mem>> -> memref<!tpu.dma_semaphore, #tpu.memory_space<semaphore_mem>>
    tpu.enqueue_dma source(%13 : memref<128xf32, #tpu.memory_space<any>>) target(%15 : memref<128xf32, #tpu.memory_space<vmem>>) target_semaphore(%17 : memref<!tpu.dma_semaphore, #tpu.memory_space<semaphore_mem>>)
    %c0_i32_9 = arith.constant 0 : i32
    %c0_i32_10 = arith.constant 0 : i32
    %c0_i32_11 = arith.constant 0 : i32
    %c0_i32_12 = arith.constant 0 : i32
    %18 = tpu.memref_slice %arg3[%11, %1] : memref<128x128xf32, #tpu.memory_space<any>> -> memref<1x128xf32, #tpu.memory_space<any>>
    %19 = tpu.memref_squeeze %18 : memref<1x128xf32, #tpu.memory_space<any>> -> memref<128xf32, #tpu.memory_space<any>>
    %c0_i32_13 = arith.constant 0 : i32
    %20 = tpu.memref_slice %arg12[%c0_i32_9, %c0_i32_10, %c0_i32_13] : memref<2x8x128xf32, #tpu.memory_space<vmem>> -> memref<1x1x128xf32, #tpu.memory_space<vmem>>
    %21 = tpu.memref_squeeze %20 : memref<1x1x128xf32, #tpu.memory_space<vmem>> -> memref<128xf32, #tpu.memory_space<vmem>>
    %22 = tpu.memref_slice %arg14[%c0_i32_11, %c0_i32_12] : memref<2x8x!tpu.dma_semaphore, #tpu.memory_space<semaphore_mem>> -> memref<1x1x!tpu.dma_semaphore, #tpu.memory_space<semaphore_mem>>
    %23 = tpu.memref_squeeze %22 : memref<1x1x!tpu.dma_semaphore, #tpu.memory_space<semaphore_mem>> -> memref<!tpu.dma_semaphore, #tpu.memory_space<semaphore_mem>>
    tpu.enqueue_dma source(%19 : memref<128xf32, #tpu.memory_space<any>>) target(%21 : memref<128xf32, #tpu.memory_space<vmem>>) target_semaphore(%23 : memref<!tpu.dma_semaphore, #tpu.memory_space<semaphore_mem>>)
    %c128_i32_14 = arith.constant 128 : i32
    %24 = arith.muli %arg0, %c128_i32_14 : i32
    %c0_i32_15 = arith.constant 0 : i32
    %25 = arith.addi %24, %c0_i32_15 : i32
    %c1_i32 = arith.constant 1 : i32
    %26 = arith.addi %25, %c1_i32 : i32
    %c0_16 = arith.constant 0 : index
    %27 = arith.index_cast %26 : i32 to index
    %28 = memref.load %arg2[%c0_16, %27] : memref<2x128xi32, #tpu.memory_space<smem>>
    %c1_17 = arith.constant 1 : index
    %29 = arith.index_cast %26 : i32 to index
    %30 = memref.load %arg2[%c1_17, %29] : memref<2x128xi32, #tpu.memory_space<smem>>
    %c0_i32_18 = arith.constant 0 : i32
    %c1_i32_19 = arith.constant 1 : i32
    %c0_i32_20 = arith.constant 0 : i32
    %c1_i32_21 = arith.constant 1 : i32
    %31 = tpu.memref_slice %arg3[%28, %1] : memref<128x128xf32, #tpu.memory_space<any>> -> memref<1x128xf32, #tpu.memory_space<any>>
    %32 = tpu.memref_squeeze %31 : memref<1x128xf32, #tpu.memory_space<any>> -> memref<128xf32, #tpu.memory_space<any>>
    %c0_i32_22 = arith.constant 0 : i32
    %33 = tpu.memref_slice %arg11[%c0_i32_18, %c1_i32_19, %c0_i32_22] : memref<2x8x128xf32, #tpu.memory_space<vmem>> -> memref<1x1x128xf32, #tpu.memory_space<vmem>>
    %34 = tpu.memref_squeeze %33 : memref<1x1x128xf32, #tpu.memory_space<vmem>> -> memref<128xf32, #tpu.memory_space<vmem>>
    %35 = tpu.memref_slice %arg13[%c0_i32_20, %c1_i32_21] : memref<2x8x!tpu.dma_semaphore, #tpu.memory_space<semaphore_mem>> -> memref<1x1x!tpu.dma_semaphore, #tpu.memory_space<semaphore_mem>>
    %36 = tpu.memref_squeeze %35 : memref<1x1x!tpu.dma_semaphore, #tpu.memory_space<semaphore_mem>> -> memref<!tpu.dma_semaphore, #tpu.memory_space<semaphore_mem>>
    tpu.enqueue_dma source(%32 : memref<128xf32, #tpu.memory_space<any>>) target(%34 : memref<128xf32, #tpu.memory_space<vmem>>) target_semaphore(%36 : memref<!tpu.dma_semaphore, #tpu.memory_space<semaphore_mem>>)
    %c0_i32_23 = arith.constant 0 : i32
    %c1_i32_24 = arith.constant 1 : i32
    %c0_i32_25 = arith.constant 0 : i32
    %c1_i32_26 = arith.constant 1 : i32
    %37 = tpu.memref_slice %arg3[%30, %1] : memref<128x128xf32, #tpu.memory_space<any>> -> memref<1x128xf32, #tpu.memory_space<any>>
    %38 = tpu.memref_squeeze %37 : memref<1x128xf32, #tpu.memory_space<any>> -> memref<128xf32, #tpu.memory_space<any>>
    %c0_i32_27 = arith.constant 0 : i32
    %39 = tpu.memref_slice %arg12[%c0_i32_23, %c1_i32_24, %c0_i32_27] : memref<2x8x128xf32, #tpu.memory_space<vmem>> -> memref<1x1x128xf32, #tpu.memory_space<vmem>>
    %40 = tpu.memref_squeeze %39 : memref<1x1x128xf32, #tpu.memory_space<vmem>> -> memref<128xf32, #tpu.memory_space<vmem>>
    %41 = tpu.memref_slice %arg14[%c0_i32_25, %c1_i32_26] : memref<2x8x!tpu.dma_semaphore, #tpu.memory_space<semaphore_mem>> -> memref<1x1x!tpu.dma_semaphore, #tpu.memory_space<semaphore_mem>>
    %42 = tpu.memref_squeeze %41 : memref<1x1x!tpu.dma_semaphore, #tpu.memory_space<semaphore_mem>> -> memref<!tpu.dma_semaphore, #tpu.memory_space<semaphore_mem>>
    tpu.enqueue_dma source(%38 : memref<128xf32, #tpu.memory_space<any>>) target(%40 : memref<128xf32, #tpu.memory_space<vmem>>) target_semaphore(%42 : memref<!tpu.dma_semaphore, #tpu.memory_space<semaphore_mem>>)
    %c128_i32_28 = arith.constant 128 : i32
    %43 = arith.muli %arg0, %c128_i32_28 : i32
    %c0_i32_29 = arith.constant 0 : i32
    %44 = arith.addi %43, %c0_i32_29 : i32
    %c2_i32 = arith.constant 2 : i32
    %45 = arith.addi %44, %c2_i32 : i32
    %c0_30 = arith.constant 0 : index
    %46 = arith.index_cast %45 : i32 to index
    %47 = memref.load %arg2[%c0_30, %46] : memref<2x128xi32, #tpu.memory_space<smem>>
    %c1_31 = arith.constant 1 : index
    %48 = arith.index_cast %45 : i32 to index
    %49 = memref.load %arg2[%c1_31, %48] : memref<2x128xi32, #tpu.memory_space<smem>>
    %c0_i32_32 = arith.constant 0 : i32
    %c2_i32_33 = arith.constant 2 : i32
    %c0_i32_34 = arith.constant 0 : i32
    %c2_i32_35 = arith.constant 2 : i32
    %50 = tpu.memref_slice %arg3[%47, %1] : memref<128x128xf32, #tpu.memory_space<any>> -> memref<1x128xf32, #tpu.memory_space<any>>
    %51 = tpu.memref_squeeze %50 : memref<1x128xf32, #tpu.memory_space<any>> -> memref<128xf32, #tpu.memory_space<any>>
    %c0_i32_36 = arith.constant 0 : i32
    %52 = tpu.memref_slice %arg11[%c0_i32_32, %c2_i32_33, %c0_i32_36] : memref<2x8x128xf32, #tpu.memory_space<vmem>> -> memref<1x1x128xf32, #tpu.memory_space<vmem>>
    %53 = tpu.memref_squeeze %52 : memref<1x1x128xf32, #tpu.memory_space<vmem>> -> memref<128xf32, #tpu.memory_space<vmem>>
    %54 = tpu.memref_slice %arg13[%c0_i32_34, %c2_i32_35] : memref<2x8x!tpu.dma_semaphore, #tpu.memory_space<semaphore_mem>> -> memref<1x1x!tpu.dma_semaphore, #tpu.memory_space<semaphore_mem>>
    %55 = tpu.memref_squeeze %54 : memref<1x1x!tpu.dma_semaphore, #tpu.memory_space<semaphore_mem>> -> memref<!tpu.dma_semaphore, #tpu.memory_space<semaphore_mem>>
    tpu.enqueue_dma source(%51 : memref<128xf32, #tpu.memory_space<any>>) target(%53 : memref<128xf32, #tpu.memory_space<vmem>>) target_semaphore(%55 : memref<!tpu.dma_semaphore, #tpu.memory_space<semaphore_mem>>)
    %c0_i32_37 = arith.constant 0 : i32
    %c2_i32_38 = arith.constant 2 : i32
    %c0_i32_39 = arith.constant 0 : i32
    %c2_i32_40 = arith.constant 2 : i32
    %56 = tpu.memref_slice %arg3[%49, %1] : memref<128x128xf32, #tpu.memory_space<any>> -> memref<1x128xf32, #tpu.memory_space<any>>
    %57 = tpu.memref_squeeze %56 : memref<1x128xf32, #tpu.memory_space<any>> -> memref<128xf32, #tpu.memory_space<any>>
    %c0_i32_41 = arith.constant 0 : i32
    %58 = tpu.memref_slice %arg12[%c0_i32_37, %c2_i32_38, %c0_i32_41] : memref<2x8x128xf32, #tpu.memory_space<vmem>> -> memref<1x1x128xf32, #tpu.memory_space<vmem>>
    %59 = tpu.memref_squeeze %58 : memref<1x1x128xf32, #tpu.memory_space<vmem>> -> memref<128xf32, #tpu.memory_space<vmem>>
    %60 = tpu.memref_slice %arg14[%c0_i32_39, %c2_i32_40] : memref<2x8x!tpu.dma_semaphore, #tpu.memory_space<semaphore_mem>> -> memref<1x1x!tpu.dma_semaphore, #tpu.memory_space<semaphore_mem>>
    %61 = tpu.memref_squeeze %60 : memref<1x1x!tpu.dma_semaphore, #tpu.memory_space<semaphore_mem>> -> memref<!tpu.dma_semaphore, #tpu.memory_space<semaphore_mem>>
    tpu.enqueue_dma source(%57 : memref<128xf32, #tpu.memory_space<any>>) target(%59 : memref<128xf32, #tpu.memory_space<vmem>>) target_semaphore(%61 : memref<!tpu.dma_semaphore, #tpu.memory_space<semaphore_mem>>)
    %c128_i32_42 = arith.constant 128 : i32
    %62 = arith.muli %arg0, %c128_i32_42 : i32
    %c0_i32_43 = arith.constant 0 : i32
    %63 = arith.addi %62, %c0_i32_43 : i32
    %c3_i32 = arith.constant 3 : i32
    %64 = arith.addi %63, %c3_i32 : i32
    %c0_44 = arith.constant 0 : index
    %65 = arith.index_cast %64 : i32 to index
    %66 = memref.load %arg2[%c0_44, %65] : memref<2x128xi32, #tpu.memory_space<smem>>
    %c1_45 = arith.constant 1 : index
    %67 = arith.index_cast %64 : i32 to index
    %68 = memref.load %arg2[%c1_45, %67] : memref<2x128xi32, #tpu.memory_space<smem>>
    %c0_i32_46 = arith.constant 0 : i32
    %c3_i32_47 = arith.constant 3 : i32
    %c0_i32_48 = arith.constant 0 : i32
    %c3_i32_49 = arith.constant 3 : i32
    %69 = tpu.memref_slice %arg3[%66, %1] : memref<128x128xf32, #tpu.memory_space<any>> -> memref<1x128xf32, #tpu.memory_space<any>>
    %70 = tpu.memref_squeeze %69 : memref<1x128xf32, #tpu.memory_space<any>> -> memref<128xf32, #tpu.memory_space<any>>
    %c0_i32_50 = arith.constant 0 : i32
    %71 = tpu.memref_slice %arg11[%c0_i32_46, %c3_i32_47, %c0_i32_50] : memref<2x8x128xf32, #tpu.memory_space<vmem>> -> memref<1x1x128xf32, #tpu.memory_space<vmem>>
    %72 = tpu.memref_squeeze %71 : memref<1x1x128xf32, #tpu.memory_space<vmem>> -> memref<128xf32, #tpu.memory_space<vmem>>
    %73 = tpu.memref_slice %arg13[%c0_i32_48, %c3_i32_49] : memref<2x8x!tpu.dma_semaphore, #tpu.memory_space<semaphore_mem>> -> memref<1x1x!tpu.dma_semaphore, #tpu.memory_space<semaphore_mem>>
    %74 = tpu.memref_squeeze %73 : memref<1x1x!tpu.dma_semaphore, #tpu.memory_space<semaphore_mem>> -> memref<!tpu.dma_semaphore, #tpu.memory_space<semaphore_mem>>
    tpu.enqueue_dma source(%70 : memref<128xf32, #tpu.memory_space<any>>) target(%72 : memref<128xf32, #tpu.memory_space<vmem>>) target_semaphore(%74 : memref<!tpu.dma_semaphore, #tpu.memory_space<semaphore_mem>>)
    %c0_i32_51 = arith.constant 0 : i32
    %c3_i32_52 = arith.constant 3 : i32
    %c0_i32_53 = arith.constant 0 : i32
    %c3_i32_54 = arith.constant 3 : i32
    %75 = tpu.memref_slice %arg3[%68, %1] : memref<128x128xf32, #tpu.memory_space<any>> -> memref<1x128xf32, #tpu.memory_space<any>>
    %76 = tpu.memref_squeeze %75 : memref<1x128xf32, #tpu.memory_space<any>> -> memref<128xf32, #tpu.memory_space<any>>
    %c0_i32_55 = arith.constant 0 : i32
    %77 = tpu.memref_slice %arg12[%c0_i32_51, %c3_i32_52, %c0_i32_55] : memref<2x8x128xf32, #tpu.memory_space<vmem>> -> memref<1x1x128xf32, #tpu.memory_space<vmem>>
    %78 = tpu.memref_squeeze %77 : memref<1x1x128xf32, #tpu.memory_space<vmem>> -> memref<128xf32, #tpu.memory_space<vmem>>
    %79 = tpu.memref_slice %arg14[%c0_i32_53, %c3_i32_54] : memref<2x8x!tpu.dma_semaphore, #tpu.memory_space<semaphore_mem>> -> memref<1x1x!tpu.dma_semaphore, #tpu.memory_space<semaphore_mem>>
    %80 = tpu.memref_squeeze %79 : memref<1x1x!tpu.dma_semaphore, #tpu.memory_space<semaphore_mem>> -> memref<!tpu.dma_semaphore, #tpu.memory_space<semaphore_mem>>
    tpu.enqueue_dma source(%76 : memref<128xf32, #tpu.memory_space<any>>) target(%78 : memref<128xf32, #tpu.memory_space<vmem>>) target_semaphore(%80 : memref<!tpu.dma_semaphore, #tpu.memory_space<semaphore_mem>>)
    %c128_i32_56 = arith.constant 128 : i32
    %81 = arith.muli %arg0, %c128_i32_56 : i32
    %c0_i32_57 = arith.constant 0 : i32
    %82 = arith.addi %81, %c0_i32_57 : i32
    %c4_i32 = arith.constant 4 : i32
    %83 = arith.addi %82, %c4_i32 : i32
    %c0_58 = arith.constant 0 : index
    %84 = arith.index_cast %83 : i32 to index
    %85 = memref.load %arg2[%c0_58, %84] : memref<2x128xi32, #tpu.memory_space<smem>>
    %c1_59 = arith.constant 1 : index
    %86 = arith.index_cast %83 : i32 to index
    %87 = memref.load %arg2[%c1_59, %86] : memref<2x128xi32, #tpu.memory_space<smem>>
    %c0_i32_60 = arith.constant 0 : i32
    %c4_i32_61 = arith.constant 4 : i32
    %c0_i32_62 = arith.constant 0 : i32
    %c4_i32_63 = arith.constant 4 : i32
    %88 = tpu.memref_slice %arg3[%85, %1] : memref<128x128xf32, #tpu.memory_space<any>> -> memref<1x128xf32, #tpu.memory_space<any>>
    %89 = tpu.memref_squeeze %88 : memref<1x128xf32, #tpu.memory_space<any>> -> memref<128xf32, #tpu.memory_space<any>>
    %c0_i32_64 = arith.constant 0 : i32
    %90 = tpu.memref_slice %arg11[%c0_i32_60, %c4_i32_61, %c0_i32_64] : memref<2x8x128xf32, #tpu.memory_space<vmem>> -> memref<1x1x128xf32, #tpu.memory_space<vmem>>
    %91 = tpu.memref_squeeze %90 : memref<1x1x128xf32, #tpu.memory_space<vmem>> -> memref<128xf32, #tpu.memory_space<vmem>>
    %92 = tpu.memref_slice %arg13[%c0_i32_62, %c4_i32_63] : memref<2x8x!tpu.dma_semaphore, #tpu.memory_space<semaphore_mem>> -> memref<1x1x!tpu.dma_semaphore, #tpu.memory_space<semaphore_mem>>
    %93 = tpu.memref_squeeze %92 : memref<1x1x!tpu.dma_semaphore, #tpu.memory_space<semaphore_mem>> -> memref<!tpu.dma_semaphore, #tpu.memory_space<semaphore_mem>>
    tpu.enqueue_dma source(%89 : memref<128xf32, #tpu.memory_space<any>>) target(%91 : memref<128xf32, #tpu.memory_space<vmem>>) target_semaphore(%93 : memref<!tpu.dma_semaphore, #tpu.memory_space<semaphore_mem>>)
    %c0_i32_65 = arith.constant 0 : i32
    %c4_i32_66 = arith.constant 4 : i32
    %c0_i32_67 = arith.constant 0 : i32
    %c4_i32_68 = arith.constant 4 : i32
    %94 = tpu.memref_slice %arg3[%87, %1] : memref<128x128xf32, #tpu.memory_space<any>> -> memref<1x128xf32, #tpu.memory_space<any>>
    %95 = tpu.memref_squeeze %94 : memref<1x128xf32, #tpu.memory_space<any>> -> memref<128xf32, #tpu.memory_space<any>>
    %c0_i32_69 = arith.constant 0 : i32
    %96 = tpu.memref_slice %arg12[%c0_i32_65, %c4_i32_66, %c0_i32_69] : memref<2x8x128xf32, #tpu.memory_space<vmem>> -> memref<1x1x128xf32, #tpu.memory_space<vmem>>
    %97 = tpu.memref_squeeze %96 : memref<1x1x128xf32, #tpu.memory_space<vmem>> -> memref<128xf32, #tpu.memory_space<vmem>>
    %98 = tpu.memref_slice %arg14[%c0_i32_67, %c4_i32_68] : memref<2x8x!tpu.dma_semaphore, #tpu.memory_space<semaphore_mem>> -> memref<1x1x!tpu.dma_semaphore, #tpu.memory_space<semaphore_mem>>
    %99 = tpu.memref_squeeze %98 : memref<1x1x!tpu.dma_semaphore, #tpu.memory_space<semaphore_mem>> -> memref<!tpu.dma_semaphore, #tpu.memory_space<semaphore_mem>>
    tpu.enqueue_dma source(%95 : memref<128xf32, #tpu.memory_space<any>>) target(%97 : memref<128xf32, #tpu.memory_space<vmem>>) target_semaphore(%99 : memref<!tpu.dma_semaphore, #tpu.memory_space<semaphore_mem>>)
    %c128_i32_70 = arith.constant 128 : i32
    %100 = arith.muli %arg0, %c128_i32_70 : i32
    %c0_i32_71 = arith.constant 0 : i32
    %101 = arith.addi %100, %c0_i32_71 : i32
    %c5_i32 = arith.constant 5 : i32
    %102 = arith.addi %101, %c5_i32 : i32
    %c0_72 = arith.constant 0 : index
    %103 = arith.index_cast %102 : i32 to index
    %104 = memref.load %arg2[%c0_72, %103] : memref<2x128xi32, #tpu.memory_space<smem>>
    %c1_73 = arith.constant 1 : index
    %105 = arith.index_cast %102 : i32 to index
    %106 = memref.load %arg2[%c1_73, %105] : memref<2x128xi32, #tpu.memory_space<smem>>
    %c0_i32_74 = arith.constant 0 : i32
    %c5_i32_75 = arith.constant 5 : i32
    %c0_i32_76 = arith.constant 0 : i32
    %c5_i32_77 = arith.constant 5 : i32
    %107 = tpu.memref_slice %arg3[%104, %1] : memref<128x128xf32, #tpu.memory_space<any>> -> memref<1x128xf32, #tpu.memory_space<any>>
    %108 = tpu.memref_squeeze %107 : memref<1x128xf32, #tpu.memory_space<any>> -> memref<128xf32, #tpu.memory_space<any>>
    %c0_i32_78 = arith.constant 0 : i32
    %109 = tpu.memref_slice %arg11[%c0_i32_74, %c5_i32_75, %c0_i32_78] : memref<2x8x128xf32, #tpu.memory_space<vmem>> -> memref<1x1x128xf32, #tpu.memory_space<vmem>>
    %110 = tpu.memref_squeeze %109 : memref<1x1x128xf32, #tpu.memory_space<vmem>> -> memref<128xf32, #tpu.memory_space<vmem>>
    %111 = tpu.memref_slice %arg13[%c0_i32_76, %c5_i32_77] : memref<2x8x!tpu.dma_semaphore, #tpu.memory_space<semaphore_mem>> -> memref<1x1x!tpu.dma_semaphore, #tpu.memory_space<semaphore_mem>>
    %112 = tpu.memref_squeeze %111 : memref<1x1x!tpu.dma_semaphore, #tpu.memory_space<semaphore_mem>> -> memref<!tpu.dma_semaphore, #tpu.memory_space<semaphore_mem>>
    tpu.enqueue_dma source(%108 : memref<128xf32, #tpu.memory_space<any>>) target(%110 : memref<128xf32, #tpu.memory_space<vmem>>) target_semaphore(%112 : memref<!tpu.dma_semaphore, #tpu.memory_space<semaphore_mem>>)
    %c0_i32_79 = arith.constant 0 : i32
    %c5_i32_80 = arith.constant 5 : i32
    %c0_i32_81 = arith.constant 0 : i32
    %c5_i32_82 = arith.constant 5 : i32
    %113 = tpu.memref_slice %arg3[%106, %1] : memref<128x128xf32, #tpu.memory_space<any>> -> memref<1x128xf32, #tpu.memory_space<any>>
    %114 = tpu.memref_squeeze %113 : memref<1x128xf32, #tpu.memory_space<any>> -> memref<128xf32, #tpu.memory_space<any>>
    %c0_i32_83 = arith.constant 0 : i32
    %115 = tpu.memref_slice %arg12[%c0_i32_79, %c5_i32_80, %c0_i32_83] : memref<2x8x128xf32, #tpu.memory_space<vmem>> -> memref<1x1x128xf32, #tpu.memory_space<vmem>>
    %116 = tpu.memref_squeeze %115 : memref<1x1x128xf32, #tpu.memory_space<vmem>> -> memref<128xf32, #tpu.memory_space<vmem>>
    %117 = tpu.memref_slice %arg14[%c0_i32_81, %c5_i32_82] : memref<2x8x!tpu.dma_semaphore, #tpu.memory_space<semaphore_mem>> -> memref<1x1x!tpu.dma_semaphore, #tpu.memory_space<semaphore_mem>>
    %118 = tpu.memref_squeeze %117 : memref<1x1x!tpu.dma_semaphore, #tpu.memory_space<semaphore_mem>> -> memref<!tpu.dma_semaphore, #tpu.memory_space<semaphore_mem>>
    tpu.enqueue_dma source(%114 : memref<128xf32, #tpu.memory_space<any>>) target(%116 : memref<128xf32, #tpu.memory_space<vmem>>) target_semaphore(%118 : memref<!tpu.dma_semaphore, #tpu.memory_space<semaphore_mem>>)
    %c128_i32_84 = arith.constant 128 : i32
    %119 = arith.muli %arg0, %c128_i32_84 : i32
    %c0_i32_85 = arith.constant 0 : i32
    %120 = arith.addi %119, %c0_i32_85 : i32
    %c6_i32 = arith.constant 6 : i32
    %121 = arith.addi %120, %c6_i32 : i32
    %c0_86 = arith.constant 0 : index
    %122 = arith.index_cast %121 : i32 to index
    %123 = memref.load %arg2[%c0_86, %122] : memref<2x128xi32, #tpu.memory_space<smem>>
    %c1_87 = arith.constant 1 : index
    %124 = arith.index_cast %121 : i32 to index
    %125 = memref.load %arg2[%c1_87, %124] : memref<2x128xi32, #tpu.memory_space<smem>>
    %c0_i32_88 = arith.constant 0 : i32
    %c6_i32_89 = arith.constant 6 : i32
    %c0_i32_90 = arith.constant 0 : i32
    %c6_i32_91 = arith.constant 6 : i32
    %126 = tpu.memref_slice %arg3[%123, %1] : memref<128x128xf32, #tpu.memory_space<any>> -> memref<1x128xf32, #tpu.memory_space<any>>
    %127 = tpu.memref_squeeze %126 : memref<1x128xf32, #tpu.memory_space<any>> -> memref<128xf32, #tpu.memory_space<any>>
    %c0_i32_92 = arith.constant 0 : i32
    %128 = tpu.memref_slice %arg11[%c0_i32_88, %c6_i32_89, %c0_i32_92] : memref<2x8x128xf32, #tpu.memory_space<vmem>> -> memref<1x1x128xf32, #tpu.memory_space<vmem>>
    %129 = tpu.memref_squeeze %128 : memref<1x1x128xf32, #tpu.memory_space<vmem>> -> memref<128xf32, #tpu.memory_space<vmem>>
    %130 = tpu.memref_slice %arg13[%c0_i32_90, %c6_i32_91] : memref<2x8x!tpu.dma_semaphore, #tpu.memory_space<semaphore_mem>> -> memref<1x1x!tpu.dma_semaphore, #tpu.memory_space<semaphore_mem>>
    %131 = tpu.memref_squeeze %130 : memref<1x1x!tpu.dma_semaphore, #tpu.memory_space<semaphore_mem>> -> memref<!tpu.dma_semaphore, #tpu.memory_space<semaphore_mem>>
    tpu.enqueue_dma source(%127 : memref<128xf32, #tpu.memory_space<any>>) target(%129 : memref<128xf32, #tpu.memory_space<vmem>>) target_semaphore(%131 : memref<!tpu.dma_semaphore, #tpu.memory_space<semaphore_mem>>)
    %c0_i32_93 = arith.constant 0 : i32
    %c6_i32_94 = arith.constant 6 : i32
    %c0_i32_95 = arith.constant 0 : i32
    %c6_i32_96 = arith.constant 6 : i32
    %132 = tpu.memref_slice %arg3[%125, %1] : memref<128x128xf32, #tpu.memory_space<any>> -> memref<1x128xf32, #tpu.memory_space<any>>
    %133 = tpu.memref_squeeze %132 : memref<1x128xf32, #tpu.memory_space<any>> -> memref<128xf32, #tpu.memory_space<any>>
    %c0_i32_97 = arith.constant 0 : i32
    %134 = tpu.memref_slice %arg12[%c0_i32_93, %c6_i32_94, %c0_i32_97] : memref<2x8x128xf32, #tpu.memory_space<vmem>> -> memref<1x1x128xf32, #tpu.memory_space<vmem>>
    %135 = tpu.memref_squeeze %134 : memref<1x1x128xf32, #tpu.memory_space<vmem>> -> memref<128xf32, #tpu.memory_space<vmem>>
    %136 = tpu.memref_slice %arg14[%c0_i32_95, %c6_i32_96] : memref<2x8x!tpu.dma_semaphore, #tpu.memory_space<semaphore_mem>> -> memref<1x1x!tpu.dma_semaphore, #tpu.memory_space<semaphore_mem>>
    %137 = tpu.memref_squeeze %136 : memref<1x1x!tpu.dma_semaphore, #tpu.memory_space<semaphore_mem>> -> memref<!tpu.dma_semaphore, #tpu.memory_space<semaphore_mem>>
    tpu.enqueue_dma source(%133 : memref<128xf32, #tpu.memory_space<any>>) target(%135 : memref<128xf32, #tpu.memory_space<vmem>>) target_semaphore(%137 : memref<!tpu.dma_semaphore, #tpu.memory_space<semaphore_mem>>)
    %c128_i32_98 = arith.constant 128 : i32
    %138 = arith.muli %arg0, %c128_i32_98 : i32
    %c0_i32_99 = arith.constant 0 : i32
    %139 = arith.addi %138, %c0_i32_99 : i32
    %c7_i32 = arith.constant 7 : i32
    %140 = arith.addi %139, %c7_i32 : i32
    %c0_100 = arith.constant 0 : index
    %141 = arith.index_cast %140 : i32 to index
    %142 = memref.load %arg2[%c0_100, %141] : memref<2x128xi32, #tpu.memory_space<smem>>
    %c1_101 = arith.constant 1 : index
    %143 = arith.index_cast %140 : i32 to index
    %144 = memref.load %arg2[%c1_101, %143] : memref<2x128xi32, #tpu.memory_space<smem>>
    %c0_i32_102 = arith.constant 0 : i32
    %c7_i32_103 = arith.constant 7 : i32
    %c0_i32_104 = arith.constant 0 : i32
    %c7_i32_105 = arith.constant 7 : i32
    %145 = tpu.memref_slice %arg3[%142, %1] : memref<128x128xf32, #tpu.memory_space<any>> -> memref<1x128xf32, #tpu.memory_space<any>>
    %146 = tpu.memref_squeeze %145 : memref<1x128xf32, #tpu.memory_space<any>> -> memref<128xf32, #tpu.memory_space<any>>
    %c0_i32_106 = arith.constant 0 : i32
    %147 = tpu.memref_slice %arg11[%c0_i32_102, %c7_i32_103, %c0_i32_106] : memref<2x8x128xf32, #tpu.memory_space<vmem>> -> memref<1x1x128xf32, #tpu.memory_space<vmem>>
    %148 = tpu.memref_squeeze %147 : memref<1x1x128xf32, #tpu.memory_space<vmem>> -> memref<128xf32, #tpu.memory_space<vmem>>
    %149 = tpu.memref_slice %arg13[%c0_i32_104, %c7_i32_105] : memref<2x8x!tpu.dma_semaphore, #tpu.memory_space<semaphore_mem>> -> memref<1x1x!tpu.dma_semaphore, #tpu.memory_space<semaphore_mem>>
    %150 = tpu.memref_squeeze %149 : memref<1x1x!tpu.dma_semaphore, #tpu.memory_space<semaphore_mem>> -> memref<!tpu.dma_semaphore, #tpu.memory_space<semaphore_mem>>
    tpu.enqueue_dma source(%146 : memref<128xf32, #tpu.memory_space<any>>) target(%148 : memref<128xf32, #tpu.memory_space<vmem>>) target_semaphore(%150 : memref<!tpu.dma_semaphore, #tpu.memory_space<semaphore_mem>>)
    %c0_i32_107 = arith.constant 0 : i32
    %c7_i32_108 = arith.constant 7 : i32
    %c0_i32_109 = arith.constant 0 : i32
    %c7_i32_110 = arith.constant 7 : i32
    %151 = tpu.memref_slice %arg3[%144, %1] : memref<128x128xf32, #tpu.memory_space<any>> -> memref<1x128xf32, #tpu.memory_space<any>>
    %152 = tpu.memref_squeeze %151 : memref<1x128xf32, #tpu.memory_space<any>> -> memref<128xf32, #tpu.memory_space<any>>
    %c0_i32_111 = arith.constant 0 : i32
    %153 = tpu.memref_slice %arg12[%c0_i32_107, %c7_i32_108, %c0_i32_111] : memref<2x8x128xf32, #tpu.memory_space<vmem>> -> memref<1x1x128xf32, #tpu.memory_space<vmem>>
    %154 = tpu.memref_squeeze %153 : memref<1x1x128xf32, #tpu.memory_space<vmem>> -> memref<128xf32, #tpu.memory_space<vmem>>
    %155 = tpu.memref_slice %arg14[%c0_i32_109, %c7_i32_110] : memref<2x8x!tpu.dma_semaphore, #tpu.memory_space<semaphore_mem>> -> memref<1x1x!tpu.dma_semaphore, #tpu.memory_space<semaphore_mem>>
    %156 = tpu.memref_squeeze %155 : memref<1x1x!tpu.dma_semaphore, #tpu.memory_space<semaphore_mem>> -> memref<!tpu.dma_semaphore, #tpu.memory_space<semaphore_mem>>
    tpu.enqueue_dma source(%152 : memref<128xf32, #tpu.memory_space<any>>) target(%154 : memref<128xf32, #tpu.memory_space<vmem>>) target_semaphore(%156 : memref<!tpu.dma_semaphore, #tpu.memory_space<semaphore_mem>>)
    %c0_112 = arith.constant 0 : index
    %c0_113 = arith.constant 0 : index
    %157 = vector.load %arg4[%c0_112, %c0_113] : memref<1x128xf32, #tpu.memory_space<vmem>>, vector<1x128xf32>
    %158 = vector.shape_cast %157 : vector<1x128xf32> to vector<1x128xf32>
    %159 = vector.broadcast %158 : vector<1x128xf32> to vector<8x128xf32>
    %c0_i32_114 = arith.constant 0 : i32
    %c16_i32 = arith.constant 16 : i32
    %160 = arith.addi %c0_i32_114, %c16_i32 : i32
    %c1_i32_115 = arith.constant 1 : i32
    scf.for %arg16 = %c0_i32_114 to %160 step %c1_i32_115  : i32 {
      %c1_i32_119 = arith.constant 1 : i32
      %164 = arith.muli %arg16, %c1_i32_119 : i32
      %c0_i32_120 = arith.constant 0 : i32
      %165 = arith.addi %c0_i32_120, %164 : i32
      %c2_i32_121 = arith.constant 2 : i32
      %c0_i32_122 = arith.constant 0 : i32
      %166 = arith.cmpi eq, %c2_i32_121, %c0_i32_122 : i32
      %c1_i32_123 = arith.constant 1 : i32
      %167 = arith.select %166, %c1_i32_123, %c2_i32_121 : i32
      %168 = arith.remsi %165, %167 : i32
      %c0_i32_124 = arith.constant 0 : i32
      %169 = arith.cmpi ne, %168, %c0_i32_124 : i32
      %c0_i32_125 = arith.constant 0 : i32
      %170 = arith.cmpi slt, %168, %c0_i32_125 : i32
      %c0_i32_126 = arith.constant 0 : i32
      %171 = arith.cmpi slt, %167, %c0_i32_126 : i32
      %172 = arith.xori %170, %171 : i1
      %173 = arith.andi %172, %169 : i1
      %174 = arith.addi %168, %167 : i32
      %175 = arith.select %173, %174, %168 : i32
      %c0_i32_127 = arith.constant 0 : i32
      %c0_i32_128 = arith.constant 0 : i32
      %c0_i32_129 = arith.constant 0 : i32
      %c0_i32_130 = arith.constant 0 : i32
      %176 = tpu.memref_slice %arg3[%c0_i32_127, %c0_i32_130] : memref<128x128xf32, #tpu.memory_space<any>> -> memref<1x128xf32, #tpu.memory_space<any>>
      %177 = tpu.memref_squeeze %176 : memref<1x128xf32, #tpu.memory_space<any>> -> memref<128xf32, #tpu.memory_space<any>>
      %c0_i32_131 = arith.constant 0 : i32
      %178 = tpu.memref_slice %arg11[%175, %c0_i32_128, %c0_i32_131] : memref<2x8x128xf32, #tpu.memory_space<vmem>> -> memref<1x1x128xf32, #tpu.memory_space<vmem>>
      %179 = tpu.memref_squeeze %178 : memref<1x1x128xf32, #tpu.memory_space<vmem>> -> memref<128xf32, #tpu.memory_space<vmem>>
      %180 = tpu.memref_slice %arg13[%175, %c0_i32_129] : memref<2x8x!tpu.dma_semaphore, #tpu.memory_space<semaphore_mem>> -> memref<1x1x!tpu.dma_semaphore, #tpu.memory_space<semaphore_mem>>
      %181 = tpu.memref_squeeze %180 : memref<1x1x!tpu.dma_semaphore, #tpu.memory_space<semaphore_mem>> -> memref<!tpu.dma_semaphore, #tpu.memory_space<semaphore_mem>>
      tpu.wait_dma2 semaphore(%181 : memref<!tpu.dma_semaphore, #tpu.memory_space<semaphore_mem>>) src(%177 : memref<128xf32, #tpu.memory_space<any>>) dst(%179 : memref<128xf32, #tpu.memory_space<vmem>>)
      %c0_i32_132 = arith.constant 0 : i32
      %c0_i32_133 = arith.constant 0 : i32
      %c0_i32_134 = arith.constant 0 : i32
      %c0_i32_135 = arith.constant 0 : i32
      %182 = tpu.memref_slice %arg3[%c0_i32_132, %c0_i32_135] : memref<128x128xf32, #tpu.memory_space<any>> -> memref<1x128xf32, #tpu.memory_space<any>>
      %183 = tpu.memref_squeeze %182 : memref<1x128xf32, #tpu.memory_space<any>> -> memref<128xf32, #tpu.memory_space<any>>
      %c0_i32_136 = arith.constant 0 : i32
      %184 = tpu.memref_slice %arg12[%175, %c0_i32_133, %c0_i32_136] : memref<2x8x128xf32, #tpu.memory_space<vmem>> -> memref<1x1x128xf32, #tpu.memory_space<vmem>>
      %185 = tpu.memref_squeeze %184 : memref<1x1x128xf32, #tpu.memory_space<vmem>> -> memref<128xf32, #tpu.memory_space<vmem>>
      %186 = tpu.memref_slice %arg14[%175, %c0_i32_134] : memref<2x8x!tpu.dma_semaphore, #tpu.memory_space<semaphore_mem>> -> memref<1x1x!tpu.dma_semaphore, #tpu.memory_space<semaphore_mem>>
      %187 = tpu.memref_squeeze %186 : memref<1x1x!tpu.dma_semaphore, #tpu.memory_space<semaphore_mem>> -> memref<!tpu.dma_semaphore, #tpu.memory_space<semaphore_mem>>
      tpu.wait_dma2 semaphore(%187 : memref<!tpu.dma_semaphore, #tpu.memory_space<semaphore_mem>>) src(%183 : memref<128xf32, #tpu.memory_space<any>>) dst(%185 : memref<128xf32, #tpu.memory_space<vmem>>)
      %c0_i32_137 = arith.constant 0 : i32
      %c1_i32_138 = arith.constant 1 : i32
      %c1_i32_139 = arith.constant 1 : i32
      %c0_i32_140 = arith.constant 0 : i32
      %188 = tpu.memref_slice %arg3[%c0_i32_137, %c0_i32_140] : memref<128x128xf32, #tpu.memory_space<any>> -> memref<1x128xf32, #tpu.memory_space<any>>
      %189 = tpu.memref_squeeze %188 : memref<1x128xf32, #tpu.memory_space<any>> -> memref<128xf32, #tpu.memory_space<any>>
      %c0_i32_141 = arith.constant 0 : i32
      %190 = tpu.memref_slice %arg11[%175, %c1_i32_138, %c0_i32_141] : memref<2x8x128xf32, #tpu.memory_space<vmem>> -> memref<1x1x128xf32, #tpu.memory_space<vmem>>
      %191 = tpu.memref_squeeze %190 : memref<1x1x128xf32, #tpu.memory_space<vmem>> -> memref<128xf32, #tpu.memory_space<vmem>>
      %192 = tpu.memref_slice %arg13[%175, %c1_i32_139] : memref<2x8x!tpu.dma_semaphore, #tpu.memory_space<semaphore_mem>> -> memref<1x1x!tpu.dma_semaphore, #tpu.memory_space<semaphore_mem>>
      %193 = tpu.memref_squeeze %192 : memref<1x1x!tpu.dma_semaphore, #tpu.memory_space<semaphore_mem>> -> memref<!tpu.dma_semaphore, #tpu.memory_space<semaphore_mem>>
      tpu.wait_dma2 semaphore(%193 : memref<!tpu.dma_semaphore, #tpu.memory_space<semaphore_mem>>) src(%189 : memref<128xf32, #tpu.memory_space<any>>) dst(%191 : memref<128xf32, #tpu.memory_space<vmem>>)
      %c0_i32_142 = arith.constant 0 : i32
      %c1_i32_143 = arith.constant 1 : i32
      %c1_i32_144 = arith.constant 1 : i32
      %c0_i32_145 = arith.constant 0 : i32
      %194 = tpu.memref_slice %arg3[%c0_i32_142, %c0_i32_145] : memref<128x128xf32, #tpu.memory_space<any>> -> memref<1x128xf32, #tpu.memory_space<any>>
      %195 = tpu.memref_squeeze %194 : memref<1x128xf32, #tpu.memory_space<any>> -> memref<128xf32, #tpu.memory_space<any>>
      %c0_i32_146 = arith.constant 0 : i32
      %196 = tpu.memref_slice %arg12[%175, %c1_i32_143, %c0_i32_146] : memref<2x8x128xf32, #tpu.memory_space<vmem>> -> memref<1x1x128xf32, #tpu.memory_space<vmem>>
      %197 = tpu.memref_squeeze %196 : memref<1x1x128xf32, #tpu.memory_space<vmem>> -> memref<128xf32, #tpu.memory_space<vmem>>
      %198 = tpu.memref_slice %arg14[%175, %c1_i32_144] : memref<2x8x!tpu.dma_semaphore, #tpu.memory_space<semaphore_mem>> -> memref<1x1x!tpu.dma_semaphore, #tpu.memory_space<semaphore_mem>>
      %199 = tpu.memref_squeeze %198 : memref<1x1x!tpu.dma_semaphore, #tpu.memory_space<semaphore_mem>> -> memref<!tpu.dma_semaphore, #tpu.memory_space<semaphore_mem>>
      tpu.wait_dma2 semaphore(%199 : memref<!tpu.dma_semaphore, #tpu.memory_space<semaphore_mem>>) src(%195 : memref<128xf32, #tpu.memory_space<any>>) dst(%197 : memref<128xf32, #tpu.memory_space<vmem>>)
      %c0_i32_147 = arith.constant 0 : i32
      %c2_i32_148 = arith.constant 2 : i32
      %c2_i32_149 = arith.constant 2 : i32
      %c0_i32_150 = arith.constant 0 : i32
      %200 = tpu.memref_slice %arg3[%c0_i32_147, %c0_i32_150] : memref<128x128xf32, #tpu.memory_space<any>> -> memref<1x128xf32, #tpu.memory_space<any>>
      %201 = tpu.memref_squeeze %200 : memref<1x128xf32, #tpu.memory_space<any>> -> memref<128xf32, #tpu.memory_space<any>>
      %c0_i32_151 = arith.constant 0 : i32
      %202 = tpu.memref_slice %arg11[%175, %c2_i32_148, %c0_i32_151] : memref<2x8x128xf32, #tpu.memory_space<vmem>> -> memref<1x1x128xf32, #tpu.memory_space<vmem>>
      %203 = tpu.memref_squeeze %202 : memref<1x1x128xf32, #tpu.memory_space<vmem>> -> memref<128xf32, #tpu.memory_space<vmem>>
      %204 = tpu.memref_slice %arg13[%175, %c2_i32_149] : memref<2x8x!tpu.dma_semaphore, #tpu.memory_space<semaphore_mem>> -> memref<1x1x!tpu.dma_semaphore, #tpu.memory_space<semaphore_mem>>
      %205 = tpu.memref_squeeze %204 : memref<1x1x!tpu.dma_semaphore, #tpu.memory_space<semaphore_mem>> -> memref<!tpu.dma_semaphore, #tpu.memory_space<semaphore_mem>>
      tpu.wait_dma2 semaphore(%205 : memref<!tpu.dma_semaphore, #tpu.memory_space<semaphore_mem>>) src(%201 : memref<128xf32, #tpu.memory_space<any>>) dst(%203 : memref<128xf32, #tpu.memory_space<vmem>>)
      %c0_i32_152 = arith.constant 0 : i32
      %c2_i32_153 = arith.constant 2 : i32
      %c2_i32_154 = arith.constant 2 : i32
      %c0_i32_155 = arith.constant 0 : i32
      %206 = tpu.memref_slice %arg3[%c0_i32_152, %c0_i32_155] : memref<128x128xf32, #tpu.memory_space<any>> -> memref<1x128xf32, #tpu.memory_space<any>>
      %207 = tpu.memref_squeeze %206 : memref<1x128xf32, #tpu.memory_space<any>> -> memref<128xf32, #tpu.memory_space<any>>
      %c0_i32_156 = arith.constant 0 : i32
      %208 = tpu.memref_slice %arg12[%175, %c2_i32_153, %c0_i32_156] : memref<2x8x128xf32, #tpu.memory_space<vmem>> -> memref<1x1x128xf32, #tpu.memory_space<vmem>>
      %209 = tpu.memref_squeeze %208 : memref<1x1x128xf32, #tpu.memory_space<vmem>> -> memref<128xf32, #tpu.memory_space<vmem>>
      %210 = tpu.memref_slice %arg14[%175, %c2_i32_154] : memref<2x8x!tpu.dma_semaphore, #tpu.memory_space<semaphore_mem>> -> memref<1x1x!tpu.dma_semaphore, #tpu.memory_space<semaphore_mem>>
      %211 = tpu.memref_squeeze %210 : memref<1x1x!tpu.dma_semaphore, #tpu.memory_space<semaphore_mem>> -> memref<!tpu.dma_semaphore, #tpu.memory_space<semaphore_mem>>
      tpu.wait_dma2 semaphore(%211 : memref<!tpu.dma_semaphore, #tpu.memory_space<semaphore_mem>>) src(%207 : memref<128xf32, #tpu.memory_space<any>>) dst(%209 : memref<128xf32, #tpu.memory_space<vmem>>)
      %c0_i32_157 = arith.constant 0 : i32
      %c3_i32_158 = arith.constant 3 : i32
      %c3_i32_159 = arith.constant 3 : i32
      %c0_i32_160 = arith.constant 0 : i32
      %212 = tpu.memref_slice %arg3[%c0_i32_157, %c0_i32_160] : memref<128x128xf32, #tpu.memory_space<any>> -> memref<1x128xf32, #tpu.memory_space<any>>
      %213 = tpu.memref_squeeze %212 : memref<1x128xf32, #tpu.memory_space<any>> -> memref<128xf32, #tpu.memory_space<any>>
      %c0_i32_161 = arith.constant 0 : i32
      %214 = tpu.memref_slice %arg11[%175, %c3_i32_158, %c0_i32_161] : memref<2x8x128xf32, #tpu.memory_space<vmem>> -> memref<1x1x128xf32, #tpu.memory_space<vmem>>
      %215 = tpu.memref_squeeze %214 : memref<1x1x128xf32, #tpu.memory_space<vmem>> -> memref<128xf32, #tpu.memory_space<vmem>>
      %216 = tpu.memref_slice %arg13[%175, %c3_i32_159] : memref<2x8x!tpu.dma_semaphore, #tpu.memory_space<semaphore_mem>> -> memref<1x1x!tpu.dma_semaphore, #tpu.memory_space<semaphore_mem>>
      %217 = tpu.memref_squeeze %216 : memref<1x1x!tpu.dma_semaphore, #tpu.memory_space<semaphore_mem>> -> memref<!tpu.dma_semaphore, #tpu.memory_space<semaphore_mem>>
      tpu.wait_dma2 semaphore(%217 : memref<!tpu.dma_semaphore, #tpu.memory_space<semaphore_mem>>) src(%213 : memref<128xf32, #tpu.memory_space<any>>) dst(%215 : memref<128xf32, #tpu.memory_space<vmem>>)
      %c0_i32_162 = arith.constant 0 : i32
      %c3_i32_163 = arith.constant 3 : i32
      %c3_i32_164 = arith.constant 3 : i32
      %c0_i32_165 = arith.constant 0 : i32
      %218 = tpu.memref_slice %arg3[%c0_i32_162, %c0_i32_165] : memref<128x128xf32, #tpu.memory_space<any>> -> memref<1x128xf32, #tpu.memory_space<any>>
      %219 = tpu.memref_squeeze %218 : memref<1x128xf32, #tpu.memory_space<any>> -> memref<128xf32, #tpu.memory_space<any>>
      %c0_i32_166 = arith.constant 0 : i32
      %220 = tpu.memref_slice %arg12[%175, %c3_i32_163, %c0_i32_166] : memref<2x8x128xf32, #tpu.memory_space<vmem>> -> memref<1x1x128xf32, #tpu.memory_space<vmem>>
      %221 = tpu.memref_squeeze %220 : memref<1x1x128xf32, #tpu.memory_space<vmem>> -> memref<128xf32, #tpu.memory_space<vmem>>
      %222 = tpu.memref_slice %arg14[%175, %c3_i32_164] : memref<2x8x!tpu.dma_semaphore, #tpu.memory_space<semaphore_mem>> -> memref<1x1x!tpu.dma_semaphore, #tpu.memory_space<semaphore_mem>>
      %223 = tpu.memref_squeeze %222 : memref<1x1x!tpu.dma_semaphore, #tpu.memory_space<semaphore_mem>> -> memref<!tpu.dma_semaphore, #tpu.memory_space<semaphore_mem>>
      tpu.wait_dma2 semaphore(%223 : memref<!tpu.dma_semaphore, #tpu.memory_space<semaphore_mem>>) src(%219 : memref<128xf32, #tpu.memory_space<any>>) dst(%221 : memref<128xf32, #tpu.memory_space<vmem>>)
      %c0_i32_167 = arith.constant 0 : i32
      %c4_i32_168 = arith.constant 4 : i32
      %c4_i32_169 = arith.constant 4 : i32
      %c0_i32_170 = arith.constant 0 : i32
      %224 = tpu.memref_slice %arg3[%c0_i32_167, %c0_i32_170] : memref<128x128xf32, #tpu.memory_space<any>> -> memref<1x128xf32, #tpu.memory_space<any>>
      %225 = tpu.memref_squeeze %224 : memref<1x128xf32, #tpu.memory_space<any>> -> memref<128xf32, #tpu.memory_space<any>>
      %c0_i32_171 = arith.constant 0 : i32
      %226 = tpu.memref_slice %arg11[%175, %c4_i32_168, %c0_i32_171] : memref<2x8x128xf32, #tpu.memory_space<vmem>> -> memref<1x1x128xf32, #tpu.memory_space<vmem>>
      %227 = tpu.memref_squeeze %226 : memref<1x1x128xf32, #tpu.memory_space<vmem>> -> memref<128xf32, #tpu.memory_space<vmem>>
      %228 = tpu.memref_slice %arg13[%175, %c4_i32_169] : memref<2x8x!tpu.dma_semaphore, #tpu.memory_space<semaphore_mem>> -> memref<1x1x!tpu.dma_semaphore, #tpu.memory_space<semaphore_mem>>
      %229 = tpu.memref_squeeze %228 : memref<1x1x!tpu.dma_semaphore, #tpu.memory_space<semaphore_mem>> -> memref<!tpu.dma_semaphore, #tpu.memory_space<semaphore_mem>>
      tpu.wait_dma2 semaphore(%229 : memref<!tpu.dma_semaphore, #tpu.memory_space<semaphore_mem>>) src(%225 : memref<128xf32, #tpu.memory_space<any>>) dst(%227 : memref<128xf32, #tpu.memory_space<vmem>>)
      %c0_i32_172 = arith.constant 0 : i32
      %c4_i32_173 = arith.constant 4 : i32
      %c4_i32_174 = arith.constant 4 : i32
      %c0_i32_175 = arith.constant 0 : i32
      %230 = tpu.memref_slice %arg3[%c0_i32_172, %c0_i32_175] : memref<128x128xf32, #tpu.memory_space<any>> -> memref<1x128xf32, #tpu.memory_space<any>>
      %231 = tpu.memref_squeeze %230 : memref<1x128xf32, #tpu.memory_space<any>> -> memref<128xf32, #tpu.memory_space<any>>
      %c0_i32_176 = arith.constant 0 : i32
      %232 = tpu.memref_slice %arg12[%175, %c4_i32_173, %c0_i32_176] : memref<2x8x128xf32, #tpu.memory_space<vmem>> -> memref<1x1x128xf32, #tpu.memory_space<vmem>>
      %233 = tpu.memref_squeeze %232 : memref<1x1x128xf32, #tpu.memory_space<vmem>> -> memref<128xf32, #tpu.memory_space<vmem>>
      %234 = tpu.memref_slice %arg14[%175, %c4_i32_174] : memref<2x8x!tpu.dma_semaphore, #tpu.memory_space<semaphore_mem>> -> memref<1x1x!tpu.dma_semaphore, #tpu.memory_space<semaphore_mem>>
      %235 = tpu.memref_squeeze %234 : memref<1x1x!tpu.dma_semaphore, #tpu.memory_space<semaphore_mem>> -> memref<!tpu.dma_semaphore, #tpu.memory_space<semaphore_mem>>
      tpu.wait_dma2 semaphore(%235 : memref<!tpu.dma_semaphore, #tpu.memory_space<semaphore_mem>>) src(%231 : memref<128xf32, #tpu.memory_space<any>>) dst(%233 : memref<128xf32, #tpu.memory_space<vmem>>)
      %c0_i32_177 = arith.constant 0 : i32
      %c5_i32_178 = arith.constant 5 : i32
      %c5_i32_179 = arith.constant 5 : i32
      %c0_i32_180 = arith.constant 0 : i32
      %236 = tpu.memref_slice %arg3[%c0_i32_177, %c0_i32_180] : memref<128x128xf32, #tpu.memory_space<any>> -> memref<1x128xf32, #tpu.memory_space<any>>
      %237 = tpu.memref_squeeze %236 : memref<1x128xf32, #tpu.memory_space<any>> -> memref<128xf32, #tpu.memory_space<any>>
      %c0_i32_181 = arith.constant 0 : i32
      %238 = tpu.memref_slice %arg11[%175, %c5_i32_178, %c0_i32_181] : memref<2x8x128xf32, #tpu.memory_space<vmem>> -> memref<1x1x128xf32, #tpu.memory_space<vmem>>
      %239 = tpu.memref_squeeze %238 : memref<1x1x128xf32, #tpu.memory_space<vmem>> -> memref<128xf32, #tpu.memory_space<vmem>>
      %240 = tpu.memref_slice %arg13[%175, %c5_i32_179] : memref<2x8x!tpu.dma_semaphore, #tpu.memory_space<semaphore_mem>> -> memref<1x1x!tpu.dma_semaphore, #tpu.memory_space<semaphore_mem>>
      %241 = tpu.memref_squeeze %240 : memref<1x1x!tpu.dma_semaphore, #tpu.memory_space<semaphore_mem>> -> memref<!tpu.dma_semaphore, #tpu.memory_space<semaphore_mem>>
      tpu.wait_dma2 semaphore(%241 : memref<!tpu.dma_semaphore, #tpu.memory_space<semaphore_mem>>) src(%237 : memref<128xf32, #tpu.memory_space<any>>) dst(%239 : memref<128xf32, #tpu.memory_space<vmem>>)
      %c0_i32_182 = arith.constant 0 : i32
      %c5_i32_183 = arith.constant 5 : i32
      %c5_i32_184 = arith.constant 5 : i32
      %c0_i32_185 = arith.constant 0 : i32
      %242 = tpu.memref_slice %arg3[%c0_i32_182, %c0_i32_185] : memref<128x128xf32, #tpu.memory_space<any>> -> memref<1x128xf32, #tpu.memory_space<any>>
      %243 = tpu.memref_squeeze %242 : memref<1x128xf32, #tpu.memory_space<any>> -> memref<128xf32, #tpu.memory_space<any>>
      %c0_i32_186 = arith.constant 0 : i32
      %244 = tpu.memref_slice %arg12[%175, %c5_i32_183, %c0_i32_186] : memref<2x8x128xf32, #tpu.memory_space<vmem>> -> memref<1x1x128xf32, #tpu.memory_space<vmem>>
      %245 = tpu.memref_squeeze %244 : memref<1x1x128xf32, #tpu.memory_space<vmem>> -> memref<128xf32, #tpu.memory_space<vmem>>
      %246 = tpu.memref_slice %arg14[%175, %c5_i32_184] : memref<2x8x!tpu.dma_semaphore, #tpu.memory_space<semaphore_mem>> -> memref<1x1x!tpu.dma_semaphore, #tpu.memory_space<semaphore_mem>>
      %247 = tpu.memref_squeeze %246 : memref<1x1x!tpu.dma_semaphore, #tpu.memory_space<semaphore_mem>> -> memref<!tpu.dma_semaphore, #tpu.memory_space<semaphore_mem>>
      tpu.wait_dma2 semaphore(%247 : memref<!tpu.dma_semaphore, #tpu.memory_space<semaphore_mem>>) src(%243 : memref<128xf32, #tpu.memory_space<any>>) dst(%245 : memref<128xf32, #tpu.memory_space<vmem>>)
      %c0_i32_187 = arith.constant 0 : i32
      %c6_i32_188 = arith.constant 6 : i32
      %c6_i32_189 = arith.constant 6 : i32
      %c0_i32_190 = arith.constant 0 : i32
      %248 = tpu.memref_slice %arg3[%c0_i32_187, %c0_i32_190] : memref<128x128xf32, #tpu.memory_space<any>> -> memref<1x128xf32, #tpu.memory_space<any>>
      %249 = tpu.memref_squeeze %248 : memref<1x128xf32, #tpu.memory_space<any>> -> memref<128xf32, #tpu.memory_space<any>>
      %c0_i32_191 = arith.constant 0 : i32
      %250 = tpu.memref_slice %arg11[%175, %c6_i32_188, %c0_i32_191] : memref<2x8x128xf32, #tpu.memory_space<vmem>> -> memref<1x1x128xf32, #tpu.memory_space<vmem>>
      %251 = tpu.memref_squeeze %250 : memref<1x1x128xf32, #tpu.memory_space<vmem>> -> memref<128xf32, #tpu.memory_space<vmem>>
      %252 = tpu.memref_slice %arg13[%175, %c6_i32_189] : memref<2x8x!tpu.dma_semaphore, #tpu.memory_space<semaphore_mem>> -> memref<1x1x!tpu.dma_semaphore, #tpu.memory_space<semaphore_mem>>
      %253 = tpu.memref_squeeze %252 : memref<1x1x!tpu.dma_semaphore, #tpu.memory_space<semaphore_mem>> -> memref<!tpu.dma_semaphore, #tpu.memory_space<semaphore_mem>>
      tpu.wait_dma2 semaphore(%253 : memref<!tpu.dma_semaphore, #tpu.memory_space<semaphore_mem>>) src(%249 : memref<128xf32, #tpu.memory_space<any>>) dst(%251 : memref<128xf32, #tpu.memory_space<vmem>>)
      %c0_i32_192 = arith.constant 0 : i32
      %c6_i32_193 = arith.constant 6 : i32
      %c6_i32_194 = arith.constant 6 : i32
      %c0_i32_195 = arith.constant 0 : i32
      %254 = tpu.memref_slice %arg3[%c0_i32_192, %c0_i32_195] : memref<128x128xf32, #tpu.memory_space<any>> -> memref<1x128xf32, #tpu.memory_space<any>>
      %255 = tpu.memref_squeeze %254 : memref<1x128xf32, #tpu.memory_space<any>> -> memref<128xf32, #tpu.memory_space<any>>
      %c0_i32_196 = arith.constant 0 : i32
      %256 = tpu.memref_slice %arg12[%175, %c6_i32_193, %c0_i32_196] : memref<2x8x128xf32, #tpu.memory_space<vmem>> -> memref<1x1x128xf32, #tpu.memory_space<vmem>>
      %257 = tpu.memref_squeeze %256 : memref<1x1x128xf32, #tpu.memory_space<vmem>> -> memref<128xf32, #tpu.memory_space<vmem>>
      %258 = tpu.memref_slice %arg14[%175, %c6_i32_194] : memref<2x8x!tpu.dma_semaphore, #tpu.memory_space<semaphore_mem>> -> memref<1x1x!tpu.dma_semaphore, #tpu.memory_space<semaphore_mem>>
      %259 = tpu.memref_squeeze %258 : memref<1x1x!tpu.dma_semaphore, #tpu.memory_space<semaphore_mem>> -> memref<!tpu.dma_semaphore, #tpu.memory_space<semaphore_mem>>
      tpu.wait_dma2 semaphore(%259 : memref<!tpu.dma_semaphore, #tpu.memory_space<semaphore_mem>>) src(%255 : memref<128xf32, #tpu.memory_space<any>>) dst(%257 : memref<128xf32, #tpu.memory_space<vmem>>)
      %c0_i32_197 = arith.constant 0 : i32
      %c7_i32_198 = arith.constant 7 : i32
      %c7_i32_199 = arith.constant 7 : i32
      %c0_i32_200 = arith.constant 0 : i32
      %260 = tpu.memref_slice %arg3[%c0_i32_197, %c0_i32_200] : memref<128x128xf32, #tpu.memory_space<any>> -> memref<1x128xf32, #tpu.memory_space<any>>
      %261 = tpu.memref_squeeze %260 : memref<1x128xf32, #tpu.memory_space<any>> -> memref<128xf32, #tpu.memory_space<any>>
      %c0_i32_201 = arith.constant 0 : i32
      %262 = tpu.memref_slice %arg11[%175, %c7_i32_198, %c0_i32_201] : memref<2x8x128xf32, #tpu.memory_space<vmem>> -> memref<1x1x128xf32, #tpu.memory_space<vmem>>
      %263 = tpu.memref_squeeze %262 : memref<1x1x128xf32, #tpu.memory_space<vmem>> -> memref<128xf32, #tpu.memory_space<vmem>>
      %264 = tpu.memref_slice %arg13[%175, %c7_i32_199] : memref<2x8x!tpu.dma_semaphore, #tpu.memory_space<semaphore_mem>> -> memref<1x1x!tpu.dma_semaphore, #tpu.memory_space<semaphore_mem>>
      %265 = tpu.memref_squeeze %264 : memref<1x1x!tpu.dma_semaphore, #tpu.memory_space<semaphore_mem>> -> memref<!tpu.dma_semaphore, #tpu.memory_space<semaphore_mem>>
      tpu.wait_dma2 semaphore(%265 : memref<!tpu.dma_semaphore, #tpu.memory_space<semaphore_mem>>) src(%261 : memref<128xf32, #tpu.memory_space<any>>) dst(%263 : memref<128xf32, #tpu.memory_space<vmem>>)
      %c0_i32_202 = arith.constant 0 : i32
      %c7_i32_203 = arith.constant 7 : i32
      %c7_i32_204 = arith.constant 7 : i32
      %c0_i32_205 = arith.constant 0 : i32
      %266 = tpu.memref_slice %arg3[%c0_i32_202, %c0_i32_205] : memref<128x128xf32, #tpu.memory_space<any>> -> memref<1x128xf32, #tpu.memory_space<any>>
      %267 = tpu.memref_squeeze %266 : memref<1x128xf32, #tpu.memory_space<any>> -> memref<128xf32, #tpu.memory_space<any>>
      %c0_i32_206 = arith.constant 0 : i32
      %268 = tpu.memref_slice %arg12[%175, %c7_i32_203, %c0_i32_206] : memref<2x8x128xf32, #tpu.memory_space<vmem>> -> memref<1x1x128xf32, #tpu.memory_space<vmem>>
      %269 = tpu.memref_squeeze %268 : memref<1x1x128xf32, #tpu.memory_space<vmem>> -> memref<128xf32, #tpu.memory_space<vmem>>
      %270 = tpu.memref_slice %arg14[%175, %c7_i32_204] : memref<2x8x!tpu.dma_semaphore, #tpu.memory_space<semaphore_mem>> -> memref<1x1x!tpu.dma_semaphore, #tpu.memory_space<semaphore_mem>>
      %271 = tpu.memref_squeeze %270 : memref<1x1x!tpu.dma_semaphore, #tpu.memory_space<semaphore_mem>> -> memref<!tpu.dma_semaphore, #tpu.memory_space<semaphore_mem>>
      tpu.wait_dma2 semaphore(%271 : memref<!tpu.dma_semaphore, #tpu.memory_space<semaphore_mem>>) src(%267 : memref<128xf32, #tpu.memory_space<any>>) dst(%269 : memref<128xf32, #tpu.memory_space<vmem>>)
      %c1_i32_207 = arith.constant 1 : i32
      %272 = arith.addi %165, %c1_i32_207 : i32
      %c16_i32_208 = arith.constant 16 : i32
      %273 = arith.cmpi slt, %272, %c16_i32_208 : i32
      %274 = arith.extui %273 : i1 to i32
      %c0_i32_209 = arith.constant 0 : i32
      %275 = arith.cmpi ne, %274, %c0_i32_209 : i32
      scf.if %275 {
        %c1_i32_216 = arith.constant 1 : i32
        %293 = arith.addi %165, %c1_i32_216 : i32
        %c1_i32_217 = arith.constant 1 : i32
        %294 = arith.subi %c1_i32_217, %175 : i32
        %c128_i32_218 = arith.constant 128 : i32
        %295 = arith.muli %arg0, %c128_i32_218 : i32
        %c8_i32_219 = arith.constant 8 : i32
        %296 = arith.muli %293, %c8_i32_219 : i32
        %297 = arith.addi %295, %296 : i32
        %c0_i32_220 = arith.constant 0 : i32
        %298 = arith.addi %297, %c0_i32_220 : i32
        %c0_221 = arith.constant 0 : index
        %299 = arith.index_cast %298 : i32 to index
        %300 = memref.load %arg2[%c0_221, %299] : memref<2x128xi32, #tpu.memory_space<smem>>
        %c1_222 = arith.constant 1 : index
        %301 = arith.index_cast %298 : i32 to index
        %302 = memref.load %arg2[%c1_222, %301] : memref<2x128xi32, #tpu.memory_space<smem>>
        %c0_i32_223 = arith.constant 0 : i32
        %c0_i32_224 = arith.constant 0 : i32
        %303 = tpu.memref_slice %arg3[%300, %1] : memref<128x128xf32, #tpu.memory_space<any>> -> memref<1x128xf32, #tpu.memory_space<any>>
        %304 = tpu.memref_squeeze %303 : memref<1x128xf32, #tpu.memory_space<any>> -> memref<128xf32, #tpu.memory_space<any>>
        %c0_i32_225 = arith.constant 0 : i32
        %305 = tpu.memref_slice %arg11[%294, %c0_i32_223, %c0_i32_225] : memref<2x8x128xf32, #tpu.memory_space<vmem>> -> memref<1x1x128xf32, #tpu.memory_space<vmem>>
        %306 = tpu.memref_squeeze %305 : memref<1x1x128xf32, #tpu.memory_space<vmem>> -> memref<128xf32, #tpu.memory_space<vmem>>
        %307 = tpu.memref_slice %arg13[%294, %c0_i32_224] : memref<2x8x!tpu.dma_semaphore, #tpu.memory_space<semaphore_mem>> -> memref<1x1x!tpu.dma_semaphore, #tpu.memory_space<semaphore_mem>>
        %308 = tpu.memref_squeeze %307 : memref<1x1x!tpu.dma_semaphore, #tpu.memory_space<semaphore_mem>> -> memref<!tpu.dma_semaphore, #tpu.memory_space<semaphore_mem>>
        tpu.enqueue_dma source(%304 : memref<128xf32, #tpu.memory_space<any>>) target(%306 : memref<128xf32, #tpu.memory_space<vmem>>) target_semaphore(%308 : memref<!tpu.dma_semaphore, #tpu.memory_space<semaphore_mem>>)
        %c0_i32_226 = arith.constant 0 : i32
        %c0_i32_227 = arith.constant 0 : i32
        %309 = tpu.memref_slice %arg3[%302, %1] : memref<128x128xf32, #tpu.memory_space<any>> -> memref<1x128xf32, #tpu.memory_space<any>>
        %310 = tpu.memref_squeeze %309 : memref<1x128xf32, #tpu.memory_space<any>> -> memref<128xf32, #tpu.memory_space<any>>
        %c0_i32_228 = arith.constant 0 : i32
        %311 = tpu.memref_slice %arg12[%294, %c0_i32_226, %c0_i32_228] : memref<2x8x128xf32, #tpu.memory_space<vmem>> -> memref<1x1x128xf32, #tpu.memory_space<vmem>>
        %312 = tpu.memref_squeeze %311 : memref<1x1x128xf32, #tpu.memory_space<vmem>> -> memref<128xf32, #tpu.memory_space<vmem>>
        %313 = tpu.memref_slice %arg14[%294, %c0_i32_227] : memref<2x8x!tpu.dma_semaphore, #tpu.memory_space<semaphore_mem>> -> memref<1x1x!tpu.dma_semaphore, #tpu.memory_space<semaphore_mem>>
        %314 = tpu.memref_squeeze %313 : memref<1x1x!tpu.dma_semaphore, #tpu.memory_space<semaphore_mem>> -> memref<!tpu.dma_semaphore, #tpu.memory_space<semaphore_mem>>
        tpu.enqueue_dma source(%310 : memref<128xf32, #tpu.memory_space<any>>) target(%312 : memref<128xf32, #tpu.memory_space<vmem>>) target_semaphore(%314 : memref<!tpu.dma_semaphore, #tpu.memory_space<semaphore_mem>>)
        %c128_i32_229 = arith.constant 128 : i32
        %315 = arith.muli %arg0, %c128_i32_229 : i32
        %c8_i32_230 = arith.constant 8 : i32
        %316 = arith.muli %293, %c8_i32_230 : i32
        %317 = arith.addi %315, %316 : i32
        %c1_i32_231 = arith.constant 1 : i32
        %318 = arith.addi %317, %c1_i32_231 : i32
        %c0_232 = arith.constant 0 : index
        %319 = arith.index_cast %318 : i32 to index
        %320 = memref.load %arg2[%c0_232, %319] : memref<2x128xi32, #tpu.memory_space<smem>>
        %c1_233 = arith.constant 1 : index
        %321 = arith.index_cast %318 : i32 to index
        %322 = memref.load %arg2[%c1_233, %321] : memref<2x128xi32, #tpu.memory_space<smem>>
        %c1_i32_234 = arith.constant 1 : i32
        %c1_i32_235 = arith.constant 1 : i32
        %323 = tpu.memref_slice %arg3[%320, %1] : memref<128x128xf32, #tpu.memory_space<any>> -> memref<1x128xf32, #tpu.memory_space<any>>
        %324 = tpu.memref_squeeze %323 : memref<1x128xf32, #tpu.memory_space<any>> -> memref<128xf32, #tpu.memory_space<any>>
        %c0_i32_236 = arith.constant 0 : i32
        %325 = tpu.memref_slice %arg11[%294, %c1_i32_234, %c0_i32_236] : memref<2x8x128xf32, #tpu.memory_space<vmem>> -> memref<1x1x128xf32, #tpu.memory_space<vmem>>
        %326 = tpu.memref_squeeze %325 : memref<1x1x128xf32, #tpu.memory_space<vmem>> -> memref<128xf32, #tpu.memory_space<vmem>>
        %327 = tpu.memref_slice %arg13[%294, %c1_i32_235] : memref<2x8x!tpu.dma_semaphore, #tpu.memory_space<semaphore_mem>> -> memref<1x1x!tpu.dma_semaphore, #tpu.memory_space<semaphore_mem>>
        %328 = tpu.memref_squeeze %327 : memref<1x1x!tpu.dma_semaphore, #tpu.memory_space<semaphore_mem>> -> memref<!tpu.dma_semaphore, #tpu.memory_space<semaphore_mem>>
        tpu.enqueue_dma source(%324 : memref<128xf32, #tpu.memory_space<any>>) target(%326 : memref<128xf32, #tpu.memory_space<vmem>>) target_semaphore(%328 : memref<!tpu.dma_semaphore, #tpu.memory_space<semaphore_mem>>)
        %c1_i32_237 = arith.constant 1 : i32
        %c1_i32_238 = arith.constant 1 : i32
        %329 = tpu.memref_slice %arg3[%322, %1] : memref<128x128xf32, #tpu.memory_space<any>> -> memref<1x128xf32, #tpu.memory_space<any>>
        %330 = tpu.memref_squeeze %329 : memref<1x128xf32, #tpu.memory_space<any>> -> memref<128xf32, #tpu.memory_space<any>>
        %c0_i32_239 = arith.constant 0 : i32
        %331 = tpu.memref_slice %arg12[%294, %c1_i32_237, %c0_i32_239] : memref<2x8x128xf32, #tpu.memory_space<vmem>> -> memref<1x1x128xf32, #tpu.memory_space<vmem>>
        %332 = tpu.memref_squeeze %331 : memref<1x1x128xf32, #tpu.memory_space<vmem>> -> memref<128xf32, #tpu.memory_space<vmem>>
        %333 = tpu.memref_slice %arg14[%294, %c1_i32_238] : memref<2x8x!tpu.dma_semaphore, #tpu.memory_space<semaphore_mem>> -> memref<1x1x!tpu.dma_semaphore, #tpu.memory_space<semaphore_mem>>
        %334 = tpu.memref_squeeze %333 : memref<1x1x!tpu.dma_semaphore, #tpu.memory_space<semaphore_mem>> -> memref<!tpu.dma_semaphore, #tpu.memory_space<semaphore_mem>>
        tpu.enqueue_dma source(%330 : memref<128xf32, #tpu.memory_space<any>>) target(%332 : memref<128xf32, #tpu.memory_space<vmem>>) target_semaphore(%334 : memref<!tpu.dma_semaphore, #tpu.memory_space<semaphore_mem>>)
        %c128_i32_240 = arith.constant 128 : i32
        %335 = arith.muli %arg0, %c128_i32_240 : i32
        %c8_i32_241 = arith.constant 8 : i32
        %336 = arith.muli %293, %c8_i32_241 : i32
        %337 = arith.addi %335, %336 : i32
        %c2_i32_242 = arith.constant 2 : i32
        %338 = arith.addi %337, %c2_i32_242 : i32
        %c0_243 = arith.constant 0 : index
        %339 = arith.index_cast %338 : i32 to index
        %340 = memref.load %arg2[%c0_243, %339] : memref<2x128xi32, #tpu.memory_space<smem>>
        %c1_244 = arith.constant 1 : index
        %341 = arith.index_cast %338 : i32 to index
        %342 = memref.load %arg2[%c1_244, %341] : memref<2x128xi32, #tpu.memory_space<smem>>
        %c2_i32_245 = arith.constant 2 : i32
        %c2_i32_246 = arith.constant 2 : i32
        %343 = tpu.memref_slice %arg3[%340, %1] : memref<128x128xf32, #tpu.memory_space<any>> -> memref<1x128xf32, #tpu.memory_space<any>>
        %344 = tpu.memref_squeeze %343 : memref<1x128xf32, #tpu.memory_space<any>> -> memref<128xf32, #tpu.memory_space<any>>
        %c0_i32_247 = arith.constant 0 : i32
        %345 = tpu.memref_slice %arg11[%294, %c2_i32_245, %c0_i32_247] : memref<2x8x128xf32, #tpu.memory_space<vmem>> -> memref<1x1x128xf32, #tpu.memory_space<vmem>>
        %346 = tpu.memref_squeeze %345 : memref<1x1x128xf32, #tpu.memory_space<vmem>> -> memref<128xf32, #tpu.memory_space<vmem>>
        %347 = tpu.memref_slice %arg13[%294, %c2_i32_246] : memref<2x8x!tpu.dma_semaphore, #tpu.memory_space<semaphore_mem>> -> memref<1x1x!tpu.dma_semaphore, #tpu.memory_space<semaphore_mem>>
        %348 = tpu.memref_squeeze %347 : memref<1x1x!tpu.dma_semaphore, #tpu.memory_space<semaphore_mem>> -> memref<!tpu.dma_semaphore, #tpu.memory_space<semaphore_mem>>
        tpu.enqueue_dma source(%344 : memref<128xf32, #tpu.memory_space<any>>) target(%346 : memref<128xf32, #tpu.memory_space<vmem>>) target_semaphore(%348 : memref<!tpu.dma_semaphore, #tpu.memory_space<semaphore_mem>>)
        %c2_i32_248 = arith.constant 2 : i32
        %c2_i32_249 = arith.constant 2 : i32
        %349 = tpu.memref_slice %arg3[%342, %1] : memref<128x128xf32, #tpu.memory_space<any>> -> memref<1x128xf32, #tpu.memory_space<any>>
        %350 = tpu.memref_squeeze %349 : memref<1x128xf32, #tpu.memory_space<any>> -> memref<128xf32, #tpu.memory_space<any>>
        %c0_i32_250 = arith.constant 0 : i32
        %351 = tpu.memref_slice %arg12[%294, %c2_i32_248, %c0_i32_250] : memref<2x8x128xf32, #tpu.memory_space<vmem>> -> memref<1x1x128xf32, #tpu.memory_space<vmem>>
        %352 = tpu.memref_squeeze %351 : memref<1x1x128xf32, #tpu.memory_space<vmem>> -> memref<128xf32, #tpu.memory_space<vmem>>
        %353 = tpu.memref_slice %arg14[%294, %c2_i32_249] : memref<2x8x!tpu.dma_semaphore, #tpu.memory_space<semaphore_mem>> -> memref<1x1x!tpu.dma_semaphore, #tpu.memory_space<semaphore_mem>>
        %354 = tpu.memref_squeeze %353 : memref<1x1x!tpu.dma_semaphore, #tpu.memory_space<semaphore_mem>> -> memref<!tpu.dma_semaphore, #tpu.memory_space<semaphore_mem>>
        tpu.enqueue_dma source(%350 : memref<128xf32, #tpu.memory_space<any>>) target(%352 : memref<128xf32, #tpu.memory_space<vmem>>) target_semaphore(%354 : memref<!tpu.dma_semaphore, #tpu.memory_space<semaphore_mem>>)
        %c128_i32_251 = arith.constant 128 : i32
        %355 = arith.muli %arg0, %c128_i32_251 : i32
        %c8_i32_252 = arith.constant 8 : i32
        %356 = arith.muli %293, %c8_i32_252 : i32
        %357 = arith.addi %355, %356 : i32
        %c3_i32_253 = arith.constant 3 : i32
        %358 = arith.addi %357, %c3_i32_253 : i32
        %c0_254 = arith.constant 0 : index
        %359 = arith.index_cast %358 : i32 to index
        %360 = memref.load %arg2[%c0_254, %359] : memref<2x128xi32, #tpu.memory_space<smem>>
        %c1_255 = arith.constant 1 : index
        %361 = arith.index_cast %358 : i32 to index
        %362 = memref.load %arg2[%c1_255, %361] : memref<2x128xi32, #tpu.memory_space<smem>>
        %c3_i32_256 = arith.constant 3 : i32
        %c3_i32_257 = arith.constant 3 : i32
        %363 = tpu.memref_slice %arg3[%360, %1] : memref<128x128xf32, #tpu.memory_space<any>> -> memref<1x128xf32, #tpu.memory_space<any>>
        %364 = tpu.memref_squeeze %363 : memref<1x128xf32, #tpu.memory_space<any>> -> memref<128xf32, #tpu.memory_space<any>>
        %c0_i32_258 = arith.constant 0 : i32
        %365 = tpu.memref_slice %arg11[%294, %c3_i32_256, %c0_i32_258] : memref<2x8x128xf32, #tpu.memory_space<vmem>> -> memref<1x1x128xf32, #tpu.memory_space<vmem>>
        %366 = tpu.memref_squeeze %365 : memref<1x1x128xf32, #tpu.memory_space<vmem>> -> memref<128xf32, #tpu.memory_space<vmem>>
        %367 = tpu.memref_slice %arg13[%294, %c3_i32_257] : memref<2x8x!tpu.dma_semaphore, #tpu.memory_space<semaphore_mem>> -> memref<1x1x!tpu.dma_semaphore, #tpu.memory_space<semaphore_mem>>
        %368 = tpu.memref_squeeze %367 : memref<1x1x!tpu.dma_semaphore, #tpu.memory_space<semaphore_mem>> -> memref<!tpu.dma_semaphore, #tpu.memory_space<semaphore_mem>>
        tpu.enqueue_dma source(%364 : memref<128xf32, #tpu.memory_space<any>>) target(%366 : memref<128xf32, #tpu.memory_space<vmem>>) target_semaphore(%368 : memref<!tpu.dma_semaphore, #tpu.memory_space<semaphore_mem>>)
        %c3_i32_259 = arith.constant 3 : i32
        %c3_i32_260 = arith.constant 3 : i32
        %369 = tpu.memref_slice %arg3[%362, %1] : memref<128x128xf32, #tpu.memory_space<any>> -> memref<1x128xf32, #tpu.memory_space<any>>
        %370 = tpu.memref_squeeze %369 : memref<1x128xf32, #tpu.memory_space<any>> -> memref<128xf32, #tpu.memory_space<any>>
        %c0_i32_261 = arith.constant 0 : i32
        %371 = tpu.memref_slice %arg12[%294, %c3_i32_259, %c0_i32_261] : memref<2x8x128xf32, #tpu.memory_space<vmem>> -> memref<1x1x128xf32, #tpu.memory_space<vmem>>
        %372 = tpu.memref_squeeze %371 : memref<1x1x128xf32, #tpu.memory_space<vmem>> -> memref<128xf32, #tpu.memory_space<vmem>>
        %373 = tpu.memref_slice %arg14[%294, %c3_i32_260] : memref<2x8x!tpu.dma_semaphore, #tpu.memory_space<semaphore_mem>> -> memref<1x1x!tpu.dma_semaphore, #tpu.memory_space<semaphore_mem>>
        %374 = tpu.memref_squeeze %373 : memref<1x1x!tpu.dma_semaphore, #tpu.memory_space<semaphore_mem>> -> memref<!tpu.dma_semaphore, #tpu.memory_space<semaphore_mem>>
        tpu.enqueue_dma source(%370 : memref<128xf32, #tpu.memory_space<any>>) target(%372 : memref<128xf32, #tpu.memory_space<vmem>>) target_semaphore(%374 : memref<!tpu.dma_semaphore, #tpu.memory_space<semaphore_mem>>)
        %c128_i32_262 = arith.constant 128 : i32
        %375 = arith.muli %arg0, %c128_i32_262 : i32
        %c8_i32_263 = arith.constant 8 : i32
        %376 = arith.muli %293, %c8_i32_263 : i32
        %377 = arith.addi %375, %376 : i32
        %c4_i32_264 = arith.constant 4 : i32
        %378 = arith.addi %377, %c4_i32_264 : i32
        %c0_265 = arith.constant 0 : index
        %379 = arith.index_cast %378 : i32 to index
        %380 = memref.load %arg2[%c0_265, %379] : memref<2x128xi32, #tpu.memory_space<smem>>
        %c1_266 = arith.constant 1 : index
        %381 = arith.index_cast %378 : i32 to index
        %382 = memref.load %arg2[%c1_266, %381] : memref<2x128xi32, #tpu.memory_space<smem>>
        %c4_i32_267 = arith.constant 4 : i32
        %c4_i32_268 = arith.constant 4 : i32
        %383 = tpu.memref_slice %arg3[%380, %1] : memref<128x128xf32, #tpu.memory_space<any>> -> memref<1x128xf32, #tpu.memory_space<any>>
        %384 = tpu.memref_squeeze %383 : memref<1x128xf32, #tpu.memory_space<any>> -> memref<128xf32, #tpu.memory_space<any>>
        %c0_i32_269 = arith.constant 0 : i32
        %385 = tpu.memref_slice %arg11[%294, %c4_i32_267, %c0_i32_269] : memref<2x8x128xf32, #tpu.memory_space<vmem>> -> memref<1x1x128xf32, #tpu.memory_space<vmem>>
        %386 = tpu.memref_squeeze %385 : memref<1x1x128xf32, #tpu.memory_space<vmem>> -> memref<128xf32, #tpu.memory_space<vmem>>
        %387 = tpu.memref_slice %arg13[%294, %c4_i32_268] : memref<2x8x!tpu.dma_semaphore, #tpu.memory_space<semaphore_mem>> -> memref<1x1x!tpu.dma_semaphore, #tpu.memory_space<semaphore_mem>>
        %388 = tpu.memref_squeeze %387 : memref<1x1x!tpu.dma_semaphore, #tpu.memory_space<semaphore_mem>> -> memref<!tpu.dma_semaphore, #tpu.memory_space<semaphore_mem>>
        tpu.enqueue_dma source(%384 : memref<128xf32, #tpu.memory_space<any>>) target(%386 : memref<128xf32, #tpu.memory_space<vmem>>) target_semaphore(%388 : memref<!tpu.dma_semaphore, #tpu.memory_space<semaphore_mem>>)
        %c4_i32_270 = arith.constant 4 : i32
        %c4_i32_271 = arith.constant 4 : i32
        %389 = tpu.memref_slice %arg3[%382, %1] : memref<128x128xf32, #tpu.memory_space<any>> -> memref<1x128xf32, #tpu.memory_space<any>>
        %390 = tpu.memref_squeeze %389 : memref<1x128xf32, #tpu.memory_space<any>> -> memref<128xf32, #tpu.memory_space<any>>
        %c0_i32_272 = arith.constant 0 : i32
        %391 = tpu.memref_slice %arg12[%294, %c4_i32_270, %c0_i32_272] : memref<2x8x128xf32, #tpu.memory_space<vmem>> -> memref<1x1x128xf32, #tpu.memory_space<vmem>>
        %392 = tpu.memref_squeeze %391 : memref<1x1x128xf32, #tpu.memory_space<vmem>> -> memref<128xf32, #tpu.memory_space<vmem>>
        %393 = tpu.memref_slice %arg14[%294, %c4_i32_271] : memref<2x8x!tpu.dma_semaphore, #tpu.memory_space<semaphore_mem>> -> memref<1x1x!tpu.dma_semaphore, #tpu.memory_space<semaphore_mem>>
        %394 = tpu.memref_squeeze %393 : memref<1x1x!tpu.dma_semaphore, #tpu.memory_space<semaphore_mem>> -> memref<!tpu.dma_semaphore, #tpu.memory_space<semaphore_mem>>
        tpu.enqueue_dma source(%390 : memref<128xf32, #tpu.memory_space<any>>) target(%392 : memref<128xf32, #tpu.memory_space<vmem>>) target_semaphore(%394 : memref<!tpu.dma_semaphore, #tpu.memory_space<semaphore_mem>>)
        %c128_i32_273 = arith.constant 128 : i32
        %395 = arith.muli %arg0, %c128_i32_273 : i32
        %c8_i32_274 = arith.constant 8 : i32
        %396 = arith.muli %293, %c8_i32_274 : i32
        %397 = arith.addi %395, %396 : i32
        %c5_i32_275 = arith.constant 5 : i32
        %398 = arith.addi %397, %c5_i32_275 : i32
        %c0_276 = arith.constant 0 : index
        %399 = arith.index_cast %398 : i32 to index
        %400 = memref.load %arg2[%c0_276, %399] : memref<2x128xi32, #tpu.memory_space<smem>>
        %c1_277 = arith.constant 1 : index
        %401 = arith.index_cast %398 : i32 to index
        %402 = memref.load %arg2[%c1_277, %401] : memref<2x128xi32, #tpu.memory_space<smem>>
        %c5_i32_278 = arith.constant 5 : i32
        %c5_i32_279 = arith.constant 5 : i32
        %403 = tpu.memref_slice %arg3[%400, %1] : memref<128x128xf32, #tpu.memory_space<any>> -> memref<1x128xf32, #tpu.memory_space<any>>
        %404 = tpu.memref_squeeze %403 : memref<1x128xf32, #tpu.memory_space<any>> -> memref<128xf32, #tpu.memory_space<any>>
        %c0_i32_280 = arith.constant 0 : i32
        %405 = tpu.memref_slice %arg11[%294, %c5_i32_278, %c0_i32_280] : memref<2x8x128xf32, #tpu.memory_space<vmem>> -> memref<1x1x128xf32, #tpu.memory_space<vmem>>
        %406 = tpu.memref_squeeze %405 : memref<1x1x128xf32, #tpu.memory_space<vmem>> -> memref<128xf32, #tpu.memory_space<vmem>>
        %407 = tpu.memref_slice %arg13[%294, %c5_i32_279] : memref<2x8x!tpu.dma_semaphore, #tpu.memory_space<semaphore_mem>> -> memref<1x1x!tpu.dma_semaphore, #tpu.memory_space<semaphore_mem>>
        %408 = tpu.memref_squeeze %407 : memref<1x1x!tpu.dma_semaphore, #tpu.memory_space<semaphore_mem>> -> memref<!tpu.dma_semaphore, #tpu.memory_space<semaphore_mem>>
        tpu.enqueue_dma source(%404 : memref<128xf32, #tpu.memory_space<any>>) target(%406 : memref<128xf32, #tpu.memory_space<vmem>>) target_semaphore(%408 : memref<!tpu.dma_semaphore, #tpu.memory_space<semaphore_mem>>)
        %c5_i32_281 = arith.constant 5 : i32
        %c5_i32_282 = arith.constant 5 : i32
        %409 = tpu.memref_slice %arg3[%402, %1] : memref<128x128xf32, #tpu.memory_space<any>> -> memref<1x128xf32, #tpu.memory_space<any>>
        %410 = tpu.memref_squeeze %409 : memref<1x128xf32, #tpu.memory_space<any>> -> memref<128xf32, #tpu.memory_space<any>>
        %c0_i32_283 = arith.constant 0 : i32
        %411 = tpu.memref_slice %arg12[%294, %c5_i32_281, %c0_i32_283] : memref<2x8x128xf32, #tpu.memory_space<vmem>> -> memref<1x1x128xf32, #tpu.memory_space<vmem>>
        %412 = tpu.memref_squeeze %411 : memref<1x1x128xf32, #tpu.memory_space<vmem>> -> memref<128xf32, #tpu.memory_space<vmem>>
        %413 = tpu.memref_slice %arg14[%294, %c5_i32_282] : memref<2x8x!tpu.dma_semaphore, #tpu.memory_space<semaphore_mem>> -> memref<1x1x!tpu.dma_semaphore, #tpu.memory_space<semaphore_mem>>
        %414 = tpu.memref_squeeze %413 : memref<1x1x!tpu.dma_semaphore, #tpu.memory_space<semaphore_mem>> -> memref<!tpu.dma_semaphore, #tpu.memory_space<semaphore_mem>>
        tpu.enqueue_dma source(%410 : memref<128xf32, #tpu.memory_space<any>>) target(%412 : memref<128xf32, #tpu.memory_space<vmem>>) target_semaphore(%414 : memref<!tpu.dma_semaphore, #tpu.memory_space<semaphore_mem>>)
        %c128_i32_284 = arith.constant 128 : i32
        %415 = arith.muli %arg0, %c128_i32_284 : i32
        %c8_i32_285 = arith.constant 8 : i32
        %416 = arith.muli %293, %c8_i32_285 : i32
        %417 = arith.addi %415, %416 : i32
        %c6_i32_286 = arith.constant 6 : i32
        %418 = arith.addi %417, %c6_i32_286 : i32
        %c0_287 = arith.constant 0 : index
        %419 = arith.index_cast %418 : i32 to index
        %420 = memref.load %arg2[%c0_287, %419] : memref<2x128xi32, #tpu.memory_space<smem>>
        %c1_288 = arith.constant 1 : index
        %421 = arith.index_cast %418 : i32 to index
        %422 = memref.load %arg2[%c1_288, %421] : memref<2x128xi32, #tpu.memory_space<smem>>
        %c6_i32_289 = arith.constant 6 : i32
        %c6_i32_290 = arith.constant 6 : i32
        %423 = tpu.memref_slice %arg3[%420, %1] : memref<128x128xf32, #tpu.memory_space<any>> -> memref<1x128xf32, #tpu.memory_space<any>>
        %424 = tpu.memref_squeeze %423 : memref<1x128xf32, #tpu.memory_space<any>> -> memref<128xf32, #tpu.memory_space<any>>
        %c0_i32_291 = arith.constant 0 : i32
        %425 = tpu.memref_slice %arg11[%294, %c6_i32_289, %c0_i32_291] : memref<2x8x128xf32, #tpu.memory_space<vmem>> -> memref<1x1x128xf32, #tpu.memory_space<vmem>>
        %426 = tpu.memref_squeeze %425 : memref<1x1x128xf32, #tpu.memory_space<vmem>> -> memref<128xf32, #tpu.memory_space<vmem>>
        %427 = tpu.memref_slice %arg13[%294, %c6_i32_290] : memref<2x8x!tpu.dma_semaphore, #tpu.memory_space<semaphore_mem>> -> memref<1x1x!tpu.dma_semaphore, #tpu.memory_space<semaphore_mem>>
        %428 = tpu.memref_squeeze %427 : memref<1x1x!tpu.dma_semaphore, #tpu.memory_space<semaphore_mem>> -> memref<!tpu.dma_semaphore, #tpu.memory_space<semaphore_mem>>
        tpu.enqueue_dma source(%424 : memref<128xf32, #tpu.memory_space<any>>) target(%426 : memref<128xf32, #tpu.memory_space<vmem>>) target_semaphore(%428 : memref<!tpu.dma_semaphore, #tpu.memory_space<semaphore_mem>>)
        %c6_i32_292 = arith.constant 6 : i32
        %c6_i32_293 = arith.constant 6 : i32
        %429 = tpu.memref_slice %arg3[%422, %1] : memref<128x128xf32, #tpu.memory_space<any>> -> memref<1x128xf32, #tpu.memory_space<any>>
        %430 = tpu.memref_squeeze %429 : memref<1x128xf32, #tpu.memory_space<any>> -> memref<128xf32, #tpu.memory_space<any>>
        %c0_i32_294 = arith.constant 0 : i32
        %431 = tpu.memref_slice %arg12[%294, %c6_i32_292, %c0_i32_294] : memref<2x8x128xf32, #tpu.memory_space<vmem>> -> memref<1x1x128xf32, #tpu.memory_space<vmem>>
        %432 = tpu.memref_squeeze %431 : memref<1x1x128xf32, #tpu.memory_space<vmem>> -> memref<128xf32, #tpu.memory_space<vmem>>
        %433 = tpu.memref_slice %arg14[%294, %c6_i32_293] : memref<2x8x!tpu.dma_semaphore, #tpu.memory_space<semaphore_mem>> -> memref<1x1x!tpu.dma_semaphore, #tpu.memory_space<semaphore_mem>>
        %434 = tpu.memref_squeeze %433 : memref<1x1x!tpu.dma_semaphore, #tpu.memory_space<semaphore_mem>> -> memref<!tpu.dma_semaphore, #tpu.memory_space<semaphore_mem>>
        tpu.enqueue_dma source(%430 : memref<128xf32, #tpu.memory_space<any>>) target(%432 : memref<128xf32, #tpu.memory_space<vmem>>) target_semaphore(%434 : memref<!tpu.dma_semaphore, #tpu.memory_space<semaphore_mem>>)
        %c128_i32_295 = arith.constant 128 : i32
        %435 = arith.muli %arg0, %c128_i32_295 : i32
        %c8_i32_296 = arith.constant 8 : i32
        %436 = arith.muli %293, %c8_i32_296 : i32
        %437 = arith.addi %435, %436 : i32
        %c7_i32_297 = arith.constant 7 : i32
        %438 = arith.addi %437, %c7_i32_297 : i32
        %c0_298 = arith.constant 0 : index
        %439 = arith.index_cast %438 : i32 to index
        %440 = memref.load %arg2[%c0_298, %439] : memref<2x128xi32, #tpu.memory_space<smem>>
        %c1_299 = arith.constant 1 : index
        %441 = arith.index_cast %438 : i32 to index
        %442 = memref.load %arg2[%c1_299, %441] : memref<2x128xi32, #tpu.memory_space<smem>>
        %c7_i32_300 = arith.constant 7 : i32
        %c7_i32_301 = arith.constant 7 : i32
        %443 = tpu.memref_slice %arg3[%440, %1] : memref<128x128xf32, #tpu.memory_space<any>> -> memref<1x128xf32, #tpu.memory_space<any>>
        %444 = tpu.memref_squeeze %443 : memref<1x128xf32, #tpu.memory_space<any>> -> memref<128xf32, #tpu.memory_space<any>>
        %c0_i32_302 = arith.constant 0 : i32
        %445 = tpu.memref_slice %arg11[%294, %c7_i32_300, %c0_i32_302] : memref<2x8x128xf32, #tpu.memory_space<vmem>> -> memref<1x1x128xf32, #tpu.memory_space<vmem>>
        %446 = tpu.memref_squeeze %445 : memref<1x1x128xf32, #tpu.memory_space<vmem>> -> memref<128xf32, #tpu.memory_space<vmem>>
        %447 = tpu.memref_slice %arg13[%294, %c7_i32_301] : memref<2x8x!tpu.dma_semaphore, #tpu.memory_space<semaphore_mem>> -> memref<1x1x!tpu.dma_semaphore, #tpu.memory_space<semaphore_mem>>
        %448 = tpu.memref_squeeze %447 : memref<1x1x!tpu.dma_semaphore, #tpu.memory_space<semaphore_mem>> -> memref<!tpu.dma_semaphore, #tpu.memory_space<semaphore_mem>>
        tpu.enqueue_dma source(%444 : memref<128xf32, #tpu.memory_space<any>>) target(%446 : memref<128xf32, #tpu.memory_space<vmem>>) target_semaphore(%448 : memref<!tpu.dma_semaphore, #tpu.memory_space<semaphore_mem>>)
        %c7_i32_303 = arith.constant 7 : i32
        %c7_i32_304 = arith.constant 7 : i32
        %449 = tpu.memref_slice %arg3[%442, %1] : memref<128x128xf32, #tpu.memory_space<any>> -> memref<1x128xf32, #tpu.memory_space<any>>
        %450 = tpu.memref_squeeze %449 : memref<1x128xf32, #tpu.memory_space<any>> -> memref<128xf32, #tpu.memory_space<any>>
        %c0_i32_305 = arith.constant 0 : i32
        %451 = tpu.memref_slice %arg12[%294, %c7_i32_303, %c0_i32_305] : memref<2x8x128xf32, #tpu.memory_space<vmem>> -> memref<1x1x128xf32, #tpu.memory_space<vmem>>
        %452 = tpu.memref_squeeze %451 : memref<1x1x128xf32, #tpu.memory_space<vmem>> -> memref<128xf32, #tpu.memory_space<vmem>>
        %453 = tpu.memref_slice %arg14[%294, %c7_i32_304] : memref<2x8x!tpu.dma_semaphore, #tpu.memory_space<semaphore_mem>> -> memref<1x1x!tpu.dma_semaphore, #tpu.memory_space<semaphore_mem>>
        %454 = tpu.memref_squeeze %453 : memref<1x1x!tpu.dma_semaphore, #tpu.memory_space<semaphore_mem>> -> memref<!tpu.dma_semaphore, #tpu.memory_space<semaphore_mem>>
        tpu.enqueue_dma source(%450 : memref<128xf32, #tpu.memory_space<any>>) target(%452 : memref<128xf32, #tpu.memory_space<vmem>>) target_semaphore(%454 : memref<!tpu.dma_semaphore, #tpu.memory_space<semaphore_mem>>)
      } else {
      }
      %276 = arith.index_cast %175 : i32 to index
      %c0_210 = arith.constant 0 : index
      %c0_211 = arith.constant 0 : index
      %277 = vector.load %arg11[%276, %c0_210, %c0_211] : memref<2x8x128xf32, #tpu.memory_space<vmem>>, vector<1x8x128xf32>
      %278 = vector.shape_cast %277 : vector<1x8x128xf32> to vector<8x128xf32>
      %279 = arith.index_cast %175 : i32 to index
      %c0_212 = arith.constant 0 : index
      %c0_213 = arith.constant 0 : index
      %280 = vector.load %arg12[%279, %c0_212, %c0_213] : memref<2x8x128xf32, #tpu.memory_space<vmem>>, vector<1x8x128xf32>
      %281 = vector.shape_cast %280 : vector<1x8x128xf32> to vector<8x128xf32>
      %282 = arith.mulf %278, %281 : vector<8x128xf32>
      %283 = arith.mulf %282, %159 : vector<8x128xf32>
      %cst = arith.constant dense<0.000000e+00> : vector<8xf32>
      %284 = vector.multi_reduction <add>, %283, %cst [1] : vector<8x128xf32> to vector<8xf32>
      %285 = vector.shape_cast %284 : vector<8xf32> to vector<8x1xf32>
      %c8_i32 = arith.constant 8 : i32
      %286 = arith.muli %165, %c8_i32 : i32
      %287 = tpu.assume_multiple %286, 8 : i32
      %288 = arith.index_cast %287 : i32 to index
      %c0_214 = arith.constant 0 : index
      %289 = vector.load %arg15[%288, %c0_214] : memref<128x1xf32, #tpu.memory_space<vmem>>, vector<8x1xf32>
      %290 = arith.addf %289, %285 : vector<8x1xf32>
      %291 = arith.index_cast %287 : i32 to index
      %c0_215 = arith.constant 0 : index
      %292 = vector.load %arg15[%291, %c0_215] : memref<128x1xf32, #tpu.memory_space<vmem>>, vector<8x1xf32>
      tpu.vector_store %arg15[%291, %c0_215], %290 {strides = array<i32>} : memref<128x1xf32, #tpu.memory_space<vmem>>, vector<8x1xf32>,
    }
    %c16_i32_116 = arith.constant 16 : i32
    %c0_i32_117 = arith.constant 0 : i32
    %161 = arith.cmpi eq, %arg1, %c0_i32_117 : i32
    %162 = arith.extui %161 : i1 to i32
    %c0_i32_118 = arith.constant 0 : i32
    %163 = arith.cmpi ne, %162, %c0_i32_118 : i32
    scf.if %163 {
      %c0_119 = arith.constant 0 : index
      %c0_120 = arith.constant 0 : index
      %164 = vector.load %arg15[%c0_119, %c0_120] : memref<128x1xf32, #tpu.memory_space<vmem>>, vector<128x1xf32>
      %c0_121 = arith.constant 0 : index
      %c0_122 = arith.constant 0 : index
      %165 = vector.load %arg5[%c0_121, %c0_122] : memref<1x128xf32, #tpu.memory_space<vmem>>, vector<1x128xf32>
      %166 = vector.broadcast %164 : vector<128x1xf32> to vector<128x128xf32>
      %167 = vector.broadcast %165 : vector<1x128xf32> to vector<128x128xf32>
      %168 = arith.mulf %166, %167 : vector<128x128xf32>
      %c0_123 = arith.constant 0 : index
      %c0_124 = arith.constant 0 : index
      %169 = vector.load %arg6[%c0_123, %c0_124] : memref<1x128xf32, #tpu.memory_space<vmem>>, vector<1x128xf32>
      %170 = vector.broadcast %169 : vector<1x128xf32> to vector<128x128xf32>
      %171 = arith.addf %168, %170 : vector<128x128xf32>
      %cst = arith.constant 0.000000e+00 : f32
      %172 = vector.broadcast %cst : f32 to vector<128x128xf32>
      %173 = arith.maximumf %171, %172 : vector<128x128xf32>
      %c0_125 = arith.constant 0 : index
      %c0_126 = arith.constant 0 : index
      %174 = vector.load %arg7[%c0_125, %c0_126] : memref<1x128xf32, #tpu.memory_space<vmem>>, vector<1x128xf32>
      %175 = vector.broadcast %174 : vector<1x128xf32> to vector<128x128xf32>
      %176 = arith.mulf %173, %175 : vector<128x128xf32>
      %cst_127 = arith.constant dense<0.000000e+00> : vector<128xf32>
      %177 = vector.multi_reduction <add>, %176, %cst_127 [1] : vector<128x128xf32> to vector<128xf32>
      %178 = vector.shape_cast %177 : vector<128xf32> to vector<128x1xf32>
      %c0_128 = arith.constant 0 : index
      %179 = memref.load %arg8[%c0_128] : memref<1xf32, #tpu.memory_space<smem>>
      %180 = vector.broadcast %179 : f32 to vector<128x1xf32>
      %181 = arith.addf %178, %180 : vector<128x1xf32>
      %c0_129 = arith.constant 0 : index
      %c0_130 = arith.constant 0 : index
      %182 = vector.load %arg9[%c0_129, %c0_130] : memref<128x1xf32, #tpu.memory_space<vmem>>, vector<128x1xf32>
      tpu.vector_store %arg9[%c0_129, %c0_130], %181 {strides = array<i32>} : memref<128x1xf32, #tpu.memory_space<vmem>>, vector<128x1xf32>,
      %183 = arith.negf %181 : vector<128x1xf32>
      %184 = math.exp %183 : vector<128x1xf32>
      %cst_131 = arith.constant 1.000000e+00 : f32
      %185 = vector.broadcast %cst_131 : f32 to vector<128x1xf32>
      %186 = arith.addf %185, %184 : vector<128x1xf32>
      %187 = arith.divf %185, %186 : vector<128x1xf32>
      %c0_132 = arith.constant 0 : index
      %c0_133 = arith.constant 0 : index
      %188 = vector.load %arg10[%c0_132, %c0_133] : memref<128x1xf32, #tpu.memory_space<vmem>>, vector<128x1xf32>
      tpu.vector_store %arg10[%c0_132, %c0_133], %187 {strides = array<i32>} : memref<128x1xf32, #tpu.memory_space<vmem>>, vector<128x1xf32>,
    } else {
    }
    return
  }
  func.func @transform_1(%arg0: i32, %arg1: i32, %arg2: memref<2x128xi32, #tpu.memory_space<smem>>) -> (i32, i32) {
    %c0_i32 = arith.constant 0 : i32
    %c0_i32_0 = arith.constant 0 : i32
    return %c0_i32, %arg1 : i32, i32
  }
  func.func @transform_2(%arg0: i32, %arg1: i32, %arg2: memref<2x128xi32, #tpu.memory_space<smem>>) -> (i32, i32) {
    %c0_i32 = arith.constant 0 : i32
    %c0_i32_0 = arith.constant 0 : i32
    %c0_i32_1 = arith.constant 0 : i32
    return %c0_i32, %c0_i32_0 : i32, i32
  }
  func.func @transform_3(%arg0: i32, %arg1: i32, %arg2: memref<2x128xi32, #tpu.memory_space<smem>>) -> (i32, i32) {
    %c0_i32 = arith.constant 0 : i32
    %c0_i32_0 = arith.constant 0 : i32
    %c0_i32_1 = arith.constant 0 : i32
    return %c0_i32, %c0_i32_0 : i32, i32
  }
  func.func @transform_4(%arg0: i32, %arg1: i32, %arg2: memref<2x128xi32, #tpu.memory_space<smem>>) -> (i32, i32) {
    %c0_i32 = arith.constant 0 : i32
    %c0_i32_0 = arith.constant 0 : i32
    %c0_i32_1 = arith.constant 0 : i32
    return %c0_i32, %c0_i32_0 : i32, i32
  }
  func.func @transform_5(%arg0: i32, %arg1: i32, %arg2: memref<2x128xi32, #tpu.memory_space<smem>>) -> i32 {
    %c0_i32 = arith.constant 0 : i32
    %c0_i32_0 = arith.constant 0 : i32
    return %c0_i32 : i32
  }
  func.func @transform_6(%arg0: i32, %arg1: i32, %arg2: memref<2x128xi32, #tpu.memory_space<smem>>) -> (i32, i32) {
    %c0_i32 = arith.constant 0 : i32
    %c0_i32_0 = arith.constant 0 : i32
    return %arg0, %c0_i32 : i32, i32
  }
  func.func @transform_7(%arg0: i32, %arg1: i32, %arg2: memref<2x128xi32, #tpu.memory_space<smem>>) -> (i32, i32) {
    %c0_i32 = arith.constant 0 : i32
    %c0_i32_0 = arith.constant 0 : i32
    return %arg0, %c0_i32 : i32, i32
  }
}

</mosaic_0001>

<bundles_post_ra>
// kernel: neognn_forward.6
= control target key start
LH: loop header
LB: loop body
LE: loop exit
PB: predicated region body
PF: predicated region fallthrough
CT: control target
= control target key end

     0   :  { %s954_s1 = inlined_call_operand.vmem [shape: bf16[128,128], index: 1, kind: input, shape index: {}]   ;;  %s955_s0 = inlined_call_operand.vmem [shape: bf16[128,128], index: 0, kind: input, shape index: {}]   ;;  %s956_s2 = inlined_call_operand.vmem [shape: bf16[128,128], index: 2, kind: input, shape index: {}]   ;;  %s957_s3 = inlined_call_operand.vmem [shape: f32[1,128], index: 3, kind: input, shape index: {}]   ;;  %s958_s4 = inlined_call_operand.vmem [shape: bf16[128,128], index: 4, kind: output, shape index: {}]  }
   0x1   :  { %v806_v0 = vld [vmem:[%s954_s1] sm:$0xff]   ;;  %v807_v1 = vld [vmem:[%s954_s1 + $0x8] sm:$0xff]   ;;  %v808_v2 = vld [vmem:[%s954_s1 + $0x10] sm:$0xff]  }
   0x2   :  { %742 = vmatprep.subr.bf16.mxu0 %v806_v0  ;;  %v809_v3 = vld [vmem:[%s954_s1 + $0x18] sm:$0xff]   ;;  %v814_v4 = vld [vmem:[%s955_s0] sm:$0xff]   ;;  %v811_v6 = vld [vmem:[%s954_s1 + $0x28] sm:$0xff]  }
   0x3   :  { %743 = vmatpush3.bf16.msra.mxu0 %v806_v0  ;;  %758 = vmatprep.mubr.bf16.mxu0 %v814_v4  ;;  %v810_v5 = vld [vmem:[%s954_s1 + $0x20] sm:$0xff]   ;;  %v823_v8 = vld [vmem:[%s956_s2 + $0x8] sm:$0xff]   ;;  %v812_v9 = vld [vmem:[%s954_s1 + $0x30] sm:$0xff]  }
   0x4   :  { %744 = vmatprep.subr.bf16.mxu0 %v807_v1  ;;  %v822_v7 = vld [vmem:[%s956_s2] sm:$0xff]   ;;  %v824_v10 = vld [vmem:[%s956_s2 + $0x10] sm:$0xff]   ;;  %v813_v11 = vld [vmem:[%s954_s1 + $0x38] sm:$0xff]  }
   0x5   :  { %774 = vmatprep.subr.bf16.mxu1 %v822_v7  ;;  %v825_v12 = vld [vmem:[%s956_s2 + $0x18] sm:$0xff]   ;;  %v826_v13 = vld [vmem:[%s956_s2 + $0x20] sm:$0xff]   ;;  %v815_v14 = vld [vmem:[%s955_s0 + $0x8] sm:$0xff]  }
   0x6   :  { %775 = vmatpush3.bf16.msra.mxu1 %v822_v7  ;;  %v816_v15 = vld [vmem:[%s955_s0 + $0x10] sm:$0xff]   ;;  %v827_v16 = vld [vmem:[%s956_s2 + $0x28] sm:$0xff]   ;;  %v817_v18 = vld [vmem:[%s955_s0 + $0x18] sm:$0xff]  }
   0x7   :  { %745 = vmatpush3.bf16.msra.mxu0 %v807_v1  ;;  %776 = vmatprep.subr.bf16.mxu1 %v823_v8  ;;  %v828_v17 = vld [vmem:[%s956_s2 + $0x30] sm:$0xff]   ;;  %v818_v19 = vld [vmem:[%s955_s0 + $0x20] sm:$0xff]   ;;  %v819_v20 = vld [vmem:[%s955_s0 + $0x28] sm:$0xff]  }
   0x8   :  { %746 = vmatprep.subr.bf16.mxu0 %v808_v2  ;;  %v820_v21 = vld [vmem:[%s955_s0 + $0x30] sm:$0xff]   ;;  %v821_v22 = vld [vmem:[%s955_s0 + $0x38] sm:$0xff]   ;;  %v622_v48 = vld [vmem:[%s957_s3] ss:$0 sm:$0xff] }
   0x9   :  { %v829_v23 = vld [vmem:[%s956_s2 + $0x38] sm:$0xff]  }
   0xa   :  { %777 = vmatpush3.bf16.msra.mxu1 %v823_v8 }
   0xb   :  { %747 = vmatpush3.bf16.msra.mxu0 %v808_v2  ;;  %778 = vmatprep.subr.bf16.mxu1 %v824_v10 }
   0xc   :  { %748 = vmatprep.subr.bf16.mxu0 %v809_v3 }
   0xe   :  { %779 = vmatpush3.bf16.msra.mxu1 %v824_v10 }
   0xf   :  { %749 = vmatpush3.bf16.msra.mxu0 %v809_v3  ;;  %780 = vmatprep.subr.bf16.mxu1 %v825_v12 }
  0x10   :  { %750 = vmatprep.subr.bf16.mxu0 %v810_v5 }
  0x12   :  { %781 = vmatpush3.bf16.msra.mxu1 %v825_v12 }
  0x13   :  { %751 = vmatpush3.bf16.msra.mxu0 %v810_v5  ;;  %782 = vmatprep.subr.bf16.mxu1 %v826_v13 }
  0x14   :  { %752 = vmatprep.subr.bf16.mxu0 %v811_v6 }
  0x16   :  { %783 = vmatpush3.bf16.msra.mxu1 %v826_v13 }
  0x17   :  { %753 = vmatpush3.bf16.msra.mxu0 %v811_v6  ;;  %784 = vmatprep.subr.bf16.mxu1 %v827_v16 }
  0x18   :  { %754 = vmatprep.subr.bf16.mxu0 %v812_v9 }
  0x1a   :  { %785 = vmatpush3.bf16.msra.mxu1 %v827_v16 }
  0x1b   :  { %755 = vmatpush3.bf16.msra.mxu0 %v812_v9  ;;  %786 = vmatprep.subr.bf16.mxu1 %v828_v17 }
  0x1c   :  { %756 = vmatprep.subr.bf16.mxu0 %v813_v11 }
  0x1e   :  { %787 = vmatpush3.bf16.msra.mxu1 %v828_v17 }
  0x1f   :  { %757 = vmatpush3.bf16.msra.mxu0 %v813_v11  ;;  %788 = vmatprep.subr.bf16.mxu1 %v829_v23 }
  0x22   :  { %759 = vmatmul.mubr.bf16.vlgmr.msra.gmra.mrb[0].mxu0 %v815_v14  ;;  %789 = vmatpush3.bf16.msra.mxu1 %v829_v23 }
  0x23   :  { %762 = vmatprep.mubr.bf16.mxu0 %v816_v15 }
  0x2a   :  { %763 = vmatmul.mubr.bf16.gmra.mrb[4].mxu0 %v817_v18 }
  0x2b   :  { %766 = vmatprep.mubr.bf16.mxu0 %v818_v19 }
  0x32   :  { %767 = vmatmul.mubr.bf16.gmra.mrb[8].mxu0 %v819_v20 }
  0x33   :  { %770 = vmatprep.mubr.bf16.mxu0 %v820_v21 }
  0x3a   :  { %771 = vmatmul.mubr.bf16.gmra.mrb[12].mxu0 %v821_v22 }
  0xf5   :  { %v760_v24 = vpop.f32.mrb[0].mxu0 }
  0xf6   :  { %v216_v25 = vpop.f32.mrb[1].mxu0 }
  0xf7   :  { %v761_v26 = vpop.f32.mrb[2].mxu0 }
  0xf8   :  { %v331_v27 = vpack.c.bf16 %v761_v26, %v760_v24  ;;  %v219_v28 = vpop.f32.mrb[3].mxu0 }
  0xf9   :  { %v330_v29 = vpack.c.bf16 %v219_v28, %v216_v25 }
  0xfb   :  { %790 = vmatprep.mubr.bf16.mxu1 %v330_v29 }
  0xfc   :  { %791 = vmatmul.mubr.bf16.vlgmr.msra.gmra.mrb[0].mxu1 %v331_v27 }
  0xfd   :  { %v764_v30 = vpop.f32.mrb[4].mxu0 }
  0xfe   :  { %v232_v31 = vpop.f32.mrb[5].mxu0 }
  0xff   :  { %v765_v32 = vpop.f32.mrb[6].mxu0 }
 0x100   :  { %v333_v33 = vpack.c.bf16 %v765_v32, %v764_v30  ;;  %v235_v34 = vpop.f32.mrb[7].mxu0 }
 0x101   :  { %v332_v35 = vpack.c.bf16 %v235_v34, %v232_v31 }
 0x103   :  { %794 = vmatprep.mubr.bf16.mxu1 %v332_v35 }
 0x104   :  { %795 = vmatmul.mubr.bf16.gmra.mrb[4].mxu1 %v333_v33 }
 0x105   :  { %v768_v36 = vpop.f32.mrb[8].mxu0 }
 0x106   :  { %v248_v37 = vpop.f32.mrb[9].mxu0 }
 0x107   :  { %v769_v38 = vpop.f32.mrb[10].mxu0 }
 0x108   :  { %v335_v39 = vpack.c.bf16 %v769_v38, %v768_v36  ;;  %v251_v40 = vpop.f32.mrb[11].mxu0 }
 0x109   :  { %v334_v41 = vpack.c.bf16 %v251_v40, %v248_v37 }
 0x10b   :  { %798 = vmatprep.mubr.bf16.mxu1 %v334_v41 }
 0x10c   :  { %799 = vmatmul.mubr.bf16.gmra.mrb[8].mxu1 %v335_v39 }
 0x10d   :  { %v772_v42 = vpop.f32.mrb[12].mxu0 }
 0x10e   :  { %v264_v43 = vpop.f32.mrb[13].mxu0 }
 0x10f   :  { %v773_v44 = vpop.f32.mrb[14].mxu0 }
 0x110   :  { %v337_v45 = vpack.c.bf16 %v773_v44, %v772_v42  ;;  %v267_v46 = vpop.f32.mrb[15].mxu0 }
 0x111   :  { %v336_v47 = vpack.c.bf16 %v267_v46, %v264_v43 }
 0x113   :  { %802 = vmatprep.mubr.bf16.mxu1 %v336_v47 }
 0x114   :  { %803 = vmatmul.mubr.bf16.gmra.mrb[12].mxu1 %v337_v45 }
 0x1cf   :  { %v792_v49 = vpop.f32.mrb[0].mxu1 }
 0x1d0   :  { %v452_v50 = vadd.f32 %v792_v49, %v622_v48  ;;  %v443_v51 = vpop.f32.mrb[1].mxu1 }
 0x1d1   :  { %v444_v52 = vadd.f32 %v622_v48, %v443_v51  ;;  %v793_v53 = vpop.f32.mrb[2].mxu1 }
 0x1d2   :  { %v455_v54 = vadd.f32 %v793_v53, %v622_v48  ;;  %v446_v55 = vpop.f32.mrb[3].mxu1  ;;  %v508_v57 = vmax.f32 %v452_v50, 0.0 }
 0x1d3   :  { %v447_v56 = vadd.f32 %v622_v48, %v446_v55  ;;  %v506_v59 = vmax.f32 %v444_v52, 0.0 }
 0x1d4   :  { %v509_v58 = vmax.f32 %v455_v54, 0.0 }
 0x1d5   :  { %v507_v60 = vmax.f32 %v447_v56, 0.0 }
 0x1d6   :  { %v671_v61 = vpack.c.bf16 %v509_v58, %v508_v57 }
 0x1d7   :  { %v666_v62 = vpack.c.bf16 %v507_v60, %v506_v59  ;;  %v796_v63 = vpop.f32.mrb[4].mxu1 }
 0x1d8   :  { %703 = vst [vmem:[%s958_s4 + $0x8] sm:$0xff] %v671_v61   ;;  %v468_v0 = vadd.f32 %v796_v63, %v622_v48  ;;  %v459_v1 = vpop.f32.mrb[5].mxu1 }
 0x1d9   :  { %667 = vst [vmem:[%s958_s4] sm:$0xff] %v666_v62   ;;  %v460_v2 = vadd.f32 %v622_v48, %v459_v1  ;;  %v797_v3 = vpop.f32.mrb[6].mxu1 }
 0x1da   :  { %v471_v4 = vadd.f32 %v797_v3, %v622_v48  ;;  %v462_v5 = vpop.f32.mrb[7].mxu1  ;;  %v512_v7 = vmax.f32 %v468_v0, 0.0 }
 0x1db   :  { %v463_v6 = vadd.f32 %v622_v48, %v462_v5  ;;  %v510_v9 = vmax.f32 %v460_v2, 0.0 }
 0x1dc   :  { %v513_v8 = vmax.f32 %v471_v4, 0.0 }
 0x1dd   :  { %v511_v10 = vmax.f32 %v463_v6, 0.0 }
 0x1de   :  { %v681_v11 = vpack.c.bf16 %v513_v8, %v512_v7 }
 0x1df   :  { %v676_v12 = vpack.c.bf16 %v511_v10, %v510_v9  ;;  %v800_v13 = vpop.f32.mrb[8].mxu1 }
 0x1e0   :  { %705 = vst [vmem:[%s958_s4 + $0x18] sm:$0xff] %v681_v11   ;;  %v484_v14 = vadd.f32 %v800_v13, %v622_v48  ;;  %v475_v15 = vpop.f32.mrb[9].mxu1 }
 0x1e1   :  { %704 = vst [vmem:[%s958_s4 + $0x10] sm:$0xff] %v676_v12   ;;  %v476_v16 = vadd.f32 %v622_v48, %v475_v15  ;;  %v801_v17 = vpop.f32.mrb[10].mxu1 }
 0x1e2   :  { %v487_v18 = vadd.f32 %v801_v17, %v622_v48  ;;  %v478_v19 = vpop.f32.mrb[11].mxu1  ;;  %v516_v21 = vmax.f32 %v484_v14, 0.0 }
 0x1e3   :  { %v479_v20 = vadd.f32 %v622_v48, %v478_v19  ;;  %v514_v23 = vmax.f32 %v476_v16, 0.0 }
 0x1e4   :  { %v517_v22 = vmax.f32 %v487_v18, 0.0 }
 0x1e5   :  { %v515_v24 = vmax.f32 %v479_v20, 0.0 }
 0x1e6   :  { %v691_v25 = vpack.c.bf16 %v517_v22, %v516_v21 }
 0x1e7   :  { %v686_v26 = vpack.c.bf16 %v515_v24, %v514_v23  ;;  %v804_v27 = vpop.f32.mrb[12].mxu1 }
 0x1e8   :  { %707 = vst [vmem:[%s958_s4 + $0x28] sm:$0xff] %v691_v25   ;;  %v500_v28 = vadd.f32 %v804_v27, %v622_v48  ;;  %v491_v29 = vpop.f32.mrb[13].mxu1 }
 0x1e9   :  { %706 = vst [vmem:[%s958_s4 + $0x20] sm:$0xff] %v686_v26   ;;  %v492_v30 = vadd.f32 %v622_v48, %v491_v29  ;;  %v805_v31 = vpop.f32.mrb[14].mxu1 }
 0x1ea   :  { %v503_v32 = vadd.f32 %v805_v31, %v622_v48  ;;  %v494_v33 = vpop.f32.mrb[15].mxu1  ;;  %v520_v35 = vmax.f32 %v500_v28, 0.0 }
 0x1eb   :  { %v495_v34 = vadd.f32 %v622_v48, %v494_v33  ;;  %v518_v37 = vmax.f32 %v492_v30, 0.0 }
 0x1ec   :  { %v521_v36 = vmax.f32 %v503_v32, 0.0 }
 0x1ed   :  { %v519_v38 = vmax.f32 %v495_v34, 0.0 }
 0x1ee   :  { %v701_v39 = vpack.c.bf16 %v521_v36, %v520_v35 }
 0x1ef   :  { %v696_v40 = vpack.c.bf16 %v519_v38, %v518_v37 }
 0x1f0   :  { %709 = vst [vmem:[%s958_s4 + $0x38] sm:$0xff] %v701_v39  }
 0x1f1   :  { %708 = vst [vmem:[%s958_s4 + $0x30] sm:$0xff] %v696_v40  }

// kernel: neognn_forward.8
= control target key start
LH: loop header
LB: loop body
LE: loop exit
PB: predicated region body
PF: predicated region fallthrough
CT: control target
= control target key end

     0   :  { %s819_s1 = inlined_call_operand.vmem [shape: bf16[128,128], index: 1, kind: input, shape index: {}]   ;;  %s820_s0 = inlined_call_operand.vmem [shape: bf16[128,128], index: 0, kind: input, shape index: {}]   ;;  %s821_s2 = inlined_call_operand.vmem [shape: bf16[128,128], index: 2, kind: input, shape index: {}]   ;;  %s822_s3 = inlined_call_operand.vmem [shape: f32[1,128], index: 3, kind: input, shape index: {}]   ;;  %s823_s4 = inlined_call_operand.vmem [shape: f32[128,128], index: 4, kind: output, shape index: {}]  }
   0x1   :  { %v647_v0 = vld [vmem:[%s819_s1] sm:$0xff]   ;;  %v648_v1 = vld [vmem:[%s819_s1 + $0x8] sm:$0xff]   ;;  %v649_v2 = vld [vmem:[%s819_s1 + $0x10] sm:$0xff]  }
   0x2   :  { %583 = vmatprep.subr.bf16.mxu0 %v647_v0  ;;  %v650_v3 = vld [vmem:[%s819_s1 + $0x18] sm:$0xff]   ;;  %v655_v4 = vld [vmem:[%s820_s0] sm:$0xff]   ;;  %v652_v6 = vld [vmem:[%s819_s1 + $0x28] sm:$0xff]  }
   0x3   :  { %584 = vmatpush3.bf16.msra.mxu0 %v647_v0  ;;  %599 = vmatprep.mubr.bf16.mxu0 %v655_v4  ;;  %v651_v5 = vld [vmem:[%s819_s1 + $0x20] sm:$0xff]   ;;  %v664_v8 = vld [vmem:[%s821_s2 + $0x8] sm:$0xff]   ;;  %v653_v9 = vld [vmem:[%s819_s1 + $0x30] sm:$0xff]  }
   0x4   :  { %585 = vmatprep.subr.bf16.mxu0 %v648_v1  ;;  %v663_v7 = vld [vmem:[%s821_s2] sm:$0xff]   ;;  %v665_v10 = vld [vmem:[%s821_s2 + $0x10] sm:$0xff]   ;;  %v654_v11 = vld [vmem:[%s819_s1 + $0x38] sm:$0xff]  }
   0x5   :  { %615 = vmatprep.subr.bf16.mxu1 %v663_v7  ;;  %v666_v12 = vld [vmem:[%s821_s2 + $0x18] sm:$0xff]   ;;  %v667_v13 = vld [vmem:[%s821_s2 + $0x20] sm:$0xff]   ;;  %v656_v14 = vld [vmem:[%s820_s0 + $0x8] sm:$0xff]  }
   0x6   :  { %616 = vmatpush3.bf16.msra.mxu1 %v663_v7  ;;  %v657_v15 = vld [vmem:[%s820_s0 + $0x10] sm:$0xff]   ;;  %v668_v16 = vld [vmem:[%s821_s2 + $0x28] sm:$0xff]   ;;  %v658_v18 = vld [vmem:[%s820_s0 + $0x18] sm:$0xff]  }
   0x7   :  { %586 = vmatpush3.bf16.msra.mxu0 %v648_v1  ;;  %617 = vmatprep.subr.bf16.mxu1 %v664_v8  ;;  %v669_v17 = vld [vmem:[%s821_s2 + $0x30] sm:$0xff]   ;;  %v659_v19 = vld [vmem:[%s820_s0 + $0x20] sm:$0xff]   ;;  %v660_v20 = vld [vmem:[%s820_s0 + $0x28] sm:$0xff]  }
   0x8   :  { %587 = vmatprep.subr.bf16.mxu0 %v649_v2  ;;  %v661_v21 = vld [vmem:[%s820_s0 + $0x30] sm:$0xff]   ;;  %v662_v22 = vld [vmem:[%s820_s0 + $0x38] sm:$0xff]   ;;  %v542_v48 = vld [vmem:[%s822_s3] ss:$0 sm:$0xff] }
   0x9   :  { %v670_v23 = vld [vmem:[%s821_s2 + $0x38] sm:$0xff]  }
   0xa   :  { %618 = vmatpush3.bf16.msra.mxu1 %v664_v8 }
   0xb   :  { %588 = vmatpush3.bf16.msra.mxu0 %v649_v2  ;;  %619 = vmatprep.subr.bf16.mxu1 %v665_v10 }
   0xc   :  { %589 = vmatprep.subr.bf16.mxu0 %v650_v3 }
   0xe   :  { %620 = vmatpush3.bf16.msra.mxu1 %v665_v10 }
   0xf   :  { %590 = vmatpush3.bf16.msra.mxu0 %v650_v3  ;;  %621 = vmatprep.subr.bf16.mxu1 %v666_v12 }
  0x10   :  { %591 = vmatprep.subr.bf16.mxu0 %v651_v5 }
  0x12   :  { %622 = vmatpush3.bf16.msra.mxu1 %v666_v12 }
  0x13   :  { %592 = vmatpush3.bf16.msra.mxu0 %v651_v5  ;;  %623 = vmatprep.subr.bf16.mxu1 %v667_v13 }
  0x14   :  { %593 = vmatprep.subr.bf16.mxu0 %v652_v6 }
  0x16   :  { %624 = vmatpush3.bf16.msra.mxu1 %v667_v13 }
  0x17   :  { %594 = vmatpush3.bf16.msra.mxu0 %v652_v6  ;;  %625 = vmatprep.subr.bf16.mxu1 %v668_v16 }
  0x18   :  { %595 = vmatprep.subr.bf16.mxu0 %v653_v9 }
  0x1a   :  { %626 = vmatpush3.bf16.msra.mxu1 %v668_v16 }
  0x1b   :  { %596 = vmatpush3.bf16.msra.mxu0 %v653_v9  ;;  %627 = vmatprep.subr.bf16.mxu1 %v669_v17 }
  0x1c   :  { %597 = vmatprep.subr.bf16.mxu0 %v654_v11 }
  0x1e   :  { %628 = vmatpush3.bf16.msra.mxu1 %v669_v17 }
  0x1f   :  { %598 = vmatpush3.bf16.msra.mxu0 %v654_v11  ;;  %629 = vmatprep.subr.bf16.mxu1 %v670_v23 }
  0x22   :  { %600 = vmatmul.mubr.bf16.vlgmr.msra.gmra.mrb[0].mxu0 %v656_v14  ;;  %630 = vmatpush3.bf16.msra.mxu1 %v670_v23 }
  0x23   :  { %603 = vmatprep.mubr.bf16.mxu0 %v657_v15 }
  0x2a   :  { %604 = vmatmul.mubr.bf16.gmra.mrb[4].mxu0 %v658_v18 }
  0x2b   :  { %607 = vmatprep.mubr.bf16.mxu0 %v659_v19 }
  0x32   :  { %608 = vmatmul.mubr.bf16.gmra.mrb[8].mxu0 %v660_v20 }
  0x33   :  { %611 = vmatprep.mubr.bf16.mxu0 %v661_v21 }
  0x3a   :  { %612 = vmatmul.mubr.bf16.gmra.mrb[12].mxu0 %v662_v22 }
  0xf5   :  { %v601_v24 = vpop.f32.mrb[0].mxu0 }
  0xf6   :  { %v216_v25 = vpop.f32.mrb[1].mxu0 }
  0xf7   :  { %v602_v26 = vpop.f32.mrb[2].mxu0 }
  0xf8   :  { %v331_v27 = vpack.c.bf16 %v602_v26, %v601_v24  ;;  %v219_v28 = vpop.f32.mrb[3].mxu0 }
  0xf9   :  { %v330_v29 = vpack.c.bf16 %v219_v28, %v216_v25 }
  0xfb   :  { %631 = vmatprep.mubr.bf16.mxu1 %v330_v29 }
  0xfc   :  { %632 = vmatmul.mubr.bf16.vlgmr.msra.gmra.mrb[0].mxu1 %v331_v27 }
  0xfd   :  { %v605_v30 = vpop.f32.mrb[4].mxu0 }
  0xfe   :  { %v232_v31 = vpop.f32.mrb[5].mxu0 }
  0xff   :  { %v606_v32 = vpop.f32.mrb[6].mxu0 }
 0x100   :  { %v333_v33 = vpack.c.bf16 %v606_v32, %v605_v30  ;;  %v235_v34 = vpop.f32.mrb[7].mxu0 }
 0x101   :  { %v332_v35 = vpack.c.bf16 %v235_v34, %v232_v31 }
 0x103   :  { %635 = vmatprep.mubr.bf16.mxu1 %v332_v35 }
 0x104   :  { %636 = vmatmul.mubr.bf16.gmra.mrb[4].mxu1 %v333_v33 }
 0x105   :  { %v609_v36 = vpop.f32.mrb[8].mxu0 }
 0x106   :  { %v248_v37 = vpop.f32.mrb[9].mxu0 }
 0x107   :  { %v610_v38 = vpop.f32.mrb[10].mxu0 }
 0x108   :  { %v335_v39 = vpack.c.bf16 %v610_v38, %v609_v36  ;;  %v251_v40 = vpop.f32.mrb[11].mxu0 }
 0x109   :  { %v334_v41 = vpack.c.bf16 %v251_v40, %v248_v37 }
 0x10b   :  { %639 = vmatprep.mubr.bf16.mxu1 %v334_v41 }
 0x10c   :  { %640 = vmatmul.mubr.bf16.gmra.mrb[8].mxu1 %v335_v39 }
 0x10d   :  { %v613_v42 = vpop.f32.mrb[12].mxu0 }
 0x10e   :  { %v264_v43 = vpop.f32.mrb[13].mxu0 }
 0x10f   :  { %v614_v44 = vpop.f32.mrb[14].mxu0 }
 0x110   :  { %v337_v45 = vpack.c.bf16 %v614_v44, %v613_v42  ;;  %v267_v46 = vpop.f32.mrb[15].mxu0 }
 0x111   :  { %v336_v47 = vpack.c.bf16 %v267_v46, %v264_v43 }
 0x113   :  { %643 = vmatprep.mubr.bf16.mxu1 %v336_v47 }
 0x114   :  { %644 = vmatmul.mubr.bf16.gmra.mrb[12].mxu1 %v337_v45 }
 0x1cf   :  { %v633_v49 = vpop.f32.mrb[0].mxu1 }
 0x1d0   :  { %v452_v50 = vadd.f32 %v633_v49, %v542_v48  ;;  %v443_v51 = vpop.f32.mrb[1].mxu1 }
 0x1d1   :  { %v444_v52 = vadd.f32 %v542_v48, %v443_v51  ;;  %v634_v53 = vpop.f32.mrb[2].mxu1 }
 0x1d2   :  { %508 = vst [vmem:[%s823_s4 + $0x10] sm:$0xff] %v452_v50  ;;  %v455_v54 = vadd.f32 %v634_v53, %v542_v48  ;;  %v446_v55 = vpop.f32.mrb[3].mxu1 }
 0x1d3   :  { %506 = vst [vmem:[%s823_s4] sm:$0xff] %v444_v52  ;;  %v447_v56 = vadd.f32 %v542_v48, %v446_v55 }
 0x1d4   :  { %509 = vst [vmem:[%s823_s4 + $0x18] sm:$0xff] %v455_v54 }
 0x1d5   :  { %507 = vst [vmem:[%s823_s4 + $0x8] sm:$0xff] %v447_v56 }
 0x1d7   :  { %v637_v57 = vpop.f32.mrb[4].mxu1 }
 0x1d8   :  { %v468_v58 = vadd.f32 %v637_v57, %v542_v48  ;;  %v459_v59 = vpop.f32.mrb[5].mxu1 }
 0x1d9   :  { %v460_v60 = vadd.f32 %v542_v48, %v459_v59  ;;  %v638_v61 = vpop.f32.mrb[6].mxu1 }
 0x1da   :  { %512 = vst [vmem:[%s823_s4 + $0x30] sm:$0xff] %v468_v58  ;;  %v471_v62 = vadd.f32 %v638_v61, %v542_v48  ;;  %v462_v63 = vpop.f32.mrb[7].mxu1 }
 0x1db   :  { %510 = vst [vmem:[%s823_s4 + $0x20] sm:$0xff] %v460_v60  ;;  %v463_v0 = vadd.f32 %v542_v48, %v462_v63 }
 0x1dc   :  { %513 = vst [vmem:[%s823_s4 + $0x38] sm:$0xff] %v471_v62 }
 0x1dd   :  { %511 = vst [vmem:[%s823_s4 + $0x28] sm:$0xff] %v463_v0 }
 0x1df   :  { %v641_v1 = vpop.f32.mrb[8].mxu1 }
 0x1e0   :  { %v484_v2 = vadd.f32 %v641_v1, %v542_v48  ;;  %v475_v3 = vpop.f32.mrb[9].mxu1 }
 0x1e1   :  { %v476_v4 = vadd.f32 %v542_v48, %v475_v3  ;;  %v642_v5 = vpop.f32.mrb[10].mxu1 }
 0x1e2   :  { %516 = vst [vmem:[%s823_s4 + $0x50] sm:$0xff] %v484_v2  ;;  %v487_v6 = vadd.f32 %v642_v5, %v542_v48  ;;  %v478_v7 = vpop.f32.mrb[11].mxu1 }
 0x1e3   :  { %514 = vst [vmem:[%s823_s4 + $0x40] sm:$0xff] %v476_v4  ;;  %v479_v8 = vadd.f32 %v542_v48, %v478_v7 }
 0x1e4   :  { %517 = vst [vmem:[%s823_s4 + $0x58] sm:$0xff] %v487_v6 }
 0x1e5   :  { %515 = vst [vmem:[%s823_s4 + $0x48] sm:$0xff] %v479_v8 }
 0x1e7   :  { %v645_v9 = vpop.f32.mrb[12].mxu1 }
 0x1e8   :  { %v500_v10 = vadd.f32 %v645_v9, %v542_v48  ;;  %v491_v11 = vpop.f32.mrb[13].mxu1 }
 0x1e9   :  { %v492_v12 = vadd.f32 %v542_v48, %v491_v11  ;;  %v646_v13 = vpop.f32.mrb[14].mxu1 }
 0x1ea   :  { %520 = vst [vmem:[%s823_s4 + $0x70] sm:$0xff] %v500_v10  ;;  %v503_v14 = vadd.f32 %v646_v13, %v542_v48  ;;  %v494_v15 = vpop.f32.mrb[15].mxu1 }
 0x1eb   :  { %518 = vst [vmem:[%s823_s4 + $0x60] sm:$0xff] %v492_v12  ;;  %v495_v16 = vadd.f32 %v542_v48, %v494_v15 }
 0x1ec   :  { %521 = vst [vmem:[%s823_s4 + $0x78] sm:$0xff] %v503_v14 }
 0x1ed   :  { %519 = vst [vmem:[%s823_s4 + $0x68] sm:$0xff] %v495_v16 }

// kernel: neognn_forward.10
= control target key start
LH: loop header
LB: loop body
LE: loop exit
PB: predicated region body
PF: predicated region fallthrough
CT: control target
= control target key end

     0   :  { %v414_v0 = vmov 0   ;;  %s634_s1 = inlined_call_operand.vmem [shape: f32[128,1], index: 1, kind: input, shape index: {}]   ;;  %s635_s2 = inlined_call_operand.vmem [shape: f32[128,1], index: 2, kind: input, shape index: {}]   ;;  %s636_s3 = inlined_call_operand.vmem [shape: f32[128,1], index: 3, kind: input, shape index: {}]   ;;  %s637_s0 = inlined_call_operand.vmem [shape: f32[1,128], index: 0, kind: input, shape index: {}]   ;;  %s638_s4 = inlined_call_operand.<no memory space> [shape: f32[1], index: 4, kind: input, shape index: {}]   ;;  %s639_s5 = inlined_call_operand.vmem [shape: f32[1,128], index: 5, kind: output, shape index: {}]  }
   0x1   :  { %413 = vset.pattern.permute.xlu1 %v414_v0  ;;  %412 = vset.pattern.permute.xlu0 %v414_v0  ;;  %v24_v1 = vld [vmem:[%s634_s1 + $0x10] sm:$0xff]  ;;  %v22_v2 = vld [vmem:[%s634_s1] sm:$0xff]  ;;  %v25_v3 = vld [vmem:[%s634_s1 + $0x18] sm:$0xff] }
   0x2   :  { %56 = vperm.xlu1 %413, %v24_v1   ;;  %46 = vperm.xlu0 %412, %v22_v2   ;;  %v23_v4 = vld [vmem:[%s634_s1 + $0x8] sm:$0xff]  ;;  %v26_v6 = vld [vmem:[%s634_s1 + $0x20] sm:$0xff]  ;;  %v29_v7 = vld [vmem:[%s634_s1 + $0x38] sm:$0xff] }
   0x3   :  { %v27_v5 = vld [vmem:[%s634_s1 + $0x28] sm:$0xff]  ;;  %v28_v8 = vld [vmem:[%s634_s1 + $0x30] sm:$0xff]  ;;  %v30_v10 = vld [vmem:[%s634_s1 + $0x40] sm:$0xff] }
   0x4   :  { %v31_v9 = vld [vmem:[%s634_s1 + $0x48] sm:$0xff]  ;;  %v33_v11 = vld [vmem:[%s634_s1 + $0x58] sm:$0xff]  ;;  %v32_v12 = vld [vmem:[%s634_s1 + $0x50] sm:$0xff] }
   0x5   :  { %v35_v13 = vld [vmem:[%s634_s1 + $0x68] sm:$0xff]  ;;  %v34_v14 = vld [vmem:[%s634_s1 + $0x60] sm:$0xff]  ;;  %v37_v15 = vld [vmem:[%s634_s1 + $0x78] sm:$0xff] }
   0x6   :  { %61 = vperm.xlu1 %413, %v25_v3   ;;  %51 = vperm.xlu0 %412, %v23_v4   ;;  %v36_v16 = vld [vmem:[%s634_s1 + $0x70] sm:$0xff]  ;;  %v141_v17 = vld [vmem:[%s635_s2 + $0x8] sm:$0xff]  ;;  %v140_v18 = vld [vmem:[%s635_s2] sm:$0xff] }
   0x7   :  { %v143_v19 = vld [vmem:[%s635_s2 + $0x18] sm:$0xff]  ;;  %v142_v20 = vld [vmem:[%s635_s2 + $0x10] sm:$0xff]  ;;  %v269_v21 = vld [vmem:[%s636_s3 + $0x8] sm:$0xff] }
   0x8   :  { %v268_v22 = vld [vmem:[%s636_s3] sm:$0xff]  ;;  %v270_v23 = vld [vmem:[%s636_s3 + $0x10] sm:$0xff]  ;;  %v271_v25 = vld [vmem:[%s636_s3 + $0x18] sm:$0xff] }
   0x9   :  { %v144_v24 = vld [vmem:[%s635_s2 + $0x20] sm:$0xff]  ;;  %v145_v26 = vld [vmem:[%s635_s2 + $0x28] sm:$0xff]  ;;  %v146_v28 = vld [vmem:[%s635_s2 + $0x30] sm:$0xff] }
   0xa   :  { %71 = vperm.xlu1 %413, %v27_v5   ;;  %66 = vperm.xlu0 %412, %v26_v6   ;;  %v272_v27 = vld [vmem:[%s636_s3 + $0x20] sm:$0xff]  ;;  %v273_v29 = vld [vmem:[%s636_s3 + $0x28] sm:$0xff]  ;;  %v147_v30 = vld [vmem:[%s635_s2 + $0x38] sm:$0xff] }
   0xb   :  { %v274_v31 = vld [vmem:[%s636_s3 + $0x30] sm:$0xff]  ;;  %v148_v32 = vld [vmem:[%s635_s2 + $0x40] sm:$0xff]  ;;  %v275_v33 = vld [vmem:[%s636_s3 + $0x38] sm:$0xff] }
   0xc   :  { %v149_v34 = vld [vmem:[%s635_s2 + $0x48] sm:$0xff]  ;;  %v276_v35 = vld [vmem:[%s636_s3 + $0x40] sm:$0xff]  ;;  %v150_v36 = vld [vmem:[%s635_s2 + $0x50] sm:$0xff] }
   0xd   :  { %v277_v37 = vld [vmem:[%s636_s3 + $0x48] sm:$0xff]  ;;  %v151_v38 = vld [vmem:[%s635_s2 + $0x58] sm:$0xff]  ;;  %v278_v39 = vld [vmem:[%s636_s3 + $0x50] sm:$0xff] }
   0xe   :  { %81 = vperm.xlu1 %413, %v29_v7   ;;  %76 = vperm.xlu0 %412, %v28_v8   ;;  %v152_v40 = vld [vmem:[%s635_s2 + $0x60] sm:$0xff]  ;;  %v279_v41 = vld [vmem:[%s636_s3 + $0x58] sm:$0xff]  ;;  %v153_v42 = vld [vmem:[%s635_s2 + $0x68] sm:$0xff] }
   0xf   :  { %v280_v43 = vld [vmem:[%s636_s3 + $0x60] sm:$0xff]  ;;  %v154_v44 = vld [vmem:[%s635_s2 + $0x70] sm:$0xff]  ;;  %v281_v45 = vld [vmem:[%s636_s3 + $0x68] sm:$0xff] }
  0x10   :  { %v155_v46 = vld [vmem:[%s635_s2 + $0x78] sm:$0xff]  ;;  %v282_v48 = vld [vmem:[%s636_s3 + $0x70] sm:$0xff] }
  0x11   :  { %v283_v47 = vld [vmem:[%s636_s3 + $0x78] sm:$0xff] }
  0x12   :  { %91 = vperm.xlu1 %413, %v31_v9   ;;  %86 = vperm.xlu0 %412, %v30_v10  }
  0x16   :  { %101 = vperm.xlu1 %413, %v33_v11   ;;  %96 = vperm.xlu0 %412, %v32_v12  }
  0x1a   :  { %111 = vperm.xlu1 %413, %v35_v13   ;;  %106 = vperm.xlu0 %412, %v34_v14   ;;  %v604_v13 = vld [vmem:[%s637_s0] ss:$0 sm:$0xff] }
  0x1e   :  { %121 = vperm.xlu1 %413, %v37_v15   ;;  %116 = vperm.xlu0 %412, %v36_v16  }
  0x22   :  { %163 = vperm.xlu1 %413, %v141_v17   ;;  %158 = vperm.xlu0 %412, %v140_v18  }
  0x26   :  { %173 = vperm.xlu1 %413, %v143_v19   ;;  %168 = vperm.xlu0 %412, %v142_v20  }
  0x2a   :  { %291 = vperm.xlu1 %413, %v269_v21   ;;  %286 = vperm.xlu0 %412, %v268_v22  }
  0x2e   :  { %296 = vperm.xlu1 %413, %v270_v23   ;;  %178 = vperm.xlu0 %412, %v144_v24  }
  0x32   :  { %301 = vperm.xlu1 %413, %v271_v25   ;;  %183 = vperm.xlu0 %412, %v145_v26  }
  0x36   :  { %306 = vperm.xlu1 %413, %v272_v27   ;;  %188 = vperm.xlu0 %412, %v146_v28  }
  0x3a   :  { %311 = vperm.xlu1 %413, %v273_v29   ;;  %193 = vperm.xlu0 %412, %v147_v30  }
  0x3e   :  { %316 = vperm.xlu1 %413, %v274_v31   ;;  %198 = vperm.xlu0 %412, %v148_v32  }
  0x42   :  { %321 = vperm.xlu1 %413, %v275_v33   ;;  %203 = vperm.xlu0 %412, %v149_v34  }
  0x46   :  { %326 = vperm.xlu1 %413, %v276_v35   ;;  %208 = vperm.xlu0 %412, %v150_v36  }
  0x4a   :  { %331 = vperm.xlu1 %413, %v277_v37   ;;  %213 = vperm.xlu0 %412, %v151_v38  }
  0x4e   :  { %336 = vperm.xlu1 %413, %v278_v39   ;;  %218 = vperm.xlu0 %412, %v152_v40  }
  0x52   :  { %341 = vperm.xlu1 %413, %v279_v41   ;;  %223 = vperm.xlu0 %412, %v153_v42  }
  0x56   :  { %346 = vperm.xlu1 %413, %v280_v43   ;;  %228 = vperm.xlu0 %412, %v154_v44  }
  0x5a   :  { %351 = vperm.xlu1 %413, %v281_v45   ;;  %233 = vperm.xlu0 %412, %v155_v46  }
  0x5e   :  { %361 = vperm.xlu1 %413, %v283_v47   ;;  %356 = vperm.xlu0 %412, %v282_v48  }
  0x81   :  { %v57_v49 = vpop.permute.xlu1 %56  ;;  %v47_v50 = vpop.permute.xlu0 %46 }
  0x82   :  { %v124_v16 = vmul.f32 %v604_v13, %v47_v50  ;;  %v126_v18 = vmul.f32 %v604_v13, %v57_v49 }
  0x85   :  { %v62_v51 = vpop.permute.xlu1 %61  ;;  %v52_v52 = vpop.permute.xlu0 %51 }
  0x86   :  { %v125_v17 = vmul.f32 %v604_v13, %v52_v52  ;;  %v127_v23 = vmul.f32 %v604_v13, %v62_v51 }
  0x89   :  { %v72_v53 = vpop.permute.xlu1 %71  ;;  %v67_v54 = vpop.permute.xlu0 %66 }
  0x8a   :  { %v128_v25 = vmul.f32 %v604_v13, %v67_v54  ;;  %v129_v29 = vmul.f32 %v604_v13, %v72_v53 }
  0x8d   :  { %v82_v55 = vpop.permute.xlu1 %81  ;;  %v77_v56 = vpop.permute.xlu0 %76 }
  0x8e   :  { %v130_v36 = vmul.f32 %v604_v13, %v77_v56  ;;  %v131_v40 = vmul.f32 %v604_v13, %v82_v55 }
  0x91   :  { %v92_v57 = vpop.permute.xlu1 %91  ;;  %v87_v58 = vpop.permute.xlu0 %86 }
  0x92   :  { %v132_v47 = vmul.f32 %v604_v13, %v87_v58  ;;  %v133_v52 = vmul.f32 %v604_v13, %v92_v57 }
  0x95   :  { %v589_v59 = vpop.permute.xlu1 %101  ;;  %v591_v60 = vpop.permute.xlu0 %96 }
  0x96   :  { %v135_v58 = vmul.f32 %v604_v13, %v589_v59 }
  0x99   :  { %v593_v61 = vpop.permute.xlu1 %111  ;;  %v595_v62 = vpop.permute.xlu0 %106 }
  0x9d   :  { %v597_v63 = vpop.permute.xlu1 %121  ;;  %v599_v0 = vpop.permute.xlu0 %116 }
  0xa1   :  { %v164_v1 = vpop.permute.xlu1 %163  ;;  %v159_v2 = vpop.permute.xlu0 %158 }
  0xa2   :  { %v237_v19 = vadd.f32 %v164_v1, %v125_v17  ;;  %v236_v20 = vadd.f32 %v159_v2, %v124_v16 }
  0xa4   :  { %v253_v26 = vmax.f32 %v237_v19, 0.0  ;;  %v252_v27 = vmax.f32 %v236_v20, 0.0 }
  0xa5   :  { %v174_v3 = vpop.permute.xlu1 %173  ;;  %v169_v4 = vpop.permute.xlu0 %168 }
  0xa6   :  { %v238_v24 = vadd.f32 %v169_v4, %v126_v18  ;;  %v239_v28 = vadd.f32 %v174_v3, %v127_v23  ;;  %v134_v3 = vmul.f32 %v604_v13, %v591_v60  ;;  %v137_v18 = vmul.f32 %v604_v13, %v593_v61 }
  0xa7   :  { %v139_v61 = vmul.f32 %v604_v13, %v597_v63 }
  0xa8   :  { %v254_v32 = vmax.f32 %v238_v24, 0.0  ;;  %v255_v37 = vmax.f32 %v239_v28, 0.0 }
  0xa9   :  { %v292_v5 = vpop.permute.xlu1 %291  ;;  %v287_v6 = vpop.permute.xlu0 %286 }
  0xaa   :  { %v365_v33 = vmul.f32 %v292_v5, %v253_v26  ;;  %v364_v34 = vmul.f32 %v287_v6, %v252_v27 }
  0xac   :  { %v380_v43 = vadd.f32 %v365_v33, %v364_v34 }
  0xad   :  { %v297_v7 = vpop.permute.xlu1 %296  ;;  %v179_v8 = vpop.permute.xlu0 %178 }
  0xae   :  { %v240_v35 = vadd.f32 %v179_v8, %v128_v25  ;;  %v366_v38 = vmul.f32 %v297_v7, %v254_v32 }
  0xb0   :  { %v256_v44 = vmax.f32 %v240_v35, 0.0  ;;  %v381_v48 = vadd.f32 %v380_v43, %v366_v38 }
  0xb1   :  { %v302_v9 = vpop.permute.xlu1 %301  ;;  %v184_v10 = vpop.permute.xlu0 %183 }
  0xb2   :  { %v241_v39 = vadd.f32 %v184_v10, %v129_v29  ;;  %v367_v45 = vmul.f32 %v302_v9, %v255_v37 }
  0xb4   :  { %v257_v49 = vmax.f32 %v241_v39, 0.0  ;;  %v382_v56 = vadd.f32 %v381_v48, %v367_v45 }
  0xb5   :  { %v307_v11 = vpop.permute.xlu1 %306  ;;  %v189_v12 = vpop.permute.xlu0 %188 }
  0xb6   :  { %v242_v46 = vadd.f32 %v189_v12, %v130_v36  ;;  %v368_v50 = vmul.f32 %v307_v11, %v256_v44 }
  0xb8   :  { %v258_v1 = vmax.f32 %v242_v46, 0.0  ;;  %v383_v4 = vadd.f32 %v382_v56, %v368_v50 }
  0xb9   :  { %v312_v14 = vpop.permute.xlu1 %311  ;;  %v194_v15 = vpop.permute.xlu0 %193 }
  0xba   :  { %v243_v51 = vadd.f32 %v194_v15, %v131_v40  ;;  %v369_v2 = vmul.f32 %v312_v14, %v257_v49  ;;  %v136_v14 = vmul.f32 %v604_v13, %v595_v62  ;;  %v138_v62 = vmul.f32 %v604_v13, %v599_v0 }
  0xbc   :  { %v259_v5 = vmax.f32 %v243_v51, 0.0  ;;  %v384_v10 = vadd.f32 %v383_v4, %v369_v2 }
  0xbd   :  { %v317_v21 = vpop.permute.xlu1 %316  ;;  %v199_v22 = vpop.permute.xlu0 %198 }
  0xbe   :  { %v244_v55 = vadd.f32 %v199_v22, %v132_v47  ;;  %v370_v6 = vmul.f32 %v317_v21, %v258_v1 }
  0xc0   :  { %v260_v57 = vmax.f32 %v244_v55, 0.0  ;;  %v385_v15 = vadd.f32 %v384_v10, %v370_v6 }
  0xc1   :  { %v322_v30 = vpop.permute.xlu1 %321  ;;  %v204_v31 = vpop.permute.xlu0 %203 }
  0xc2   :  { %v245_v7 = vadd.f32 %v204_v31, %v133_v52  ;;  %v371_v11 = vmul.f32 %v322_v30, %v259_v5 }
  0xc4   :  { %v261_v16 = vmax.f32 %v245_v7, 0.0  ;;  %v386_v21 = vadd.f32 %v385_v15, %v371_v11 }
  0xc5   :  { %v327_v41 = vpop.permute.xlu1 %326  ;;  %v209_v42 = vpop.permute.xlu0 %208 }
  0xc6   :  { %v246_v12 = vadd.f32 %v209_v42, %v134_v3  ;;  %v372_v17 = vmul.f32 %v327_v41, %v260_v57 }
  0xc8   :  { %v262_v59 = vmax.f32 %v246_v12, 0.0  ;;  %v387_v24 = vadd.f32 %v386_v21, %v372_v17 }
  0xc9   :  { %v332_v53 = vpop.permute.xlu1 %331  ;;  %v214_v54 = vpop.permute.xlu0 %213 }
  0xca   :  { %v247_v60 = vadd.f32 %v214_v54, %v135_v58  ;;  %v373_v22 = vmul.f32 %v332_v53, %v261_v16  ;;  %v402_v54 = vstv %s638_s4 }
  0xcc   :  { %v263_v25 = vmax.f32 %v247_v60, 0.0  ;;  %v388_v30 = vadd.f32 %v387_v24, %v373_v22 }
  0xcd   :  { %v337_v8 = vpop.permute.xlu1 %336  ;;  %v219_v9 = vpop.permute.xlu0 %218 }
  0xce   :  { %v248_v23 = vadd.f32 %v219_v9, %v136_v14  ;;  %v374_v26 = vmul.f32 %v337_v8, %v262_v59 }
  0xd0   :  { %v264_v31 = vmax.f32 %v248_v23, 0.0  ;;  %v389_v33 = vadd.f32 %v388_v30, %v374_v26 }
  0xd1   :  { %v342_v19 = vpop.permute.xlu1 %341  ;;  %v224_v20 = vpop.permute.xlu0 %223 }
  0xd2   :  { %v249_v27 = vadd.f32 %v224_v20, %v137_v18  ;;  %v375_v32 = vmul.f32 %v342_v19, %v263_v25 }
  0xd4   :  { %v265_v34 = vmax.f32 %v249_v27, 0.0  ;;  %v390_v39 = vadd.f32 %v389_v33, %v375_v32 }
  0xd5   :  { %v347_v28 = vpop.permute.xlu1 %346  ;;  %v229_v29 = vpop.permute.xlu0 %228 }
  0xd6   :  { %v376_v35 = vmul.f32 %v347_v28, %v264_v31  ;;  %v250_v36 = vadd.f32 %v229_v29, %v138_v62 }
  0xd8   :  { %v391_v42 = vadd.f32 %v390_v39, %v376_v35  ;;  %v266_v43 = vmax.f32 %v250_v36, 0.0 }
  0xd9   :  { %v352_v37 = vpop.permute.xlu1 %351  ;;  %v234_v38 = vpop.permute.xlu0 %233 }
  0xda   :  { %v377_v40 = vmul.f32 %v352_v37, %v265_v34  ;;  %v251_v41 = vadd.f32 %v234_v38, %v139_v61 }
  0xdc   :  { %v267_v44 = vmax.f32 %v251_v41, 0.0  ;;  %v392_v46 = vadd.f32 %v391_v42, %v377_v40 }
  0xdd   :  { %v362_v45 = vpop.permute.xlu1 %361  ;;  %v357_v0 = vpop.permute.xlu0 %356 }
  0xde   :  { %v378_v47 = vmul.f32 %v357_v0, %v266_v43  ;;  %v379_v48 = vmul.f32 %v362_v45, %v267_v44 }
  0xe0   :  { %v393_v49 = vadd.f32 %v392_v46, %v378_v47 }
  0xe2   :  { %v394_v50 = vadd.f32 %v393_v49, %v379_v48 }
  0xe4   :  { %v395_v63 = vrot.slane %v394_v50, 4 }
  0xe6   :  { %v396_v13 = vadd.f32 %v395_v63, %v394_v50 }
  0xe8   :  { %v397_v51 = vrot.slane %v396_v13, 2 }
  0xea   :  { %v398_v52 = vadd.f32 %v397_v51, %v396_v13 }
  0xec   :  { %v399_v53 = vrot.slane %v398_v52, 1 }
  0xee   :  { %v400_v56 = vadd.f32 %v399_v53, %v398_v52 }
  0xf0   :  { %v403_v1 = vadd.f32 %v402_v54, %v400_v56 }
  0xf2   :  { %v404_v2 = vmul.f32 %v403_v1, %v403_v1 }
  0xf4   :  { %405 = vst [vmem:[%s639_s5] sm:$0x1] %v404_v2 }

// kernel: neognn_forward.9
= control target key start
LH: loop header
LB: loop body
LE: loop exit
PB: predicated region body
PF: predicated region fallthrough
CT: control target
= control target key end

     0   :  { %11 = vsyncpa [#allocation4], 0  ;;  %s1920_s0 = inlined_call_operand.vmem [shape: f32[128,128], index: 0, kind: input, shape index: {}]   ;;  %s1921_s1 = inlined_call_operand.vmem [shape: f32[8], index: 1, kind: input, shape index: {}]   ;;  %s1922_s2 = inlined_call_operand.vmem [shape: f32[8], index: 2, kind: input, shape index: {}]   ;;  %s1923_s3 = inlined_call_operand.vmem [shape: f32[8], index: 3, kind: input, shape index: {}]   ;;  %s1924_s4 = inlined_call_operand.<no memory space> [shape: f32[1], index: 4, kind: input, shape index: {}]   ;;  %s1925_s5 = inlined_call_operand.vmem [shape: f32[1,128], index: 5, kind: output, shape index: {}]  }
   0x1   :  { %12 = vsyncpa [#allocation6], 0  ;;  %s31_s20 = sshll.u32 %s1922_s2, 4  ;;  %s21_s23 = sshll.u32 %s1921_s1, 4  ;;  %s32_s20 = int_to_ptr.vmem [resolvable:$true] %s31_s20  ;;  %s22_s23 = int_to_ptr.vmem [resolvable:$true] %s21_s23 }
   0x2   :  { %s872_s24 = scalar_lea.vmem %s32_s20, 16  ;;  %p877_p1 = scmp.lt.s32.totalorder %s32_s20, %s32_s20 }
   0x3   :  { %p873_p0 = scmp.ne.s32.totalorder %s32_s20, %s872_s24  ;;  %p878_p2 = scmp.lt.s32.totalorder %s872_s24, %s872_s24 }
   0x5   :  { %p879_p3 = por %p878_p2, %p877_p1 }
   0x7   :  { %p880_p4 = pnand %p879_p3, %p873_p0 }
   0x9   :  { %883 = shalt.err (!%p880_p4)
}
   0xa   :  { %s912_s25 = smov [#allocation5]   ;;  %s884_s26 = scalar_lea.vmem %s22_s23, 16 }
   0xb   :  { %34 = dma.vmem_to_smem %s32_s20, 16, %s912_s25, [#allocation6]  }
   0xc   :  { %p885_p5 = scmp.ne.s32.totalorder %s22_s23, %s884_s26  ;;  %p889_p6 = scmp.lt.s32.totalorder %s22_s23, %s22_s23 }
   0xd   :  { %p890_p7 = scmp.lt.s32.totalorder %s884_s26, %s884_s26 }
   0xf   :  { %p891_p8 = por %p890_p7, %p889_p6 }
  0x11   :  { %p892_p9 = pnand %p891_p8, %p885_p5 }
  0x13   :  { %895 = shalt.err (!%p892_p9)
}
  0x14   :  { %s913_s2 = smov [#allocation3]   ;;  %s41_s28 = sshll.u32 %s1923_s3, 4  ;;  %s42_s28 = int_to_ptr.vmem [resolvable:$true] %s41_s28 }
  0x15   :  { %24 = dma.vmem_to_smem %s22_s23, 16, %s913_s2, [#allocation4]  }
  0x16   :  { %s896_s29 = scalar_lea.vmem %s42_s28, 16  ;;  %p901_p11 = scmp.lt.s32.totalorder %s42_s28, %s42_s28 }
  0x17   :  { %p897_p10 = scmp.ne.s32.totalorder %s42_s28, %s896_s29  ;;  %p902_p12 = scmp.lt.s32.totalorder %s896_s29, %s896_s29 }
  0x19   :  { %p903_p13 = por %p902_p12, %p901_p11 }
  0x1b   :  { %p904_p0 = pnand %p903_p13, %p897_p10 }
  0x1d   :  { %907 = shalt.err (!%p904_p0)
}
  0x1e   :  { %s914_s30 = smov [#allocation7]  }
  0x1f   :  { %44 = dma.vmem_to_smem %s42_s28, 16, %s914_s30, [#allocation6]  }
  0x20   :  { %908 = dma.done.wait [#allocation4], 16  }
  0x21   :  { %909 = vsyncadd [#allocation4], 4294967280 }
  0x22   :  { %910 = dma.done.wait [#allocation6], 32  }
  0x23   :  { %911 = vsyncadd [#allocation6], 4294967264 }
  0x24   :  { %56 = sfence }
  0x25   :  { %v915_v0 = vmov 0.0   ;;  %s81_s3 = sld [smem:[#allocation3]]  ;;  %v963_v1 = vld [vmem:[%s1920_s0] sm:$0xff]  ;;  %v968_v2 = vld [vmem:[%s1920_s0 + $0x8] sm:$0xff]  ;;  %s972_s14 = sld [smem:[#allocation3 + $0x1]]  ;;  %v977_v3 = vld [vmem:[%s1920_s0 + $0x10] sm:$0xff]  ;;  %v1039_v16 = vstv %s1924_s4 }
  0x26   :  { %61 = vst [vmem:[%s1925_s5] sm:$0x1] %v915_v0  ;;  %s958_s8 = sld [smem:[#allocation5]]  ;;  %v982_v4 = vld [vmem:[%s1920_s0 + $0x18] sm:$0xff]  ;;  %v987_v5 = vld [vmem:[%s1920_s0 + $0x20] sm:$0xff]  ;;  %s989_s21 = sld [smem:[#allocation5 + $0x1]]  ;;  %v994_v7 = vld [vmem:[%s1920_s0 + $0x28] sm:$0xff] }
  0x27   :  { %s970_s13 = sld [smem:[#allocation7]]  ;;  %v999_v8 = vld [vmem:[%s1920_s0 + $0x30] sm:$0xff]  ;;  %v1004_v9 = vld [vmem:[%s1920_s0 + $0x38] sm:$0xff]  ;;  %v1009_v10 = vld [vmem:[%s1920_s0 + $0x40] sm:$0xff]  ;;  %s1145_s4 = sld [smem:[#allocation7 + $0x1]] }
  0x28   :  { %1947 = vst [vmem:[#allocation10_spill] sm:$0xff] %v1009_v10  ;;  %v1014_v11 = vld [vmem:[%s1920_s0 + $0x48] sm:$0xff]  ;;  %v1019_v12 = vld [vmem:[%s1920_s0 + $0x50] sm:$0xff]  ;;  %v1024_v13 = vld [vmem:[%s1920_s0 + $0x58] sm:$0xff]  ;;  %s1272_s22 = sld [smem:[#allocation5 + $0x3]]  ;;  %s1280_s24 = sld [smem:[#allocation3 + $0x4]] }
  0x29   :  { %1948 = vst [vmem:[#allocation11_spill] sm:$0xff] %v1014_v11  ;;  %1949 = vst [vmem:[#allocation12_spill] sm:$0xff] %v1019_v12  ;;  %v1029_v14 = vld [vmem:[%s1920_s0 + $0x60] sm:$0xff]  ;;  %v1034_v15 = vld [vmem:[%s1920_s0 + $0x68] sm:$0xff]  ;;  %s1274_s23 = sld [smem:[#allocation7 + $0x3]]  ;;  %s1374_s25 = sld [smem:[#allocation5 + $0x4]] }
  0x2a   :  { %1950 = vst [vmem:[#allocation13_spill] sm:$0xff] %v1024_v13  ;;  %1951 = vst [vmem:[#allocation14_spill] sm:$0xff] %v1029_v14  ;;  %v1047_v20 = vld [vmem:[%s1920_s0 + $0x70] sm:$0xff]  ;;  %v1052_v21 = vld [vmem:[%s1920_s0 + $0x78] sm:$0xff]  ;;  %s1390_s26 = sld [smem:[#allocation7 + $0x4]]  ;;  %s1392_s2 = sld [smem:[#allocation3 + $0x5]] }
  0x2b   :  { %v82_v6 = vstv %s81_s3  ;;  %1952 = vst [vmem:[#allocation15_spill] sm:$0xff] %v1034_v15  ;;  %1953 = vst [vmem:[#allocation16_spill] sm:$0xff] %v1047_v20  ;;  %v1070_v37 = vstv %s972_s14  ;;  %s1168_s14 = sld [smem:[#allocation7 + $0x2]]  ;;  %s1406_s1 = sld [smem:[#allocation5 + $0x5]] }
  0x2c   :  { %v83_v17 = vmul.f32 %v82_v6, %v963_v1  ;;  %v84_v18 = vmul.f32 %v82_v6, %v968_v2  ;;  %v85_v19 = vmul.f32 %v82_v6, %v977_v3  ;;  %1954 = vst [vmem:[#allocation17_spill] sm:$0xff] %v1052_v21  ;;  %v86_v22 = vmul.f32 %v82_v6, %v982_v4  ;;  %s1545_s27 = sld [smem:[#allocation7 + $0x5]]  ;;  %s1560_s28 = sld [smem:[#allocation3 + $0x6]] }
  0x2d   :  { %v87_v23 = vmul.f32 %v82_v6, %v987_v5  ;;  %v88_v24 = vmul.f32 %v82_v6, %v994_v7  ;;  %v89_v25 = vmul.f32 %v82_v6, %v999_v8  ;;  %v90_v26 = vmul.f32 %v82_v6, %v1004_v9  ;;  %s1562_s29 = sld [smem:[#allocation5 + $0x6]]  ;;  %s1622_s6 = sld [smem:[#allocation3 + $0x7]] }
  0x2e   :  { %v91_v27 = vmul.f32 %v82_v6, %v1009_v10  ;;  %v92_v28 = vmul.f32 %v82_v6, %v1014_v11  ;;  %v100_v29 = vstv %s958_s8  ;;  %v93_v30 = vmul.f32 %v82_v6, %v1019_v12  ;;  %s1160_s8 = sld [smem:[#allocation3 + $0x2]]  ;;  %s1568_s30 = sld [smem:[#allocation7 + $0x6]] }
  0x2f   :  { %v94_v31 = vmul.f32 %v82_v6, %v1024_v13  ;;  %v95_v32 = vmul.f32 %v82_v6, %v1029_v14  ;;  %v96_v33 = vmul.f32 %v82_v6, %v1034_v15  ;;  %v97_v34 = vmul.f32 %v82_v6, %v1047_v20 }
  0x30   :  { %v98_v35 = vmul.f32 %v82_v6, %v1052_v21  ;;  %v134_v36 = vstv %s970_s13  ;;  %v101_v38 = vadd.f32 %v100_v29, %v83_v17  ;;  %v102_v39 = vadd.f32 %v100_v29, %v84_v18  ;;  %s1162_s13 = sld [smem:[#allocation5 + $0x2]] }
  0x31   :  { %v103_v40 = vadd.f32 %v100_v29, %v85_v19  ;;  %v1073_v41 = vstv %s989_s21  ;;  %v104_v42 = vadd.f32 %v100_v29, %v86_v22  ;;  %v105_v43 = vadd.f32 %v100_v29, %v87_v23  ;;  %s1267_s21 = sld [smem:[#allocation3 + $0x3]] }
  0x32   :  { %v106_v44 = vadd.f32 %v100_v29, %v88_v24  ;;  %v107_v45 = vadd.f32 %v100_v29, %v89_v25  ;;  %v108_v46 = vadd.f32 %v100_v29, %v90_v26  ;;  %v109_v47 = vadd.f32 %v100_v29, %v91_v27 }
  0x33   :  { %v110_v48 = vadd.f32 %v100_v29, %v92_v28  ;;  %v111_v49 = vadd.f32 %v100_v29, %v93_v30  ;;  %v112_v50 = vadd.f32 %v100_v29, %v94_v31  ;;  %v113_v51 = vadd.f32 %v100_v29, %v95_v32 }
  0x34   :  { %v114_v52 = vadd.f32 %v100_v29, %v96_v33  ;;  %v115_v53 = vadd.f32 %v100_v29, %v97_v34  ;;  %v116_v54 = vadd.f32 %v100_v29, %v98_v35  ;;  %v117_v55 = vmax.f32 %v101_v38, 0.0 }
  0x35   :  { %v118_v56 = vmax.f32 %v102_v39, 0.0  ;;  %v119_v57 = vmax.f32 %v103_v40, 0.0  ;;  %v120_v58 = vmax.f32 %v104_v42, 0.0  ;;  %v121_v59 = vmax.f32 %v105_v43, 0.0 }
  0x36   :  { %v122_v60 = vmax.f32 %v106_v44, 0.0  ;;  %v123_v61 = vmax.f32 %v107_v45, 0.0  ;;  %v124_v62 = vmax.f32 %v108_v46, 0.0  ;;  %v125_v63 = vmax.f32 %v109_v47, 0.0 }
  0x37   :  { %v126_v0 = vmax.f32 %v110_v48, 0.0  ;;  %v127_v6 = vmax.f32 %v111_v49, 0.0  ;;  %v128_v17 = vmax.f32 %v112_v50, 0.0  ;;  %v129_v18 = vmax.f32 %v113_v51, 0.0 }
  0x38   :  { %v130_v19 = vmax.f32 %v114_v52, 0.0  ;;  %v131_v22 = vmax.f32 %v115_v53, 0.0  ;;  %v132_v23 = vmax.f32 %v116_v54, 0.0  ;;  %v135_v24 = vmul.f32 %v134_v36, %v117_v55 }
  0x39   :  { %v136_v25 = vmul.f32 %v134_v36, %v118_v56  ;;  %v137_v26 = vmul.f32 %v134_v36, %v119_v57  ;;  %v138_v27 = vmul.f32 %v134_v36, %v120_v58  ;;  %v139_v28 = vmul.f32 %v134_v36, %v121_v59 }
  0x3a   :  { %v140_v29 = vmul.f32 %v134_v36, %v122_v60  ;;  %v141_v30 = vmul.f32 %v134_v36, %v123_v61  ;;  %v142_v31 = vmul.f32 %v134_v36, %v124_v62  ;;  %v143_v32 = vmul.f32 %v134_v36, %v125_v63 }
  0x3b   :  { %v144_v33 = vmul.f32 %v134_v36, %v126_v0  ;;  %v145_v34 = vmul.f32 %v134_v36, %v127_v6  ;;  %v146_v35 = vmul.f32 %v134_v36, %v128_v17  ;;  %v147_v38 = vmul.f32 %v134_v36, %v129_v18 }
  0x3c   :  { %v148_v39 = vmul.f32 %v134_v36, %v130_v19  ;;  %v149_v40 = vmul.f32 %v134_v36, %v131_v22  ;;  %v150_v42 = vmul.f32 %v134_v36, %v132_v23  ;;  %v1076_v43 = vadd.f32 %v135_v24, %v1039_v16 }
  0x3d   :  { %v1079_v44 = vadd.f32 %v136_v25, %v1039_v16  ;;  %v1082_v45 = vadd.f32 %v137_v26, %v1039_v16  ;;  %v1085_v46 = vadd.f32 %v138_v27, %v1039_v16  ;;  %v1088_v47 = vadd.f32 %v139_v28, %v1039_v16 }
  0x3e   :  { %v1091_v48 = vadd.f32 %v140_v29, %v1039_v16  ;;  %v1094_v36 = vadd.f32 %v141_v30, %v1039_v16  ;;  %v1097_v49 = vadd.f32 %v142_v31, %v1039_v16  ;;  %v1100_v50 = vadd.f32 %v143_v32, %v1039_v16 }
  0x3f   :  { %v1103_v51 = vadd.f32 %v144_v33, %v1039_v16  ;;  %v1106_v52 = vadd.f32 %v145_v34, %v1039_v16  ;;  %v1109_v53 = vadd.f32 %v146_v35, %v1039_v16  ;;  %v1112_v54 = vadd.f32 %v147_v38, %v1039_v16 }
  0x40   :  { %v1115_v55 = vadd.f32 %v148_v39, %v1039_v16  ;;  %v1118_v56 = vadd.f32 %v149_v40, %v1039_v16  ;;  %v1121_v57 = vadd.f32 %v150_v42, %v1039_v16  ;;  %v169_v58 = vmul.f32 %v1070_v37, %v963_v1 }
  0x41   :  { %v170_v59 = vmul.f32 %v1070_v37, %v968_v2  ;;  %v171_v60 = vmul.f32 %v1070_v37, %v977_v3  ;;  %v172_v61 = vmul.f32 %v1070_v37, %v982_v4  ;;  %v173_v62 = vmul.f32 %v1070_v37, %v987_v5 }
  0x42   :  { %v174_v63 = vmul.f32 %v1070_v37, %v994_v7  ;;  %v175_v16 = vmul.f32 %v1070_v37, %v999_v8  ;;  %v176_v0 = vmul.f32 %v1070_v37, %v1004_v9  ;;  %v177_v6 = vmul.f32 %v1070_v37, %v1009_v10 }
  0x43   :  { %v178_v17 = vmul.f32 %v1070_v37, %v1014_v11  ;;  %v179_v18 = vmul.f32 %v1070_v37, %v1019_v12  ;;  %v180_v19 = vmul.f32 %v1070_v37, %v1024_v13  ;;  %v181_v22 = vmul.f32 %v1070_v37, %v1029_v14 }
  0x44   :  { %v182_v23 = vmul.f32 %v1070_v37, %v1034_v15  ;;  %v183_v24 = vmul.f32 %v1070_v37, %v1047_v20  ;;  %v184_v25 = vmul.f32 %v1070_v37, %v1052_v21  ;;  %v187_v26 = vadd.f32 %v1073_v41, %v169_v58 }
  0x45   :  { %v188_v27 = vadd.f32 %v1073_v41, %v170_v59  ;;  %v189_v28 = vadd.f32 %v1073_v41, %v171_v60  ;;  %v190_v29 = vadd.f32 %v1073_v41, %v172_v61  ;;  %v191_v30 = vadd.f32 %v1073_v41, %v173_v62 }
  0x46   :  { %v192_v31 = vadd.f32 %v1073_v41, %v174_v63  ;;  %v193_v32 = vadd.f32 %v1073_v41, %v175_v16  ;;  %v194_v37 = vadd.f32 %v1073_v41, %v176_v0  ;;  %v195_v33 = vadd.f32 %v1073_v41, %v177_v6 }
  0x47   :  { %v196_v34 = vadd.f32 %v1073_v41, %v178_v17  ;;  %v197_v35 = vadd.f32 %v1073_v41, %v179_v18  ;;  %v198_v38 = vadd.f32 %v1073_v41, %v180_v19  ;;  %v199_v39 = vadd.f32 %v1073_v41, %v181_v22 }
  0x48   :  { %v200_v40 = vadd.f32 %v1073_v41, %v182_v23  ;;  %v201_v42 = vadd.f32 %v1073_v41, %v183_v24  ;;  %v202_v58 = vadd.f32 %v1073_v41, %v184_v25  ;;  %v203_v59 = vmax.f32 %v187_v26, 0.0 }
  0x49   :  { %v204_v60 = vmax.f32 %v188_v27, 0.0  ;;  %v205_v61 = vmax.f32 %v189_v28, 0.0  ;;  %v206_v62 = vmax.f32 %v190_v29, 0.0  ;;  %v207_v63 = vmax.f32 %v191_v30, 0.0 }
  0x4a   :  { %v208_v16 = vmax.f32 %v192_v31, 0.0  ;;  %v209_v0 = vmax.f32 %v193_v32, 0.0  ;;  %v210_v6 = vmax.f32 %v194_v37, 0.0  ;;  %v211_v17 = vmax.f32 %v195_v33, 0.0 }
  0x4b   :  { %v212_v18 = vmax.f32 %v196_v34, 0.0  ;;  %v220_v19 = vstv %s1145_s4  ;;  %v213_v22 = vmax.f32 %v197_v35, 0.0  ;;  %v214_v23 = vmax.f32 %v198_v38, 0.0 }
  0x4c   :  { %v215_v21 = vmax.f32 %v199_v39, 0.0  ;;  %v216_v24 = vmax.f32 %v200_v40, 0.0  ;;  %v217_v20 = vmax.f32 %v201_v42, 0.0  ;;  %v218_v41 = vmax.f32 %v202_v58, 0.0 }
  0x4d   :  { %v254_v25 = vstv %s1160_s8  ;;  %v1182_v26 = vstv %s1162_s13  ;;  %v221_v27 = vmul.f32 %v220_v19, %v203_v59  ;;  %v222_v28 = vmul.f32 %v220_v19, %v204_v60 }
  0x4e   :  { %1955 = vst [vmem:[#allocation18_spill] sm:$0xff] %v1182_v26  ;;  %v223_v29 = vmul.f32 %v220_v19, %v205_v61  ;;  %v1185_v30 = vstv %s1168_s14  ;;  %v224_v31 = vmul.f32 %v220_v19, %v206_v62  ;;  %v225_v32 = vmul.f32 %v220_v19, %v207_v63 }
  0x4f   :  { %v226_v37 = vmul.f32 %v220_v19, %v208_v16  ;;  %v227_v33 = vmul.f32 %v220_v19, %v209_v0  ;;  %v228_v34 = vmul.f32 %v220_v19, %v210_v6  ;;  %v229_v15 = vmul.f32 %v220_v19, %v211_v17  ;;  %v1956_v6 = vld [vmem:[#allocation14_spill] sm:$0xff] }
  0x50   :  { %v230_v35 = vmul.f32 %v220_v19, %v212_v18  ;;  %v231_v38 = vmul.f32 %v220_v19, %v213_v22  ;;  %v232_v39 = vmul.f32 %v220_v19, %v214_v23  ;;  %v233_v40 = vmul.f32 %v220_v19, %v215_v21  ;;  %v1957_v18 = vld [vmem:[#allocation15_spill] sm:$0xff]  ;;  %v1958_v22 = vld [vmem:[#allocation16_spill] sm:$0xff] }
  0x51   :  { %v234_v42 = vmul.f32 %v220_v19, %v216_v24  ;;  %v235_v58 = vmul.f32 %v220_v19, %v217_v20  ;;  %v236_v14 = vmul.f32 %v220_v19, %v218_v41  ;;  %v1188_v26 = vadd.f32 %v221_v27, %v1076_v43  ;;  %v1959_v24 = vld [vmem:[#allocation17_spill] sm:$0xff] }
  0x52   :  { %v1191_v59 = vadd.f32 %v222_v28, %v1079_v44  ;;  %v1194_v60 = vadd.f32 %v223_v29, %v1082_v45  ;;  %v1197_v61 = vadd.f32 %v224_v31, %v1085_v46  ;;  %v1200_v62 = vadd.f32 %v225_v32, %v1088_v47 }
  0x53   :  { %v1203_v21 = vadd.f32 %v226_v37, %v1091_v48  ;;  %v1206_v20 = vadd.f32 %v227_v33, %v1094_v36  ;;  %v1209_v43 = vadd.f32 %v228_v34, %v1097_v49  ;;  %v1212_v44 = vadd.f32 %v229_v15, %v1100_v50 }
  0x54   :  { %v1215_v45 = vadd.f32 %v230_v35, %v1103_v51  ;;  %v1218_v46 = vadd.f32 %v231_v38, %v1106_v52  ;;  %v1221_v47 = vadd.f32 %v232_v39, %v1109_v53  ;;  %v1224_v48 = vadd.f32 %v233_v40, %v1112_v54 }
  0x55   :  { %v1227_v36 = vadd.f32 %v234_v42, %v1115_v55  ;;  %v1230_v49 = vadd.f32 %v235_v58, %v1118_v56  ;;  %v1233_v15 = vadd.f32 %v236_v14, %v1121_v57  ;;  %v255_v50 = vmul.f32 %v254_v25, %v963_v1  ;;  %v1960_v27 = vld [vmem:[#allocation18_spill] sm:$0xff] }
  0x56   :  { %v256_v51 = vmul.f32 %v254_v25, %v968_v2  ;;  %v257_v52 = vmul.f32 %v254_v25, %v977_v3  ;;  %v258_v53 = vmul.f32 %v254_v25, %v982_v4  ;;  %v259_v54 = vmul.f32 %v254_v25, %v987_v5 }
  0x57   :  { %v260_v63 = vmul.f32 %v254_v25, %v994_v7  ;;  %v261_v55 = vmul.f32 %v254_v25, %v999_v8  ;;  %v262_v56 = vmul.f32 %v254_v25, %v1004_v9  ;;  %v263_v16 = vmul.f32 %v254_v25, %v1009_v10 }
  0x58   :  { %v264_v14 = vmul.f32 %v254_v25, %v1014_v11  ;;  %v265_v57 = vmul.f32 %v254_v25, %v1019_v12  ;;  %v266_v0 = vmul.f32 %v254_v25, %v1024_v13  ;;  %v267_v17 = vmul.f32 %v254_v25, %v1956_v6 }
  0x59   :  { %v268_v19 = vmul.f32 %v254_v25, %v1957_v18  ;;  %v269_v23 = vmul.f32 %v254_v25, %v1958_v22  ;;  %v270_v41 = vmul.f32 %v254_v25, %v1959_v24  ;;  %v273_v28 = vadd.f32 %v1960_v27, %v255_v50 }
  0x5a   :  { %v274_v29 = vadd.f32 %v1960_v27, %v256_v51  ;;  %v275_v31 = vadd.f32 %v1960_v27, %v257_v52  ;;  %v276_v32 = vadd.f32 %v1960_v27, %v258_v53  ;;  %v277_v37 = vadd.f32 %v1960_v27, %v259_v54 }
  0x5b   :  { %v278_v33 = vadd.f32 %v1960_v27, %v260_v63  ;;  %v279_v34 = vadd.f32 %v1960_v27, %v261_v55  ;;  %v280_v35 = vadd.f32 %v1960_v27, %v262_v56  ;;  %v281_v38 = vadd.f32 %v1960_v27, %v263_v16 }
  0x5c   :  { %v282_v25 = vadd.f32 %v1960_v27, %v264_v14  ;;  %v283_v39 = vadd.f32 %v1960_v27, %v265_v57  ;;  %v284_v40 = vadd.f32 %v1960_v27, %v266_v0  ;;  %v285_v42 = vadd.f32 %v1960_v27, %v267_v17 }
  0x5d   :  { %v286_v58 = vadd.f32 %v1960_v27, %v268_v19  ;;  %v287_v50 = vadd.f32 %v1960_v27, %v269_v23  ;;  %v288_v51 = vadd.f32 %v1960_v27, %v270_v41  ;;  %v289_v52 = vmax.f32 %v273_v28, 0.0 }
  0x5e   :  { %v290_v53 = vmax.f32 %v274_v29, 0.0  ;;  %v291_v54 = vmax.f32 %v275_v31, 0.0  ;;  %v292_v63 = vmax.f32 %v276_v32, 0.0  ;;  %v293_v55 = vmax.f32 %v277_v37, 0.0 }
  0x5f   :  { %v294_v56 = vmax.f32 %v278_v33, 0.0  ;;  %v295_v16 = vmax.f32 %v279_v34, 0.0  ;;  %v296_v14 = vmax.f32 %v280_v35, 0.0  ;;  %v297_v24 = vmax.f32 %v281_v38, 0.0 }
  0x60   :  { %v298_v57 = vmax.f32 %v282_v25, 0.0  ;;  %v299_v22 = vmax.f32 %v283_v39, 0.0  ;;  %v300_v0 = vmax.f32 %v284_v40, 0.0  ;;  %v301_v17 = vmax.f32 %v285_v42, 0.0 }
  0x61   :  { %v302_v19 = vmax.f32 %v286_v58, 0.0  ;;  %v303_v18 = vmax.f32 %v287_v50, 0.0  ;;  %v304_v23 = vmax.f32 %v288_v51, 0.0  ;;  %v307_v41 = vmul.f32 %v1185_v30, %v289_v52 }
  0x62   :  { %v308_v27 = vmul.f32 %v1185_v30, %v290_v53  ;;  %v309_v28 = vmul.f32 %v1185_v30, %v291_v54  ;;  %v310_v29 = vmul.f32 %v1185_v30, %v292_v63  ;;  %v311_v31 = vmul.f32 %v1185_v30, %v293_v55 }
  0x63   :  { %v312_v32 = vmul.f32 %v1185_v30, %v294_v56  ;;  %v313_v37 = vmul.f32 %v1185_v30, %v295_v16  ;;  %v314_v33 = vmul.f32 %v1185_v30, %v296_v14  ;;  %v315_v34 = vmul.f32 %v1185_v30, %v297_v24 }
  0x64   :  { %v316_v35 = vmul.f32 %v1185_v30, %v298_v57  ;;  %v317_v38 = vmul.f32 %v1185_v30, %v299_v22  ;;  %v318_v25 = vmul.f32 %v1185_v30, %v300_v0  ;;  %v319_v39 = vmul.f32 %v1185_v30, %v301_v17 }
  0x65   :  { %v320_v40 = vmul.f32 %v1185_v30, %v302_v19  ;;  %v321_v42 = vmul.f32 %v1185_v30, %v303_v18  ;;  %v322_v58 = vmul.f32 %v1185_v30, %v304_v23  ;;  %v1292_v50 = vadd.f32 %v307_v41, %v1188_v26  ;;  %v1961_v19 = vld [vmem:[#allocation15_spill] sm:$0xff]  ;;  %v1962_v41 = vld [vmem:[#allocation16_spill] sm:$0xff] }
  0x66   :  { %v1295_v24 = vadd.f32 %v308_v27, %v1191_v59  ;;  %v1298_v22 = vadd.f32 %v309_v28, %v1194_v60  ;;  %v1301_v51 = vadd.f32 %v310_v29, %v1197_v61  ;;  %v1304_v52 = vadd.f32 %v311_v31, %v1200_v62  ;;  %v1963_v28 = vld [vmem:[#allocation17_spill] sm:$0xff] }
  0x67   :  { %v1307_v18 = vadd.f32 %v312_v32, %v1203_v21  ;;  %v1310_v26 = vadd.f32 %v313_v37, %v1206_v20  ;;  %v1313_v30 = vadd.f32 %v314_v33, %v1209_v43  ;;  %v1316_v59 = vadd.f32 %v315_v34, %v1212_v44 }
  0x68   :  { %v1319_v60 = vadd.f32 %v316_v35, %v1215_v45  ;;  %v340_v61 = vstv %s1267_s21  ;;  %v1323_v62 = vadd.f32 %v317_v38, %v1218_v46  ;;  %v1326_v21 = vadd.f32 %v318_v25, %v1221_v47 }
  0x69   :  { %v1329_v20 = vadd.f32 %v319_v39, %v1224_v48  ;;  %v1332_v53 = vadd.f32 %v320_v40, %v1227_v36  ;;  %v1335_v43 = vadd.f32 %v321_v42, %v1230_v49  ;;  %v1338_v44 = vadd.f32 %v322_v58, %v1233_v15 }
  0x6a   :  { %v358_v45 = vstv %s1272_s22  ;;  %v1342_v54 = vstv %s1274_s23  ;;  %v341_v46 = vmul.f32 %v340_v61, %v963_v1  ;;  %v342_v47 = vmul.f32 %v340_v61, %v968_v2 }
  0x6b   :  { %v343_v63 = vmul.f32 %v340_v61, %v977_v3  ;;  %v1348_v48 = vstv %s1280_s24  ;;  %v344_v36 = vmul.f32 %v340_v61, %v982_v4  ;;  %v345_v55 = vmul.f32 %v340_v61, %v987_v5 }
  0x6c   :  { %v346_v49 = vmul.f32 %v340_v61, %v994_v7  ;;  %v347_v15 = vmul.f32 %v340_v61, %v999_v8  ;;  %v348_v56 = vmul.f32 %v340_v61, %v1004_v9  ;;  %v349_v16 = vmul.f32 %v340_v61, %v1009_v10 }
  0x6d   :  { %v350_v14 = vmul.f32 %v340_v61, %v1014_v11  ;;  %v351_v57 = vmul.f32 %v340_v61, %v1019_v12  ;;  %v352_v0 = vmul.f32 %v340_v61, %v1024_v13  ;;  %v353_v17 = vmul.f32 %v340_v61, %v1956_v6 }
  0x6e   :  { %v354_v23 = vmul.f32 %v340_v61, %v1961_v19  ;;  %v355_v27 = vmul.f32 %v340_v61, %v1962_v41  ;;  %v356_v29 = vmul.f32 %v340_v61, %v1963_v28  ;;  %v359_v31 = vadd.f32 %v358_v45, %v341_v46 }
  0x6f   :  { %v360_v32 = vadd.f32 %v358_v45, %v342_v47  ;;  %v361_v37 = vadd.f32 %v358_v45, %v343_v63  ;;  %v362_v33 = vadd.f32 %v358_v45, %v344_v36  ;;  %v363_v34 = vadd.f32 %v358_v45, %v345_v55 }
  0x70   :  { %v364_v35 = vadd.f32 %v358_v45, %v346_v49  ;;  %v365_v38 = vadd.f32 %v358_v45, %v347_v15  ;;  %v366_v25 = vadd.f32 %v358_v45, %v348_v56  ;;  %v367_v39 = vadd.f32 %v358_v45, %v349_v16 }
  0x71   :  { %v368_v40 = vadd.f32 %v358_v45, %v350_v14  ;;  %v369_v42 = vadd.f32 %v358_v45, %v351_v57  ;;  %v370_v58 = vadd.f32 %v358_v45, %v352_v0  ;;  %v371_v13 = vadd.f32 %v358_v45, %v353_v17 }
  0x72   :  { %v372_v6 = vadd.f32 %v358_v45, %v354_v23  ;;  %v373_v12 = vadd.f32 %v358_v45, %v355_v27  ;;  %v374_v19 = vadd.f32 %v358_v45, %v356_v29  ;;  %v375_v11 = vmax.f32 %v359_v31, 0.0 }
  0x73   :  { %v376_v41 = vmax.f32 %v360_v32, 0.0  ;;  %v377_v10 = vmax.f32 %v361_v37, 0.0  ;;  %v378_v61 = vmax.f32 %v362_v33, 0.0  ;;  %v379_v46 = vmax.f32 %v363_v34, 0.0 }
  0x74   :  { %v380_v47 = vmax.f32 %v364_v35, 0.0  ;;  %v381_v63 = vmax.f32 %v365_v38, 0.0  ;;  %v382_v36 = vmax.f32 %v366_v25, 0.0  ;;  %v383_v55 = vmax.f32 %v367_v39, 0.0 }
  0x75   :  { %v384_v49 = vmax.f32 %v368_v40, 0.0  ;;  %v385_v15 = vmax.f32 %v369_v42, 0.0  ;;  %v386_v56 = vmax.f32 %v370_v58, 0.0  ;;  %v387_v16 = vmax.f32 %v371_v13, 0.0  ;;  %v1964_v58 = vld [vmem:[#allocation10_spill] sm:$0xff] }
  0x76   :  { %v388_v14 = vmax.f32 %v372_v6, 0.0  ;;  %v389_v57 = vmax.f32 %v373_v12, 0.0  ;;  %v390_v0 = vmax.f32 %v374_v19, 0.0  ;;  %v393_v17 = vmul.f32 %v1342_v54, %v375_v11 }
  0x77   :  { %v394_v45 = vmul.f32 %v1342_v54, %v376_v41  ;;  %v395_v23 = vmul.f32 %v1342_v54, %v377_v10  ;;  %v396_v27 = vmul.f32 %v1342_v54, %v378_v61  ;;  %v397_v29 = vmul.f32 %v1342_v54, %v379_v46  ;;  %v1965_v46 = vld [vmem:[#allocation11_spill] sm:$0xff] }
  0x78   :  { %v398_v31 = vmul.f32 %v1342_v54, %v380_v47  ;;  %v399_v32 = vmul.f32 %v1342_v54, %v381_v63  ;;  %v400_v37 = vmul.f32 %v1342_v54, %v382_v36  ;;  %v401_v13 = vmul.f32 %v1342_v54, %v383_v55  ;;  %v1966_v36 = vld [vmem:[#allocation12_spill] sm:$0xff] }
  0x79   :  { %v402_v12 = vmul.f32 %v1342_v54, %v384_v49  ;;  %v403_v11 = vmul.f32 %v1342_v54, %v385_v15  ;;  %v404_v10 = vmul.f32 %v1342_v54, %v386_v56  ;;  %v405_v6 = vmul.f32 %v1342_v54, %v387_v16  ;;  %v1967_v49 = vld [vmem:[#allocation13_spill] sm:$0xff]  ;;  %v1968_v56 = vld [vmem:[#allocation14_spill] sm:$0xff] }
  0x7a   :  { %v406_v19 = vmul.f32 %v1342_v54, %v388_v14  ;;  %v407_v41 = vmul.f32 %v1342_v54, %v389_v57  ;;  %v408_v33 = vmul.f32 %v1342_v54, %v390_v0  ;;  %v1382_v34 = vadd.f32 %v393_v17, %v1292_v50  ;;  %v1969_v14 = vld [vmem:[#allocation15_spill] sm:$0xff]  ;;  %v1970_v0 = vld [vmem:[#allocation16_spill] sm:$0xff] }
  0x7b   :  { %v1385_v35 = vadd.f32 %v394_v45, %v1295_v24  ;;  %v1388_v38 = vadd.f32 %v395_v23, %v1298_v22  ;;  %v1395_v25 = vadd.f32 %v396_v27, %v1301_v51  ;;  %v1398_v39 = vadd.f32 %v397_v29, %v1304_v52 }
  0x7c   :  { %v1401_v54 = vadd.f32 %v398_v31, %v1307_v18  ;;  %v1404_v50 = vadd.f32 %v399_v32, %v1310_v26  ;;  %v1409_v24 = vadd.f32 %v400_v37, %v1313_v30  ;;  %v1412_v22 = vadd.f32 %v401_v13, %v1316_v59 }
  0x7d   :  { %v1415_v51 = vadd.f32 %v402_v12, %v1319_v60  ;;  %v1418_v52 = vadd.f32 %v403_v11, %v1323_v62  ;;  %v1421_v18 = vadd.f32 %v404_v10, %v1326_v21  ;;  %v1424_v26 = vadd.f32 %v405_v6, %v1329_v20 }
  0x7e   :  { %v1427_v40 = vadd.f32 %v406_v19, %v1332_v53  ;;  %v1430_v30 = vadd.f32 %v407_v41, %v1335_v43  ;;  %v1433_v59 = vadd.f32 %v408_v33, %v1338_v44  ;;  %v427_v60 = vmul.f32 %v1348_v48, %v963_v1 }
  0x7f   :  { %v428_v62 = vmul.f32 %v1348_v48, %v968_v2  ;;  %v429_v21 = vmul.f32 %v1348_v48, %v977_v3  ;;  %v430_v20 = vmul.f32 %v1348_v48, %v982_v4  ;;  %v431_v53 = vmul.f32 %v1348_v48, %v987_v5 }
  0x80   :  { %v432_v43 = vmul.f32 %v1348_v48, %v994_v7  ;;  %v433_v44 = vmul.f32 %v1348_v48, %v999_v8  ;;  %v434_v42 = vmul.f32 %v1348_v48, %v1004_v9  ;;  %v435_v61 = vmul.f32 %v1348_v48, %v1964_v58 }
  0x81   :  { %v436_v47 = vmul.f32 %v1348_v48, %v1965_v46  ;;  %v444_v63 = vstv %s1374_s25  ;;  %v437_v55 = vmul.f32 %v1348_v48, %v1966_v36  ;;  %v438_v15 = vmul.f32 %v1348_v48, %v1967_v49 }
  0x82   :  { %v439_v16 = vmul.f32 %v1348_v48, %v1968_v56  ;;  %v440_v57 = vmul.f32 %v1348_v48, %v1969_v14  ;;  %v441_v17 = vmul.f32 %v1348_v48, %v1970_v0  ;;  %v442_v45 = vmul.f32 %v1348_v48, %v1963_v28 }
  0x83   :  { %v478_v23 = vstv %s1390_s26  ;;  %v1470_v27 = vstv %s1392_s2  ;;  %v445_v29 = vadd.f32 %v444_v63, %v427_v60  ;;  %v446_v31 = vadd.f32 %v444_v63, %v428_v62  ;;  %s1716_s2 = sld [smem:[#allocation5 + $0x7]] }
  0x84   :  { %v447_v32 = vadd.f32 %v444_v63, %v429_v21  ;;  %v1473_v37 = vstv %s1406_s1  ;;  %v448_v13 = vadd.f32 %v444_v63, %v430_v20  ;;  %v449_v12 = vadd.f32 %v444_v63, %v431_v53 }
  0x85   :  { %1971 = vst [vmem:[#allocation18_spill] sm:$0xff] %v1473_v37  ;;  %v450_v11 = vadd.f32 %v444_v63, %v432_v43  ;;  %v451_v10 = vadd.f32 %v444_v63, %v433_v44  ;;  %v452_v6 = vadd.f32 %v444_v63, %v434_v42  ;;  %v453_v19 = vadd.f32 %v444_v63, %v435_v61 }
  0x86   :  { %v454_v41 = vadd.f32 %v444_v63, %v436_v47  ;;  %v455_v33 = vadd.f32 %v444_v63, %v437_v55  ;;  %v456_v0 = vadd.f32 %v444_v63, %v438_v15  ;;  %v457_v14 = vadd.f32 %v444_v63, %v439_v16 }
  0x87   :  { %v458_v56 = vadd.f32 %v444_v63, %v440_v57  ;;  %v459_v48 = vadd.f32 %v444_v63, %v441_v17  ;;  %v460_v28 = vadd.f32 %v444_v63, %v442_v45  ;;  %v461_v49 = vmax.f32 %v445_v29, 0.0 }
  0x88   :  { %v462_v36 = vmax.f32 %v446_v31, 0.0  ;;  %v463_v60 = vmax.f32 %v447_v32, 0.0  ;;  %v464_v62 = vmax.f32 %v448_v13, 0.0  ;;  %v465_v21 = vmax.f32 %v449_v12, 0.0 }
  0x89   :  { %v466_v46 = vmax.f32 %v450_v11, 0.0  ;;  %v467_v37 = vmax.f32 %v451_v10, 0.0  ;;  %v468_v20 = vmax.f32 %v452_v6, 0.0  ;;  %v469_v53 = vmax.f32 %v453_v19, 0.0 }
  0x8a   :  { %v470_v43 = vmax.f32 %v454_v41, 0.0  ;;  %v471_v44 = vmax.f32 %v455_v33, 0.0  ;;  %v472_v42 = vmax.f32 %v456_v0, 0.0  ;;  %v473_v61 = vmax.f32 %v457_v14, 0.0  ;;  %v1973_v33 = vld [vmem:[#allocation12_spill] sm:$0xff] }
  0x8b   :  { %v474_v47 = vmax.f32 %v458_v56, 0.0  ;;  %v475_v55 = vmax.f32 %v459_v48, 0.0  ;;  %v476_v15 = vmax.f32 %v460_v28, 0.0  ;;  %v479_v16 = vmul.f32 %v478_v23, %v461_v49  ;;  %v1975_v48 = vld [vmem:[#allocation14_spill] sm:$0xff] }
  0x8c   :  { %v480_v57 = vmul.f32 %v478_v23, %v462_v36  ;;  %v481_v17 = vmul.f32 %v478_v23, %v463_v60  ;;  %v482_v63 = vmul.f32 %v478_v23, %v464_v62  ;;  %v483_v45 = vmul.f32 %v478_v23, %v465_v21  ;;  %v1976_v60 = vld [vmem:[#allocation15_spill] sm:$0xff]  ;;  %v1977_v62 = vld [vmem:[#allocation16_spill] sm:$0xff]  ;;  %v1978_v21 = vld [vmem:[#allocation17_spill] sm:$0xff] }
  0x8d   :  { %v484_v29 = vmul.f32 %v478_v23, %v466_v46  ;;  %v485_v31 = vmul.f32 %v478_v23, %v467_v37  ;;  %v486_v32 = vmul.f32 %v478_v23, %v468_v20  ;;  %v487_v13 = vmul.f32 %v478_v23, %v469_v53  ;;  %v1972_v37 = vld [vmem:[#allocation11_spill] sm:$0xff]  ;;  %v1979_v53 = vld [vmem:[#allocation18_spill] sm:$0xff] }
  0x8e   :  { %v488_v12 = vmul.f32 %v478_v23, %v470_v43  ;;  %v489_v11 = vmul.f32 %v478_v23, %v471_v44  ;;  %v490_v10 = vmul.f32 %v478_v23, %v472_v42  ;;  %v491_v6 = vmul.f32 %v478_v23, %v473_v61 }
  0x8f   :  { %v492_v19 = vmul.f32 %v478_v23, %v474_v47  ;;  %v493_v41 = vmul.f32 %v478_v23, %v475_v55  ;;  %v494_v0 = vmul.f32 %v478_v23, %v476_v15  ;;  %v1476_v56 = vadd.f32 %v479_v16, %v1382_v34 }
  0x90   :  { %v1479_v28 = vadd.f32 %v480_v57, %v1385_v35  ;;  %v1482_v36 = vadd.f32 %v481_v17, %v1388_v38  ;;  %v1485_v46 = vadd.f32 %v482_v63, %v1395_v25  ;;  %v1488_v49 = vadd.f32 %v483_v45, %v1398_v39 }
  0x91   :  { %v1491_v14 = vadd.f32 %v484_v29, %v1401_v54  ;;  %v1494_v23 = vadd.f32 %v485_v31, %v1404_v50  ;;  %v1497_v34 = vadd.f32 %v486_v32, %v1409_v24  ;;  %v1500_v35 = vadd.f32 %v487_v13, %v1412_v22 }
  0x92   :  { %v1503_v38 = vadd.f32 %v488_v12, %v1415_v51  ;;  %v1506_v25 = vadd.f32 %v489_v11, %v1418_v52  ;;  %v1509_v39 = vadd.f32 %v490_v10, %v1421_v18  ;;  %v1512_v54 = vadd.f32 %v491_v6, %v1424_v26 }
  0x93   :  { %v1515_v50 = vadd.f32 %v492_v19, %v1427_v40  ;;  %v1518_v24 = vadd.f32 %v493_v41, %v1430_v30  ;;  %v1521_v22 = vadd.f32 %v494_v0, %v1433_v59  ;;  %v513_v51 = vmul.f32 %v1470_v27, %v963_v1 }
  0x94   :  { %v514_v52 = vmul.f32 %v1470_v27, %v968_v2  ;;  %v515_v18 = vmul.f32 %v1470_v27, %v977_v3  ;;  %v516_v26 = vmul.f32 %v1470_v27, %v982_v4  ;;  %v517_v40 = vmul.f32 %v1470_v27, %v987_v5  ;;  %v1974_v5 = vld [vmem:[#allocation13_spill] sm:$0xff] }
  0x95   :  { %v518_v30 = vmul.f32 %v1470_v27, %v994_v7  ;;  %v519_v59 = vmul.f32 %v1470_v27, %v999_v8  ;;  %v520_v1 = vmul.f32 %v1470_v27, %v1004_v9  ;;  %v521_v2 = vmul.f32 %v1470_v27, %v1964_v58 }
  0x96   :  { %v522_v3 = vmul.f32 %v1470_v27, %v1972_v37  ;;  %v523_v4 = vmul.f32 %v1470_v27, %v1973_v33  ;;  %v524_v7 = vmul.f32 %v1470_v27, %v1974_v5  ;;  %v525_v8 = vmul.f32 %v1470_v27, %v1975_v48 }
  0x97   :  { %v526_v9 = vmul.f32 %v1470_v27, %v1976_v60  ;;  %v527_v58 = vmul.f32 %v1470_v27, %v1977_v62  ;;  %v528_v20 = vmul.f32 %v1470_v27, %v1978_v21  ;;  %v531_v43 = vadd.f32 %v1979_v53, %v513_v51 }
  0x98   :  { %v532_v44 = vadd.f32 %v1979_v53, %v514_v52  ;;  %v533_v42 = vadd.f32 %v1979_v53, %v515_v18  ;;  %v534_v61 = vadd.f32 %v1979_v53, %v516_v26  ;;  %v535_v47 = vadd.f32 %v1979_v53, %v517_v40 }
  0x99   :  { %v536_v55 = vadd.f32 %v1979_v53, %v518_v30  ;;  %v537_v15 = vadd.f32 %v1979_v53, %v519_v59  ;;  %v538_v27 = vadd.f32 %v1979_v53, %v520_v1  ;;  %v539_v16 = vadd.f32 %v1979_v53, %v521_v2 }
  0x9a   :  { %v540_v57 = vadd.f32 %v1979_v53, %v522_v3  ;;  %v541_v17 = vadd.f32 %v1979_v53, %v523_v4  ;;  %v542_v63 = vadd.f32 %v1979_v53, %v524_v7  ;;  %v543_v45 = vadd.f32 %v1979_v53, %v525_v8 }
  0x9b   :  { %v544_v29 = vadd.f32 %v1979_v53, %v526_v9  ;;  %v545_v31 = vadd.f32 %v1979_v53, %v527_v58  ;;  %v546_v32 = vadd.f32 %v1979_v53, %v528_v20  ;;  %v547_v13 = vmax.f32 %v531_v43, 0.0 }
  0x9c   :  { %v548_v12 = vmax.f32 %v532_v44, 0.0  ;;  %v549_v11 = vmax.f32 %v533_v42, 0.0  ;;  %v550_v10 = vmax.f32 %v534_v61, 0.0  ;;  %v551_v6 = vmax.f32 %v535_v47, 0.0 }
  0x9d   :  { %v552_v19 = vmax.f32 %v536_v55, 0.0  ;;  %v553_v41 = vmax.f32 %v537_v15, 0.0  ;;  %v554_v0 = vmax.f32 %v538_v27, 0.0  ;;  %v555_v51 = vmax.f32 %v539_v16, 0.0 }
  0x9e   :  { %v556_v52 = vmax.f32 %v540_v57, 0.0  ;;  %v564_v18 = vstv %s1545_s27  ;;  %v557_v26 = vmax.f32 %v541_v17, 0.0  ;;  %v558_v40 = vmax.f32 %v542_v63, 0.0 }
  0x9f   :  { %v559_v30 = vmax.f32 %v543_v45, 0.0  ;;  %v560_v59 = vmax.f32 %v544_v29, 0.0  ;;  %v561_v1 = vmax.f32 %v545_v31, 0.0  ;;  %v562_v2 = vmax.f32 %v546_v32, 0.0  ;;  %v1670_v45 = vld [vmem:[%s1920_s0 + $0x20] sm:$0xff]  ;;  %v1677_v31 = vld [vmem:[%s1920_s0 + $0x28] sm:$0xff] }
  0xa0   :  { %v1581_v37 = vstv %s1560_s28  ;;  %v1584_v3 = vstv %s1562_s29  ;;  %v565_v33 = vmul.f32 %v564_v18, %v547_v13  ;;  %v566_v4 = vmul.f32 %v564_v18, %v548_v12  ;;  %v1684_v13 = vld [vmem:[%s1920_s0 + $0x30] sm:$0xff] }
  0xa1   :  { %v567_v5 = vmul.f32 %v564_v18, %v549_v11  ;;  %v1587_v7 = vstv %s1568_s30  ;;  %v568_v48 = vmul.f32 %v564_v18, %v550_v10  ;;  %v569_v8 = vmul.f32 %v564_v18, %v551_v6  ;;  %v1691_v11 = vld [vmem:[%s1920_s0 + $0x38] sm:$0xff]  ;;  %v1698_v6 = vld [vmem:[%s1920_s0 + $0x40] sm:$0xff] }
  0xa2   :  { %v570_v60 = vmul.f32 %v564_v18, %v552_v19  ;;  %v571_v9 = vmul.f32 %v564_v18, %v553_v41  ;;  %v572_v62 = vmul.f32 %v564_v18, %v554_v0  ;;  %v573_v58 = vmul.f32 %v564_v18, %v555_v51  ;;  %v1705_v41 = vld [vmem:[%s1920_s0 + $0x48] sm:$0xff]  ;;  %v1712_v51 = vld [vmem:[%s1920_s0 + $0x50] sm:$0xff] }
  0xa3   :  { %v574_v21 = vmul.f32 %v564_v18, %v556_v52  ;;  %v575_v20 = vmul.f32 %v564_v18, %v557_v26  ;;  %v576_v53 = vmul.f32 %v564_v18, %v558_v40  ;;  %v577_v43 = vmul.f32 %v564_v18, %v559_v30  ;;  %v1728_v40 = vld [vmem:[%s1920_s0 + $0x60] sm:$0xff] }
  0xa4   :  { %v578_v44 = vmul.f32 %v564_v18, %v560_v59  ;;  %v579_v42 = vmul.f32 %v564_v18, %v561_v1  ;;  %v580_v61 = vmul.f32 %v564_v18, %v562_v2  ;;  %v1590_v47 = vadd.f32 %v565_v33, %v1476_v56  ;;  %v1721_v18 = vld [vmem:[%s1920_s0 + $0x58] sm:$0xff]  ;;  %v1735_v59 = vld [vmem:[%s1920_s0 + $0x68] sm:$0xff]  ;;  %v1742_v2 = vld [vmem:[%s1920_s0 + $0x70] sm:$0xff] }
  0xa5   :  { %v1593_v55 = vadd.f32 %v566_v4, %v1479_v28  ;;  %v1596_v15 = vadd.f32 %v567_v5, %v1482_v36  ;;  %v1599_v27 = vadd.f32 %v568_v48, %v1485_v46  ;;  %v1602_v16 = vadd.f32 %v569_v8, %v1488_v49  ;;  %v1749_v4 = vld [vmem:[%s1920_s0 + $0x78] sm:$0xff] }
  0xa6   :  { %v1605_v57 = vadd.f32 %v570_v60, %v1491_v14  ;;  %v1608_v17 = vadd.f32 %v571_v9, %v1494_v23  ;;  %v1611_v56 = vadd.f32 %v572_v62, %v1497_v34  ;;  %v1614_v28 = vadd.f32 %v573_v58, %v1500_v35 }
  0xa7   :  { %v1617_v36 = vadd.f32 %v574_v21, %v1503_v38  ;;  %v1620_v46 = vadd.f32 %v575_v20, %v1506_v25  ;;  %v1625_v49 = vadd.f32 %v576_v53, %v1509_v39  ;;  %v1628_v14 = vadd.f32 %v577_v43, %v1512_v54  ;;  %v1642_v38 = vld [vmem:[%s1920_s0] sm:$0xff]  ;;  %v1649_v39 = vld [vmem:[%s1920_s0 + $0x8] sm:$0xff] }
  0xa8   :  { %v1631_v23 = vadd.f32 %v578_v44, %v1515_v50  ;;  %v1634_v34 = vadd.f32 %v579_v42, %v1518_v24  ;;  %v1637_v35 = vadd.f32 %v580_v61, %v1521_v22  ;;  %v599_v25 = vmul.f32 %v1642_v38, %v1581_v37  ;;  %v1656_v50 = vld [vmem:[%s1920_s0 + $0x10] sm:$0xff]  ;;  %v1663_v22 = vld [vmem:[%s1920_s0 + $0x18] sm:$0xff]  ;;  %s1783_s0 = sld [smem:[#allocation7 + $0x7]] }
  0xa9   :  { %v600_v54 = vmul.f32 %v1649_v39, %v1581_v37  ;;  %v601_v24 = vmul.f32 %v1656_v50, %v1581_v37  ;;  %v602_v63 = vmul.f32 %v1663_v22, %v1581_v37  ;;  %v603_v29 = vmul.f32 %v1670_v45, %v1581_v37 }
  0xaa   :  { %1980 = vst [vmem:[#allocation10_spill] sm:$0xff] %v1631_v23  ;;  %1981 = vst [vmem:[#allocation11_spill] sm:$0xff] %v1634_v34  ;;  %v604_v32 = vmul.f32 %v1677_v31, %v1581_v37  ;;  %v605_v12 = vmul.f32 %v1684_v13, %v1581_v37  ;;  %v606_v10 = vmul.f32 %v1691_v11, %v1581_v37  ;;  %v1764_v43 = vstv %s1622_s6 }
  0xab   :  { %1982 = vst [vmem:[#allocation12_spill] sm:$0xff] %v1637_v35  ;;  %v607_v19 = vmul.f32 %v1698_v6, %v1581_v37  ;;  %v608_v0 = vmul.f32 %v1705_v41, %v1581_v37  ;;  %v609_v52 = vmul.f32 %v1712_v51, %v1581_v37  ;;  %v610_v26 = vmul.f32 %v1721_v18, %v1581_v37 }
  0xac   :  { %v611_v30 = vmul.f32 %v1728_v40, %v1581_v37  ;;  %v612_v1 = vmul.f32 %v1735_v59, %v1581_v37  ;;  %v613_v33 = vmul.f32 %v1742_v2, %v1581_v37  ;;  %v614_v5 = vmul.f32 %v1749_v4, %v1581_v37 }
  0xad   :  { %v617_v48 = vadd.f32 %v1584_v3, %v599_v25  ;;  %v618_v8 = vadd.f32 %v1584_v3, %v600_v54  ;;  %v619_v60 = vadd.f32 %v1584_v3, %v601_v24  ;;  %v620_v9 = vadd.f32 %v1584_v3, %v602_v63 }
  0xae   :  { %v621_v62 = vadd.f32 %v1584_v3, %v603_v29  ;;  %v622_v58 = vadd.f32 %v1584_v3, %v604_v32  ;;  %v623_v21 = vadd.f32 %v1584_v3, %v605_v12  ;;  %v624_v20 = vadd.f32 %v1584_v3, %v606_v10 }
  0xaf   :  { %v625_v53 = vadd.f32 %v1584_v3, %v607_v19  ;;  %v626_v37 = vadd.f32 %v1584_v3, %v608_v0  ;;  %v627_v44 = vadd.f32 %v1584_v3, %v609_v52  ;;  %v628_v42 = vadd.f32 %v1584_v3, %v610_v26 }
  0xb0   :  { %v629_v61 = vadd.f32 %v1584_v3, %v611_v30  ;;  %v630_v25 = vadd.f32 %v1584_v3, %v612_v1  ;;  %v1771_v54 = vadd.f32 %v1584_v3, %v613_v33  ;;  %v1774_v24 = vadd.f32 %v1584_v3, %v614_v5 }
  0xb1   :  { %v633_v63 = vmax.f32 %v617_v48, 0.0  ;;  %v634_v29 = vmax.f32 %v618_v8, 0.0  ;;  %v635_v32 = vmax.f32 %v619_v60, 0.0  ;;  %v636_v12 = vmax.f32 %v620_v9, 0.0 }
  0xb2   :  { %1983 = vst [vmem:[#allocation13_spill] sm:$0xff] %v1774_v24  ;;  %v685_v10 = vmul.f32 %v1642_v38, %v1764_v43  ;;  %v686_v19 = vmul.f32 %v1649_v39, %v1764_v43  ;;  %v637_v0 = vmax.f32 %v621_v62, 0.0  ;;  %v638_v52 = vmax.f32 %v622_v58, 0.0 }
  0xb3   :  { %v639_v26 = vmax.f32 %v623_v21, 0.0  ;;  %v1781_v30 = vstv %s1716_s2  ;;  %v640_v1 = vmax.f32 %v624_v20, 0.0  ;;  %v641_v3 = vmax.f32 %v625_v53, 0.0 }
  0xb4   :  { %v642_v33 = vmax.f32 %v626_v37, 0.0  ;;  %v687_v5 = vmul.f32 %v1656_v50, %v1764_v43  ;;  %v643_v48 = vmax.f32 %v627_v44, 0.0  ;;  %v644_v8 = vmax.f32 %v628_v42, 0.0 }
  0xb5   :  { %v645_v60 = vmax.f32 %v629_v61, 0.0  ;;  %v646_v9 = vmax.f32 %v630_v25, 0.0  ;;  %v688_v62 = vmul.f32 %v1663_v22, %v1764_v43  ;;  %v703_v58 = vadd.f32 %v1781_v30, %v685_v10 }
  0xb6   :  { %v704_v21 = vadd.f32 %v1781_v30, %v686_v19  ;;  %v651_v53 = vmul.f32 %v1587_v7, %v633_v63  ;;  %v652_v37 = vmul.f32 %v1587_v7, %v634_v29  ;;  %v653_v44 = vmul.f32 %v1587_v7, %v635_v32 }
  0xb7   :  { %v654_v42 = vmul.f32 %v1587_v7, %v636_v12  ;;  %v655_v61 = vmul.f32 %v1587_v7, %v637_v0  ;;  %v689_v25 = vmul.f32 %v1670_v45, %v1764_v43  ;;  %v705_v10 = vadd.f32 %v1781_v30, %v687_v5 }
  0xb8   :  { %v656_v19 = vmul.f32 %v1587_v7, %v638_v52  ;;  %v657_v20 = vmul.f32 %v1587_v7, %v639_v26  ;;  %v658_v63 = vmul.f32 %v1587_v7, %v640_v1  ;;  %v659_v29 = vmul.f32 %v1587_v7, %v641_v3 }
  0xb9   :  { %v690_v32 = vmul.f32 %v1677_v31, %v1764_v43  ;;  %v706_v12 = vadd.f32 %v1781_v30, %v688_v62  ;;  %v719_v35 = vmax.f32 %v703_v58, 0.0  ;;  %v720_v0 = vmax.f32 %v704_v21, 0.0 }
  0xba   :  { %v660_v34 = vmul.f32 %v1587_v7, %v642_v33  ;;  %v1810_v23 = vmul.f32 %v1587_v7, %v643_v48  ;;  %v1813_v52 = vmul.f32 %v1587_v7, %v644_v8  ;;  %v1816_v26 = vstv %s1783_s0 }
  0xbb   :  { %v1819_v1 = vmul.f32 %v1587_v7, %v645_v60  ;;  %v691_v3 = vmul.f32 %v1684_v13, %v1764_v43  ;;  %v707_v5 = vadd.f32 %v1781_v30, %v689_v25  ;;  %v721_v62 = vmax.f32 %v705_v10, 0.0 }
  0xbc   :  { %v1825_v58 = vmul.f32 %v1587_v7, %v646_v9  ;;  %v667_v33 = vadd.f32 %v651_v53, %v1590_v47  ;;  %v668_v48 = vadd.f32 %v652_v37, %v1593_v55  ;;  %v692_v8 = vmul.f32 %v1691_v11, %v1764_v43 }
  0xbd   :  { %1984 = vst [vmem:[#allocation14_spill] sm:$0xff] %v1819_v1  ;;  %v708_v21 = vadd.f32 %v1781_v30, %v690_v32  ;;  %v722_v60 = vmax.f32 %v706_v12, 0.0  ;;  %v737_v24 = vmul.f32 %v1816_v26, %v719_v35  ;;  %v738_v1 = vmul.f32 %v1816_v26, %v720_v0 }
  0xbe   :  { %v669_v25 = vadd.f32 %v653_v44, %v1596_v15  ;;  %v670_v10 = vadd.f32 %v654_v42, %v1599_v27  ;;  %v671_v9 = vadd.f32 %v655_v61, %v1602_v16  ;;  %v672_v47 = vadd.f32 %v656_v19, %v1605_v57 }
  0xbf   :  { %v693_v55 = vmul.f32 %v1698_v6, %v1764_v43  ;;  %v709_v53 = vadd.f32 %v1781_v30, %v691_v3  ;;  %v723_v37 = vmax.f32 %v707_v5, 0.0  ;;  %v739_v32 = vmul.f32 %v1816_v26, %v721_v62 }
  0xc0   :  { %v673_v35 = vadd.f32 %v657_v20, %v1608_v17  ;;  %v674_v12 = vadd.f32 %v658_v63, %v1611_v56  ;;  %v694_v15 = vmul.f32 %v1705_v41, %v1764_v43  ;;  %v710_v27 = vadd.f32 %v1781_v30, %v692_v8 }
  0xc1   :  { %v724_v16 = vmax.f32 %v708_v21, 0.0  ;;  %v740_v57 = vmul.f32 %v1816_v26, %v722_v60  ;;  %v753_v44 = vadd.f32 %v737_v24, %v667_v33  ;;  %v754_v42 = vadd.f32 %v738_v1, %v668_v48 }
  0xc2   :  { %v675_v61 = vadd.f32 %v659_v29, %v1614_v28  ;;  %v695_v19 = vmul.f32 %v1712_v51, %v1764_v43  ;;  %vm769_vm0 = vcmp.ne.f32.partialorder %v1642_v38, 0.0  ;;  %vm770_vm1 = vcmp.ne.f32.partialorder %v1649_v39, 0.0 }
  0xc3   :  { %v711_v17 = vadd.f32 %v1781_v30, %v693_v55  ;;  %v725_v56 = vmax.f32 %v709_v53, 0.0  ;;  %v741_v20 = vmul.f32 %v1816_v26, %v723_v37  ;;  %v755_v63 = vadd.f32 %v739_v32, %v669_v25 }
  0xc4   :  { %v696_v0 = vmul.f32 %v1721_v18, %v1764_v43  ;;  %v712_v24 = vadd.f32 %v1781_v30, %v694_v15  ;;  %v726_v1 = vmax.f32 %v710_v27, 0.0  ;;  %vm771_vm2 = vcmp.ne.f32.partialorder %v1656_v50, 0.0 }
  0xc5   :  { %v742_v28 = vmul.f32 %v1816_v26, %v724_v16  ;;  %v756_v29 = vadd.f32 %v740_v57, %v670_v10  ;;  %v785_v38 = vsel %vm769_vm0, %v753_v44, 0.0  ;;  %v786_v3 = vsel %vm770_vm1, %v754_v42, 0.0 }
  0xc6   :  { %v676_v39 = vadd.f32 %v660_v34, %v1617_v36  ;;  %v697_v5 = vmul.f32 %v1728_v40, %v1764_v43  ;;  %v713_v62 = vadd.f32 %v1781_v30, %v695_v19  ;;  %vm772_vm3 = vcmp.ne.f32.partialorder %v1663_v22, 0.0 }
  0xc7   :  { %v727_v33 = vmax.f32 %v711_v17, 0.0  ;;  %v743_v48 = vmul.f32 %v1816_v26, %v725_v56  ;;  %v757_v8 = vadd.f32 %v741_v20, %v671_v9  ;;  %v787_v21 = vsel %vm771_vm2, %v755_v63, 0.0 }
  0xc8   :  { %v698_v50 = vmul.f32 %v1735_v59, %v1764_v43  ;;  %v714_v60 = vadd.f32 %v1781_v30, %v696_v0  ;;  %vm773_vm4 = vcmp.ne.f32.partialorder %v1670_v45, 0.0  ;;  %v802_v36 = vadd.f32 %v786_v3, %v785_v38  ;;  %v1987_v3 = vld [vmem:[#allocation13_spill] sm:$0xff] }
  0xc9   :  { %v728_v34 = vmax.f32 %v712_v24, 0.0  ;;  %v744_v25 = vmul.f32 %v1816_v26, %v726_v1  ;;  %v758_v10 = vadd.f32 %v742_v28, %v672_v47  ;;  %v788_v55 = vsel %vm772_vm3, %v756_v29, 0.0 }
  0xca   :  { %v699_v22 = vmul.f32 %v1742_v2, %v1764_v43  ;;  %v715_v53 = vadd.f32 %v1781_v30, %v697_v5  ;;  %vm774_vm5 = vcmp.ne.f32.partialorder %v1677_v31, 0.0  ;;  %v803_v9 = vadd.f32 %v802_v36, %v787_v21 }
  0xcb   :  { %v729_v37 = vmax.f32 %v713_v62, 0.0  ;;  %v745_v32 = vmul.f32 %v1816_v26, %v727_v33  ;;  %v759_v15 = vadd.f32 %v743_v48, %v673_v35  ;;  %v789_v27 = vsel %vm773_vm4, %v757_v8, 0.0  ;;  %v1989_v62 = vld [vmem:[#allocation10_spill] sm:$0xff] }
  0xcc   :  { %v700_v45 = vmul.f32 %v1749_v4, %v1764_v43  ;;  %v716_v16 = vadd.f32 %v1781_v30, %v698_v50  ;;  %vm775_vm6 = vcmp.ne.f32.partialorder %v1684_v13, 0.0  ;;  %v804_v47 = vadd.f32 %v803_v9, %v788_v55  ;;  %v1990_v50 = vld [vmem:[#allocation11_spill] sm:$0xff] }
  0xcd   :  { %v730_v57 = vmax.f32 %v714_v60, 0.0  ;;  %v746_v44 = vmul.f32 %v1816_v26, %v728_v34  ;;  %v760_v42 = vadd.f32 %v744_v25, %v674_v12  ;;  %v790_v19 = vsel %vm774_vm5, %v758_v10, 0.0  ;;  %v1991_v25 = vld [vmem:[#allocation12_spill] sm:$0xff] }
  0xce   :  { %v677_v31 = vadd.f32 %v1810_v23, %v1620_v46  ;;  %v717_v17 = vadd.f32 %v1781_v30, %v699_v22  ;;  %vm776_vm7 = vcmp.ne.f32.partialorder %v1691_v11, 0.0  ;;  %v805_v35 = vadd.f32 %v804_v47, %v789_v27 }
  0xcf   :  { %v731_v56 = vmax.f32 %v715_v53, 0.0  ;;  %v747_v43 = vmul.f32 %v1816_v26, %v729_v37  ;;  %v761_v20 = vadd.f32 %v745_v32, %v675_v61  ;;  %v791_v63 = vsel %vm775_vm6, %v759_v15, 0.0  ;;  %v1986_v61 = vld [vmem:[#allocation14_spill] sm:$0xff] }
  0xd0   :  { %v678_v13 = vadd.f32 %v1813_v52, %v1625_v49  ;;  %v718_v0 = vadd.f32 %v1781_v30, %v700_v45  ;;  %vm777_vm8 = vcmp.ne.f32.partialorder %v1698_v6, 0.0  ;;  %v806_v12 = vadd.f32 %v805_v35, %v790_v19 }
  0xd1   :  { %v732_v24 = vmax.f32 %v716_v16, 0.0  ;;  %v748_v46 = vmul.f32 %v1816_v26, %v730_v57  ;;  %v762_v23 = vadd.f32 %v746_v44, %v676_v39  ;;  %v792_v1 = vsel %vm776_vm7, %v760_v42, 0.0 }
  0xd2   :  { %v1985_v11 = vmax.f32 %v1771_v54, 0.0  ;;  %v679_v29 = vadd.f32 %v1986_v61, %v1628_v14  ;;  %vm778_vm9 = vcmp.ne.f32.partialorder %v1705_v41, 0.0  ;;  %v807_v49 = vadd.f32 %v806_v12, %v791_v63 }
  0xd3   :  { %v733_v52 = vmax.f32 %v717_v17, 0.0  ;;  %v749_v30 = vmul.f32 %v1816_v26, %v731_v56  ;;  %v763_v6 = vadd.f32 %v747_v43, %v677_v31  ;;  %v793_v38 = vsel %vm777_vm8, %v761_v20, 0.0 }
  0xd4   :  { %v665_v28 = vmul.f32 %v1587_v7, %v1985_v11  ;;  %v1988_v5 = vmax.f32 %v1987_v3, 0.0  ;;  %v680_v54 = vadd.f32 %v1825_v58, %v1989_v62  ;;  %vm779_vm10 = vcmp.ne.f32.partialorder %v1712_v51, 0.0 }
  0xd5   :  { %v808_v33 = vadd.f32 %v807_v49, %v792_v1  ;;  %v734_v48 = vmax.f32 %v718_v0, 0.0  ;;  %v750_v14 = vmul.f32 %v1816_v26, %v732_v24  ;;  %v764_v41 = vadd.f32 %v748_v46, %v678_v13 }
  0xd6   :  { %v666_v39 = vmul.f32 %v1587_v7, %v1988_v5  ;;  %v794_v8 = vsel %vm778_vm9, %v762_v23, 0.0  ;;  %vm780_vm11 = vcmp.ne.f32.partialorder %v1721_v18, 0.0  ;;  %v681_v60 = vadd.f32 %v665_v28, %v1990_v50 }
  0xd7   :  { %v809_v21 = vadd.f32 %v808_v33, %v793_v38  ;;  %v751_v36 = vmul.f32 %v1816_v26, %v733_v52  ;;  %v765_v34 = vadd.f32 %v749_v30, %v679_v29  ;;  %v795_v7 = vsel %vm779_vm10, %v763_v6, 0.0 }
  0xd8   :  { %vm781_vm12 = vcmp.ne.f32.partialorder %v1728_v40, 0.0  ;;  %v682_v51 = vadd.f32 %v666_v39, %v1991_v25  ;;  %v752_v10 = vmul.f32 %v1816_v26, %v734_v48  ;;  %v766_v55 = vadd.f32 %v750_v14, %v680_v54 }
  0xd9   :  { %v810_v58 = vadd.f32 %v809_v21, %v794_v8  ;;  %v796_v22 = vsel %vm780_vm11, %v764_v41, 0.0  ;;  %vm782_vm13 = vcmp.ne.f32.partialorder %v1735_v59, 0.0  ;;  %v767_v18 = vadd.f32 %v751_v36, %v681_v60 }
  0xda   :  { %v797_v9 = vsel %vm781_vm12, %v765_v34, 0.0  ;;  %vm783_vm14 = vcmp.ne.f32.partialorder %v1742_v2, 0.0  ;;  %v768_v32 = vadd.f32 %v752_v10, %v682_v51  ;;  %v798_v15 = vsel %vm782_vm13, %v766_v55, 0.0  ;;  %v801_v2 = vld [vmem:[%s1925_s5] sm:$0x1] }
  0xdb   :  { %v811_v53 = vadd.f32 %v810_v58, %v795_v7  ;;  %vm784_vm15 = vcmp.ne.f32.partialorder %v1749_v4, 0.0  ;;  %v799_v27 = vsel %vm783_vm14, %v767_v18, 0.0 }
  0xdc   :  { %v800_v16 = vsel %vm784_vm15, %v768_v32, 0.0 }
  0xdd   :  { %v812_v37 = vadd.f32 %v811_v53, %v796_v22 }
  0xdf   :  { %v813_v40 = vadd.f32 %v812_v37, %v797_v9 }
  0xe1   :  { %v814_v45 = vadd.f32 %v813_v40, %v798_v15 }
  0xe3   :  { %v815_v47 = vadd.f32 %v814_v45, %v799_v27 }
  0xe5   :  { %v816_v26 = vadd.f32 %v815_v47, %v800_v16 }
  0xe7   :  { %v817_v57 = vrot.slane %v816_v26, 4 }
  0xe9   :  { %v818_v44 = vadd.f32 %v817_v57, %v816_v26 }
  0xeb   :  { %v819_v42 = vrot.slane %v818_v44, 2 }
  0xed   :  { %v820_v59 = vadd.f32 %v819_v42, %v818_v44 }
  0xef   :  { %v821_v19 = vrot.slane %v820_v59, 1 }
  0xf1   :  { %v822_v31 = vadd.f32 %v821_v19, %v820_v59 }
  0xf3   :  { %v823_v17 = vadd.f32 %v822_v31, %v801_v2 }
  0xf5   :  { %824 = vst [vmem:[%s1925_s5] sm:$0x1] %v823_v17 }
  0xf6   :  { %829 = vsyncpa [#allocation4], 1 }
  0xf7   :  { %830 = vsyncpa [#allocation6], 1 }

// kernel: neognn_forward.11
= control target key start
LH: loop header
LB: loop body
LE: loop exit
PB: predicated region body
PF: predicated region fallthrough
CT: control target
= control target key end

     0   :  { %s3804_s0 = inlined_call_operand.vmem [shape: s32[2,128], index: 0, kind: input, shape index: {}]   ;;  %s3805_s1 = inlined_call_operand.vmem [shape: f32[128,128], index: 1, kind: input, shape index: {}]   ;;  %s3806_s2 = inlined_call_operand.vmem [shape: f32[1,128], index: 2, kind: input, shape index: {}]   ;;  %s3807_s3 = inlined_call_operand.vmem [shape: f32[1,128], index: 3, kind: input, shape index: {}]   ;;  %s3808_s4 = inlined_call_operand.vmem [shape: f32[1,128], index: 4, kind: input, shape index: {}]   ;;  %s3809_s5 = inlined_call_operand.vmem [shape: f32[1,128], index: 5, kind: input, shape index: {}]   ;;  %s3810_s6 = inlined_call_operand.<no memory space> [shape: f32[1], index: 6, kind: input, shape index: {}]   ;;  %s3811_s7 = inlined_call_operand.vmem [shape: f32[128,1], index: 7, kind: output, shape index: {0}]   ;;  %s3812_s8 = inlined_call_operand.vmem [shape: f32[128,1], index: 8, kind: output, shape index: {1}]  }
   0x1   :  { %s14_s29 = sshll.u32 %s3804_s0, 4  ;;  %18 = sst [smem:[#allocation9]] %s3810_s6  ;;  %s15_s29 = int_to_ptr.vmem [resolvable:$true] %s14_s29 }
   0x2   :  { %s3259_s10 = scalar_lea.vmem %s15_s29, 32  ;;  %p3264_p1 = scmp.lt.s32.totalorder %s15_s29, %s15_s29 }
   0x3   :  { %p3260_p0 = scmp.ne.s32.totalorder %s15_s29, %s3259_s10  ;;  %p3265_p2 = scmp.lt.s32.totalorder %s3259_s10, %s3259_s10 }
   0x5   :  { %p3266_p3 = por %p3265_p2, %p3264_p1 }
   0x7   :  { %p3267_p4 = pnand %p3266_p3, %p3260_p0 }
   0x9   :  { %3270 = shalt.err (!%p3267_p4)  }
   0xa   :  { %s3313_s11 = smov [#allocation8]  }
   0xb   :  { %17 = dma.vmem_to_smem %s15_s29, 32, %s3313_s11, [#allocation7] }
   0xc   :  { %3275 = dma.done.wait [#allocation7], 32 }
   0xd   :  { %3276 = vsyncadd [#allocation7], 4294967264 }
   0xe   :  { %20 = sfence }
   0xf   :  { %vm36_vm0 = vcmask 7168   ;;  %s3011_s12 = sld [smem:[#allocation8 + $0x80]]  ;;  %v3314_v0 = vmov 0.0  }
  0x10   :  { %s54_s0 = sld [smem:[#allocation8]]  ;;  %37 = vst.msk [vmem:[#allocation6] sm:$0xff] %vm36_vm0, %v3314_v0  ;;  %38 = vst.msk [vmem:[#allocation6 + $0x8] sm:$0xff] %vm36_vm0, %v3314_v0 }
  0x11   :  { %39 = vst.msk [vmem:[#allocation6 + $0x10] sm:$0xff] %vm36_vm0, %v3314_v0  ;;  %40 = vst.msk [vmem:[#allocation6 + $0x18] sm:$0xff] %vm36_vm0, %v3314_v0 }
  0x12   :  { %41 = vst.msk [vmem:[#allocation6 + $0x20] sm:$0xff] %vm36_vm0, %v3314_v0  ;;  %42 = vst.msk [vmem:[#allocation6 + $0x28] sm:$0xff] %vm36_vm0, %v3314_v0 }
  0x13   :  { %43 = vst.msk [vmem:[#allocation6 + $0x30] sm:$0xff] %vm36_vm0, %v3314_v0  ;;  %44 = vst.msk [vmem:[#allocation6 + $0x38] sm:$0xff] %vm36_vm0, %v3314_v0 }
  0x14   :  { %45 = vst.msk [vmem:[#allocation6 + $0x40] sm:$0xff] %vm36_vm0, %v3314_v0  ;;  %46 = vst.msk [vmem:[#allocation6 + $0x48] sm:$0xff] %vm36_vm0, %v3314_v0 }
  0x15   :  { %47 = vst.msk [vmem:[#allocation6 + $0x50] sm:$0xff] %vm36_vm0, %v3314_v0  ;;  %48 = vst.msk [vmem:[#allocation6 + $0x58] sm:$0xff] %vm36_vm0, %v3314_v0 }
  0x16   :  { %49 = vst.msk [vmem:[#allocation6 + $0x60] sm:$0xff] %vm36_vm0, %v3314_v0  ;;  %50 = vst.msk [vmem:[#allocation6 + $0x68] sm:$0xff] %vm36_vm0, %v3314_v0  ;;  %s66_s14 = scalar_lea.vmem %s3805_s1, %s54_s0 }
  0x17   :  { %51 = vst.msk [vmem:[#allocation6 + $0x70] sm:$0xff] %vm36_vm0, %v3314_v0  ;;  %52 = vst.msk [vmem:[#allocation6 + $0x78] sm:$0xff] %vm36_vm0, %v3314_v0  ;;  %v84_v1 = vld [vmem:[%s66_s14] sm:$0x1] }
  0x18   :  { %85 = vst [vmem:[#allocation2] sm:$0x1] %v84_v1 }
  0x19   :  { %110 = vsyncadd [#allocation4], 16  ;;  %s112_s17 = scalar_lea.vmem %s3805_s1, %s3011_s12 }
  0x1a   :  { %v130_v2 = vld [vmem:[%s112_s17] sm:$0x1] }
  0x1b   :  { %131 = vst [vmem:[#allocation3] sm:$0x1] %v130_v2 }
  0x1c   :  { %156 = vsyncadd [#allocation5], 16  ;;  %s3012_s18 = sld [smem:[#allocation8 + $0x1]] }
  0x1d   :  { %s3013_s19 = sld [smem:[#allocation8 + $0x81]] }
  0x22   :  { %s168_s22 = scalar_lea.vmem %s3805_s1, %s3012_s18 }
  0x23   :  { %v188_v3 = vld [vmem:[%s168_s22] sm:$0x1] }
  0x24   :  { %189 = vst [vmem:[#allocation2 + $0x1] sm:$0x1] %v188_v3 }
  0x25   :  { %214 = vsyncadd [#allocation4 + $0x1], 16  ;;  %s216_s25 = scalar_lea.vmem %s3805_s1, %s3013_s19 }
  0x26   :  { %v236_v4 = vld [vmem:[%s216_s25] sm:$0x1] }
  0x27   :  { %237 = vst [vmem:[#allocation3 + $0x1] sm:$0x1] %v236_v4 }
  0x28   :  { %262 = vsyncadd [#allocation5 + $0x1], 16  ;;  %s3014_s26 = sld [smem:[#allocation8 + $0x2]] }
  0x29   :  { %s3015_s27 = sld [smem:[#allocation8 + $0x82]] }
  0x2e   :  { %s274_s30 = scalar_lea.vmem %s3805_s1, %s3014_s26 }
  0x2f   :  { %v294_v5 = vld [vmem:[%s274_s30] sm:$0x1] }
  0x30   :  { %295 = vst [vmem:[#allocation2 + $0x2] sm:$0x1] %v294_v5 }
  0x31   :  { %320 = vsyncadd [#allocation4 + $0x2], 16  ;;  %s322_s11 = scalar_lea.vmem %s3805_s1, %s3015_s27 }
  0x32   :  { %v342_v6 = vld [vmem:[%s322_s11] sm:$0x1] }
  0x33   :  { %343 = vst [vmem:[#allocation3 + $0x2] sm:$0x1] %v342_v6 }
  0x34   :  { %368 = vsyncadd [#allocation5 + $0x2], 16  ;;  %s3016_s12 = sld [smem:[#allocation8 + $0x3]] }
  0x35   :  { %s3017_s0 = sld [smem:[#allocation8 + $0x83]] }
  0x3a   :  { %s380_s14 = scalar_lea.vmem %s3805_s1, %s3016_s12 }
  0x3b   :  { %v400_v7 = vld [vmem:[%s380_s14] sm:$0x1] }
  0x3c   :  { %401 = vst [vmem:[#allocation2 + $0x3] sm:$0x1] %v400_v7 }
  0x3d   :  { %426 = vsyncadd [#allocation4 + $0x3], 16  ;;  %s428_s17 = scalar_lea.vmem %s3805_s1, %s3017_s0 }
  0x3e   :  { %v448_v8 = vld [vmem:[%s428_s17] sm:$0x1] }
  0x3f   :  { %449 = vst [vmem:[#allocation3 + $0x3] sm:$0x1] %v448_v8 }
  0x40   :  { %474 = vsyncadd [#allocation5 + $0x3], 16  ;;  %s3018_s18 = sld [smem:[#allocation8 + $0x4]] }
  0x41   :  { %s3019_s19 = sld [smem:[#allocation8 + $0x84]] }
  0x46   :  { %s486_s22 = scalar_lea.vmem %s3805_s1, %s3018_s18 }
  0x47   :  { %v506_v9 = vld [vmem:[%s486_s22] sm:$0x1] }
  0x48   :  { %507 = vst [vmem:[#allocation2 + $0x4] sm:$0x1] %v506_v9 }
  0x49   :  { %532 = vsyncadd [#allocation4 + $0x4], 16  ;;  %s534_s25 = scalar_lea.vmem %s3805_s1, %s3019_s19 }
  0x4a   :  { %v554_v10 = vld [vmem:[%s534_s25] sm:$0x1] }
  0x4b   :  { %555 = vst [vmem:[#allocation3 + $0x4] sm:$0x1] %v554_v10 }
  0x4c   :  { %580 = vsyncadd [#allocation5 + $0x4], 16  ;;  %s3020_s26 = sld [smem:[#allocation8 + $0x5]] }
  0x4d   :  { %s3021_s27 = sld [smem:[#allocation8 + $0x85]] }
  0x52   :  { %s592_s30 = scalar_lea.vmem %s3805_s1, %s3020_s26 }
  0x53   :  { %v612_v11 = vld [vmem:[%s592_s30] sm:$0x1] }
  0x54   :  { %613 = vst [vmem:[#allocation2 + $0x5] sm:$0x1] %v612_v11 }
  0x55   :  { %638 = vsyncadd [#allocation4 + $0x5], 16  ;;  %s640_s11 = scalar_lea.vmem %s3805_s1, %s3021_s27 }
  0x56   :  { %v660_v12 = vld [vmem:[%s640_s11] sm:$0x1] }
  0x57   :  { %661 = vst [vmem:[#allocation3 + $0x5] sm:$0x1] %v660_v12 }
  0x58   :  { %686 = vsyncadd [#allocation5 + $0x5], 16  ;;  %s3022_s12 = sld [smem:[#allocation8 + $0x6]] }
  0x59   :  { %s3023_s0 = sld [smem:[#allocation8 + $0x86]] }
  0x5e   :  { %s698_s14 = scalar_lea.vmem %s3805_s1, %s3022_s12 }
  0x5f   :  { %v718_v13 = vld [vmem:[%s698_s14] sm:$0x1] }
  0x60   :  { %719 = vst [vmem:[#allocation2 + $0x6] sm:$0x1] %v718_v13 }
  0x61   :  { %744 = vsyncadd [#allocation4 + $0x6], 16  ;;  %s746_s17 = scalar_lea.vmem %s3805_s1, %s3023_s0 }
  0x62   :  { %v766_v14 = vld [vmem:[%s746_s17] sm:$0x1] }
  0x63   :  { %767 = vst [vmem:[#allocation3 + $0x6] sm:$0x1] %v766_v14 }
  0x64   :  { %792 = vsyncadd [#allocation5 + $0x6], 16  ;;  %s3024_s18 = sld [smem:[#allocation8 + $0x7]] }
  0x65   :  { %s3025_s19 = sld [smem:[#allocation8 + $0x87]] }
  0x6a   :  { %s804_s22 = scalar_lea.vmem %s3805_s1, %s3024_s18 }
  0x6b   :  { %v824_v15 = vld [vmem:[%s804_s22] sm:$0x1] }
  0x6c   :  { %825 = vst [vmem:[#allocation2 + $0x7] sm:$0x1] %v824_v15 }
  0x6d   :  { %850 = vsyncadd [#allocation4 + $0x7], 16  ;;  %s852_s25 = scalar_lea.vmem %s3805_s1, %s3025_s19 }
  0x6e   :  { %v872_v16 = vld [vmem:[%s852_s25] sm:$0x1] }
  0x6f   :  { %873 = vst [vmem:[#allocation3 + $0x7] sm:$0x1] %v872_v16 }
  0x70   :  { %898 = vsyncadd [#allocation5 + $0x7], 16  ;;  %v3434_v17 = vld [vmem:[%s3806_s2] ss:$0 sm:$0xff]  ;;  %s3436_s28 = smov 0  }
  0x71 LB: > { %p912_p5 = scmp.lt.s32.totalorder %s3311_s28, 0  ;;  %s913_s29 = ssub.s32 0, %s3311_s28  ;;  %s3311_s28 = sphi %s3436_s28, %s3814_s28  }
  0x72   : > { %s3027_s30 = smin.u32 %s3311_s28, %s913_s29 }
  0x73   : > { %s915_s9 = sand.u32 1, %s3027_s30  }
  0x74   : > { %s916_s10 = ssub.s32 0, %s915_s9 }
  0x75   : > { %s3816_s10 = smov (!%p912_p5, %s916_s10), %s915_s9 }
  0x76   : > { %p3029_p6 = scmp.lt.s32.totalorder %s3816_s10, 0  ;;  %s922_s11 = sadd.s32 2, %s3816_s10 }
  0x78   : > { %s3818_s11 = smov (!%p3029_p6, %s922_s11), %s3816_s10 }
  0x79   : > { %s3447_s2 = sshll.u32 %s3818_s11, 3 }
  0x7a   : > { %s3450_s12 = scalar_lea.sflag [#allocation4], %s3447_s2 }
  0x7b   : > { %3277 = dma.done.wait %s3450_s12, 16 }
  0x7c   : > { %3278 = vsyncadd %s3450_s12, 4294967280  ;;  %s3455_s0 = scalar_lea.sflag [#allocation5], %s3447_s2 }
  0x7d   : > { %3279 = dma.done.wait %s3455_s0, 16 }
  0x7e   : > { %3280 = vsyncadd %s3455_s0, 4294967280  ;;  %s2534_s6 = scalar_lea.sflag %s3450_s12, 1 [#allocation4] }
  0x7f   : > { %3281 = dma.done.wait %s2534_s6, 16 }
  0x80   : > { %3282 = vsyncadd %s2534_s6, 4294967280  ;;  %s2537_s13 = scalar_lea.sflag %s3455_s0, 1 [#allocation5] }
  0x81   : > { %3283 = dma.done.wait %s2537_s13, 16 }
  0x82   : > { %3284 = vsyncadd %s2537_s13, 4294967280  ;;  %s2540_s14 = scalar_lea.sflag %s3450_s12, 2 [#allocation4] }
  0x83   : > { %3285 = dma.done.wait %s2540_s14, 16 }
  0x84   : > { %3286 = vsyncadd %s2540_s14, 4294967280  ;;  %s2543_s15 = scalar_lea.sflag %s3455_s0, 2 [#allocation5] }
  0x85   : > { %3287 = dma.done.wait %s2543_s15, 16 }
  0x86   : > { %3288 = vsyncadd %s2543_s15, 4294967280  ;;  %s2546_s16 = scalar_lea.sflag %s3450_s12, 3 [#allocation4] }
  0x87   : > { %3289 = dma.done.wait %s2546_s16, 16 }
  0x88   : > { %3290 = vsyncadd %s2546_s16, 4294967280  ;;  %s2549_s17 = scalar_lea.sflag %s3455_s0, 3 [#allocation5] }
  0x89   : > { %3291 = dma.done.wait %s2549_s17, 16 }
  0x8a   : > { %3292 = vsyncadd %s2549_s17, 4294967280  ;;  %s2552_s18 = scalar_lea.sflag %s3450_s12, 4 [#allocation4] }
  0x8b   : > { %3293 = dma.done.wait %s2552_s18, 16 }
  0x8c   : > { %3294 = vsyncadd %s2552_s18, 4294967280  ;;  %s2555_s19 = scalar_lea.sflag %s3455_s0, 4 [#allocation5] }
  0x8d   : > { %3295 = dma.done.wait %s2555_s19, 16 }
  0x8e   : > { %3296 = vsyncadd %s2555_s19, 4294967280  ;;  %s2558_s20 = scalar_lea.sflag %s3450_s12, 5 [#allocation4] }
  0x8f   : > { %3297 = dma.done.wait %s2558_s20, 16 }
  0x90   : > { %3298 = vsyncadd %s2558_s20, 4294967280  ;;  %s2561_s21 = scalar_lea.sflag %s3455_s0, 5 [#allocation5] }
  0x91   : > { %3299 = dma.done.wait %s2561_s21, 16 }
  0x92   : > { %3300 = vsyncadd %s2561_s21, 4294967280  ;;  %s2564_s22 = scalar_lea.sflag %s3450_s12, 6 [#allocation4] }
  0x93   : > { %3301 = dma.done.wait %s2564_s22, 16 }
  0x94   : > { %3302 = vsyncadd %s2564_s22, 4294967280  ;;  %s2567_s23 = scalar_lea.sflag %s3455_s0, 6 [#allocation5] }
  0x95   : > { %3303 = dma.done.wait %s2567_s23, 16 }
  0x96   : > { %3304 = vsyncadd %s2567_s23, 4294967280  ;;  %s2570_s24 = scalar_lea.sflag %s3450_s12, 7 [#allocation4] }
  0x97   : > { %3305 = dma.done.wait %s2570_s24, 16 }
  0x98   : > { %3306 = vsyncadd %s2570_s24, 4294967280  ;;  %s2573_s25 = scalar_lea.sflag %s3455_s0, 7 [#allocation5] }
  0x99   : > { %3307 = dma.done.wait %s2573_s25, 16 }
  0x9a   : > { %3308 = vsyncadd %s2573_s25, 4294967280  ;;  %s980_s26 = sadd.s32 1, %s3311_s28  }
  0x9b   : > { %p3476_p7 = scmp.ge.s32.totalorder %s980_s26, 16 }
  0x9c   : > { %s985_s29 = ssub.s32 (!%p3476_p7), 1, %s3818_s11  ;;  %s3164_s30 = sshll.u32 (!%p3476_p7), %s3311_s28, 3 }
  0x9d   : > { %984 = sbr.rel (%p3476_p7) target bundleno = 271 (0x10f), region = 516  ;;  %s3484_s9 = sadd.s32 (!%p3476_p7), 8, %s3164_s30 }
  0x9e   : > { %s3048_s10 = sshll.u32 (!%p3476_p7), %s985_s29, 3  ;;  %s988_s12 = sld [smem:[#allocation8 + %s3484_s9]] (!%p3476_p7) }
  0x9f   : > { %s989_s0 = sshra.s32 (!%p3476_p7), %s3484_s9, 7  ;;  %s994_s13 = sand.u32 (!%p3476_p7), 127, %s3484_s9 }
  0xa0   : > { %s3166_s6 = sshll.u32 (!%p3476_p7), %s989_s0, 7  ;;  %s3492_s11 = scalar_lea.vmem (!%p3476_p7), [#allocation2], %s3048_s10 }
  0xa1   : > { %s3167_s14 = sadd.s32 (!%p3476_p7), 128, %s3166_s6  ;;  %s3495_s20 = scalar_lea.sflag (!%p3476_p7), [#allocation4], %s3048_s10 }
  0xa2   : > { %s995_s15 = sadd.s32 (!%p3476_p7), %s3167_s14, %s994_s13 }
  0xa3   : > { %s996_s16 = sld [smem:[#allocation8 + %s995_s15]] (!%p3476_p7) }
  0xa4   : > { %s998_s19 = scalar_lea.vmem %s3805_s1, %s988_s12 }
  0xa5   : > { %v1019_v18 = vld [vmem:[%s998_s19] sm:$0x1] }
  0xa6   : > { %1020 = vst [vmem:[%s3492_s11] sm:$0x1] %v1019_v18 }
  0xa7   : > { %1045 = vsyncadd %s3495_s20, 16  ;;  %s3501_s24 = scalar_lea.vmem [#allocation3], %s3048_s10  ;;  %s3504_s25 = scalar_lea.sflag [#allocation5], %s3048_s10 }
  0xa9   : > { %s1047_s23 = scalar_lea.vmem %s3805_s1, %s996_s16 }
  0xaa   : > { %v1067_v19 = vld [vmem:[%s1047_s23] sm:$0x1] }
  0xab   : > { %1068 = vst [vmem:[%s3501_s24] sm:$0x1] %v1067_v19 }
  0xac   : > { %1093 = vsyncadd %s3504_s25, 16  ;;  %s1094_s29 = sadd.s32 1, %s3484_s9  ;;  %s2597_s30 = scalar_lea.sflag %s3495_s20, 1 [#allocation4] }
  0xad   : > { %s1095_s12 = sld [smem:[#allocation8 + %s1094_s29]]  ;;  %s1096_s0 = sshra.s32 %s1094_s29, 7 }
  0xae   : > { %s3168_s6 = sshll.u32 %s1096_s0, 7  ;;  %s1101_s13 = sand.u32 127, %s1094_s29 }
  0xaf   : > { %s3169_s14 = sadd.s32 128, %s3168_s6 }
  0xb0   : > { %s1102_s15 = sadd.s32 %s3169_s14, %s1101_s13 }
  0xb1   : > { %s1103_s16 = sld [smem:[#allocation8 + %s1102_s15]] }
  0xb3   : > { %s1105_s19 = scalar_lea.vmem %s3805_s1, %s1095_s12 }
  0xb4   : > { %v1126_v20 = vld [vmem:[%s1105_s19] sm:$0x1] }
  0xb5   : > { %3053 = vst [vmem:[%s3492_s11 + $0x1] sm:$0x1] %v1126_v20 }
  0xb6   : > { %1152 = vsyncadd %s2597_s30, 16  ;;  %s2608_s23 = scalar_lea.sflag %s3504_s25, 1 [#allocation5] }
  0xb7   : > { %s1154_s22 = scalar_lea.vmem %s3805_s1, %s1103_s16 }
  0xb8   : > { %v1174_v21 = vld [vmem:[%s1154_s22] sm:$0x1] }
  0xb9   : > { %3057 = vst [vmem:[%s3501_s24 + $0x1] sm:$0x1] %v1174_v21 }
  0xba   : > { %1200 = vsyncadd %s2608_s23, 16  ;;  %s1201_s29 = sadd.s32 2, %s3484_s9  ;;  %s2619_s0 = scalar_lea.sflag %s3495_s20, 2 [#allocation4] }
  0xbb   : > { %s1202_s6 = sld [smem:[#allocation8 + %s1201_s29]]  ;;  %s1203_s12 = sshra.s32 %s1201_s29, 7 }
  0xbc   : > { %s3170_s13 = sshll.u32 %s1203_s12, 7  ;;  %s1208_s14 = sand.u32 127, %s1201_s29 }
  0xbd   : > { %s3171_s30 = sadd.s32 128, %s3170_s13 }
  0xbe   : > { %s1209_s15 = sadd.s32 %s3171_s30, %s1208_s14 }
  0xbf   : > { %s1210_s17 = sld [smem:[#allocation8 + %s1209_s15]] }
  0xc1   : > { %s1212_s16 = scalar_lea.vmem %s3805_s1, %s1202_s6 }
  0xc2   : > { %v1233_v22 = vld [vmem:[%s1212_s16] sm:$0x1] }
  0xc3   : > { %3062 = vst [vmem:[%s3492_s11 + $0x2] sm:$0x1] %v1233_v22 }
  0xc4   : > { %1259 = vsyncadd %s2619_s0, 16  ;;  %s2630_s23 = scalar_lea.sflag %s3504_s25, 2 [#allocation5] }
  0xc5   : > { %s1261_s22 = scalar_lea.vmem %s3805_s1, %s1210_s17 }
  0xc6   : > { %v1281_v23 = vld [vmem:[%s1261_s22] sm:$0x1] }
  0xc7   : > { %3066 = vst [vmem:[%s3501_s24 + $0x2] sm:$0x1] %v1281_v23 }
  0xc8   : > { %1307 = vsyncadd %s2630_s23, 16  ;;  %s1308_s29 = sadd.s32 3, %s3484_s9  ;;  %s2641_s12 = scalar_lea.sflag %s3495_s20, 3 [#allocation4] }
  0xc9   : > { %s1309_s13 = sld [smem:[#allocation8 + %s1308_s29]]  ;;  %s1310_s6 = sshra.s32 %s1308_s29, 7 }
  0xca   : > { %s3172_s14 = sshll.u32 %s1310_s6, 7  ;;  %s1315_s30 = sand.u32 127, %s1308_s29 }
  0xcb   : > { %s3173_s0 = sadd.s32 128, %s3172_s14 }
  0xcc   : > { %s1316_s15 = sadd.s32 %s3173_s0, %s1315_s30 }
  0xcd   : > { %s1317_s18 = sld [smem:[#allocation8 + %s1316_s15]] }
  0xcf   : > { %s1319_s17 = scalar_lea.vmem %s3805_s1, %s1309_s13 }
  0xd0   : > { %v1340_v24 = vld [vmem:[%s1319_s17] sm:$0x1] }
  0xd1   : > { %3071 = vst [vmem:[%s3492_s11 + $0x3] sm:$0x1] %v1340_v24 }
  0xd2   : > { %1366 = vsyncadd %s2641_s12, 16  ;;  %s2652_s23 = scalar_lea.sflag %s3504_s25, 3 [#allocation5] }
  0xd3   : > { %s1368_s22 = scalar_lea.vmem %s3805_s1, %s1317_s18 }
  0xd4   : > { %v1388_v25 = vld [vmem:[%s1368_s22] sm:$0x1] }
  0xd5   : > { %3075 = vst [vmem:[%s3501_s24 + $0x3] sm:$0x1] %v1388_v25 }
  0xd6   : > { %1414 = vsyncadd %s2652_s23, 16  ;;  %s1415_s29 = sadd.s32 4, %s3484_s9  ;;  %s2663_s6 = scalar_lea.sflag %s3495_s20, 4 [#allocation4] }
  0xd7   : > { %s1416_s14 = sld [smem:[#allocation8 + %s1415_s29]]  ;;  %s1417_s13 = sshra.s32 %s1415_s29, 7 }
  0xd8   : > { %s3174_s30 = sshll.u32 %s1417_s13, 7  ;;  %s1422_s0 = sand.u32 127, %s1415_s29 }
  0xd9   : > { %s3175_s12 = sadd.s32 128, %s3174_s30 }
  0xda   : > { %s1423_s15 = sadd.s32 %s3175_s12, %s1422_s0 }
  0xdb   : > { %s1424_s19 = sld [smem:[#allocation8 + %s1423_s15]] }
  0xdd   : > { %s1426_s18 = scalar_lea.vmem %s3805_s1, %s1416_s14 }
  0xde   : > { %v1447_v26 = vld [vmem:[%s1426_s18] sm:$0x1] }
  0xdf   : > { %3080 = vst [vmem:[%s3492_s11 + $0x4] sm:$0x1] %v1447_v26 }
  0xe0   : > { %1473 = vsyncadd %s2663_s6, 16  ;;  %s2674_s23 = scalar_lea.sflag %s3504_s25, 4 [#allocation5] }
  0xe1   : > { %s1475_s22 = scalar_lea.vmem %s3805_s1, %s1424_s19 }
  0xe2   : > { %v1495_v27 = vld [vmem:[%s1475_s22] sm:$0x1] }
  0xe3   : > { %3084 = vst [vmem:[%s3501_s24 + $0x4] sm:$0x1] %v1495_v27 }
  0xe4   : > { %1521 = vsyncadd %s2674_s23, 16  ;;  %s1522_s29 = sadd.s32 5, %s3484_s9  ;;  %s2685_s13 = scalar_lea.sflag %s3495_s20, 5 [#allocation4] }
  0xe5   : > { %s1523_s30 = sld [smem:[#allocation8 + %s1522_s29]]  ;;  %s1524_s14 = sshra.s32 %s1522_s29, 7 }
  0xe6   : > { %s3176_s0 = sshll.u32 %s1524_s14, 7  ;;  %s1529_s12 = sand.u32 127, %s1522_s29 }
  0xe7   : > { %s3177_s6 = sadd.s32 128, %s3176_s0 }
  0xe8   : > { %s1530_s15 = sadd.s32 %s3177_s6, %s1529_s12 }
  0xe9   : > { %s1531_s16 = sld [smem:[#allocation8 + %s1530_s15]] }
  0xeb   : > { %s1533_s19 = scalar_lea.vmem %s3805_s1, %s1523_s30 }
  0xec   : > { %v1554_v28 = vld [vmem:[%s1533_s19] sm:$0x1] }
  0xed   : > { %3089 = vst [vmem:[%s3492_s11 + $0x5] sm:$0x1] %v1554_v28 }
  0xee   : > { %1580 = vsyncadd %s2685_s13, 16  ;;  %s2696_s23 = scalar_lea.sflag %s3504_s25, 5 [#allocation5] }
  0xef   : > { %s1582_s22 = scalar_lea.vmem %s3805_s1, %s1531_s16 }
  0xf0   : > { %v1602_v29 = vld [vmem:[%s1582_s22] sm:$0x1] }
  0xf1   : > { %3093 = vst [vmem:[%s3501_s24 + $0x5] sm:$0x1] %v1602_v29 }
  0xf2   : > { %1628 = vsyncadd %s2696_s23, 16  ;;  %s1629_s29 = sadd.s32 6, %s3484_s9  ;;  %s2707_s14 = scalar_lea.sflag %s3495_s20, 6 [#allocation4] }
  0xf3   : > { %s1630_s0 = sld [smem:[#allocation8 + %s1629_s29]]  ;;  %s1631_s30 = sshra.s32 %s1629_s29, 7 }
  0xf4   : > { %s3178_s12 = sshll.u32 %s1631_s30, 7  ;;  %s1636_s6 = sand.u32 127, %s1629_s29 }
  0xf5   : > { %s3179_s13 = sadd.s32 128, %s3178_s12 }
  0xf6   : > { %s1637_s15 = sadd.s32 %s3179_s13, %s1636_s6 }
  0xf7   : > { %s1638_s17 = sld [smem:[#allocation8 + %s1637_s15]] }
  0xf9   : > { %s1640_s16 = scalar_lea.vmem %s3805_s1, %s1630_s0 }
  0xfa   : > { %v1661_v30 = vld [vmem:[%s1640_s16] sm:$0x1] }
  0xfb   : > { %3098 = vst [vmem:[%s3492_s11 + $0x6] sm:$0x1] %v1661_v30 }
  0xfc   : > { %1687 = vsyncadd %s2707_s14, 16  ;;  %s2718_s23 = scalar_lea.sflag %s3504_s25, 6 [#allocation5] }
  0xfd   : > { %s1689_s22 = scalar_lea.vmem %s3805_s1, %s1638_s17 }
  0xfe   : > { %v1709_v31 = vld [vmem:[%s1689_s22] sm:$0x1] }
  0xff   : > { %3102 = vst [vmem:[%s3501_s24 + $0x6] sm:$0x1] %v1709_v31 }
 0x100   : > { %1735 = vsyncadd %s2718_s23, 16  ;;  %s1736_s29 = sadd.s32 7, %s3484_s9  ;;  %s2729_s30 = scalar_lea.sflag %s3495_s20, 7 [#allocation4] }
 0x101   : > { %s1737_s12 = sld [smem:[#allocation8 + %s1736_s29]]  ;;  %s1738_s0 = sshra.s32 %s1736_s29, 7 }
 0x102   : > { %s3180_s6 = sshll.u32 %s1738_s0, 7  ;;  %s1743_s13 = sand.u32 127, %s1736_s29 }
 0x103   : > { %s3181_s14 = sadd.s32 128, %s3180_s6 }
 0x104   : > { %s1744_s15 = sadd.s32 %s3181_s14, %s1743_s13 }
 0x105   : > { %s1745_s18 = sld [smem:[#allocation8 + %s1744_s15]] }
 0x107   : > { %s1747_s17 = scalar_lea.vmem %s3805_s1, %s1737_s12 }
 0x108   : > { %v1768_v32 = vld [vmem:[%s1747_s17] sm:$0x1] }
 0x109   : > { %3107 = vst [vmem:[%s3492_s11 + $0x7] sm:$0x1] %v1768_v32 }
 0x10a   : > { %1794 = vsyncadd %s2729_s30, 16  ;;  %s2740_s20 = scalar_lea.sflag %s3504_s25, 7 [#allocation5] }
 0x10b   : > { %s1796_s9 = scalar_lea.vmem %s3805_s1, %s1745_s18 }
 0x10c   : > { %v1816_v33 = vld [vmem:[%s1796_s9] sm:$0x1] }
 0x10d   : > { %3111 = vst [vmem:[%s3501_s24 + $0x7] sm:$0x1] %v1816_v33 }
 0x10e   : > { %1842 = vsyncadd %s2740_s20, 16 }
 0x10f PF: > { %s1843_s22 = scalar_lea.vmem [#allocation2], %s3447_s2  ;;  %s1845_s23 = scalar_lea.vmem [#allocation3], %s3447_s2  ;;  %v3315_v43 = vmov (%p3476_p7), 0   ;;  %v3598_v58 = vld [vmem:[%s3807_s3] ss:$0 sm:$0xff] (%p3476_p7) }
 0x110   : > { %v1844_v34 = vld [vmem:[%s1843_s22] sm:$0xff]  ;;  %s3112_s11 = sshll.u32 %s3311_s28, 3  ;;  %s3814_s28 = smov %s980_s26  ;;  %3194 = vset.pattern.permute.xlu1 (%p3476_p7), %v3315_v43  ;;  %3193 = vset.pattern.permute.xlu0 (%p3476_p7), %v3315_v43 }
 0x111   : > { %s1852_s29 = scalar_lea.vmem [#allocation6], %s3112_s11  ;;  %v3603_v59 = vld [vmem:[%s3808_s4] ss:$0 sm:$0xff] (%p3476_p7)  ;;  %s2073_s4 = sld [smem:[#allocation9]] (%p3476_p7) }
 0x112   : > { %v1853_v38 = vld [vmem:[%s1852_s29] sm:$0xff] }
 0x113   :  { %v3612_v4 = vld [vmem:[%s3809_s5] ss:$0 sm:$0xff] (%p3476_p7) }
 0x114   : > { %v1846_v35 = vld [vmem:[%s1845_s23] sm:$0xff] }
 0x115   : > { %v1847_v36 = vmul.f32 %v1846_v35, %v1844_v34 }
 0x117   : > { %v1848_v37 = vmul.f32 %v3434_v17, %v1847_v36 }
 0x119   : > { %1849 = vadd.xlane.f32.xlu0 %v1848_v37 }
 0x1a3   :  { %910 = sbr.rel (!%p3476_p7) target bundleno = 113 (0x71), region = 1488 }
 0x1a6   : > { %v1850_v39 = vpop.xlane.xlu0 %1849 }
 0x1a7   : > { %v1854_v40 = vadd.f32 %v1853_v38, %v1850_v39 }
 0x1a9   : > { %1856 = vst.msk [vmem:[%s1852_s29] sm:$0xff] %vm36_vm0, %v1854_v40 }
 0x1b0   :  { %v1862_v41 = vld [vmem:[#allocation6 + $0x10] sm:$0xff]  ;;  %v1860_v42 = vld [vmem:[#allocation6] sm:$0xff]  ;;  %v1863_v44 = vld [vmem:[#allocation6 + $0x18] sm:$0xff] }
 0x1b1   :  { %1889 = vperm.xlu1 %3194, %v1862_v41   ;;  %1879 = vperm.xlu0 %3193, %v1860_v42   ;;  %v1861_v45 = vld [vmem:[#allocation6 + $0x8] sm:$0xff]  ;;  %v1864_v47 = vld [vmem:[#allocation6 + $0x20] sm:$0xff]  ;;  %v1867_v48 = vld [vmem:[#allocation6 + $0x38] sm:$0xff] }
 0x1b2   :  { %v1865_v46 = vld [vmem:[#allocation6 + $0x28] sm:$0xff]  ;;  %v1866_v49 = vld [vmem:[#allocation6 + $0x30] sm:$0xff]  ;;  %v1868_v51 = vld [vmem:[#allocation6 + $0x40] sm:$0xff] }
 0x1b3   :  { %v1869_v50 = vld [vmem:[#allocation6 + $0x48] sm:$0xff]  ;;  %v1871_v52 = vld [vmem:[#allocation6 + $0x58] sm:$0xff]  ;;  %v1870_v53 = vld [vmem:[#allocation6 + $0x50] sm:$0xff] }
 0x1b4   :  { %v1873_v54 = vld [vmem:[#allocation6 + $0x68] sm:$0xff]  ;;  %v1872_v55 = vld [vmem:[#allocation6 + $0x60] sm:$0xff]  ;;  %v1875_v56 = vld [vmem:[#allocation6 + $0x78] sm:$0xff] }
 0x1b5   :  { %1894 = vperm.xlu1 %3194, %v1863_v44   ;;  %1884 = vperm.xlu0 %3193, %v1861_v45   ;;  %v1874_v57 = vld [vmem:[#allocation6 + $0x70] sm:$0xff] }
 0x1b9   :  { %1904 = vperm.xlu1 %3194, %v1865_v46   ;;  %1899 = vperm.xlu0 %3193, %v1864_v47  }
 0x1bd   :  { %1914 = vperm.xlu1 %3194, %v1867_v48   ;;  %1909 = vperm.xlu0 %3193, %v1866_v49  }
 0x1c1   :  { %1924 = vperm.xlu1 %3194, %v1869_v50   ;;  %1919 = vperm.xlu0 %3193, %v1868_v51  }
 0x1c5   :  { %1934 = vperm.xlu1 %3194, %v1871_v52   ;;  %1929 = vperm.xlu0 %3193, %v1870_v53  }
 0x1c9   :  { %1944 = vperm.xlu1 %3194, %v1873_v54   ;;  %1939 = vperm.xlu0 %3193, %v1872_v55  }
 0x1cd   :  { %1954 = vperm.xlu1 %3194, %v1875_v56   ;;  %1949 = vperm.xlu0 %3193, %v1874_v57  }
 0x230   :  { %v1890_v60 = vpop.permute.xlu1 %1889  ;;  %v1880_v61 = vpop.permute.xlu0 %1879 }
 0x231   :  { %v1965_v62 = vmul.f32 %v3598_v58, %v1890_v60  ;;  %v1963_v63 = vmul.f32 %v3598_v58, %v1880_v61 }
 0x233   :  { %v1988_v0 = vadd.f32 %v3603_v59, %v1965_v62  ;;  %v1986_v1 = vadd.f32 %v3603_v59, %v1963_v63 }
 0x234   :  { %v1895_v2 = vpop.permute.xlu1 %1894  ;;  %v1885_v3 = vpop.permute.xlu0 %1884 }
 0x235   :  { %v2004_v5 = vmax.f32 %v1988_v0, 0.0  ;;  %v2002_v6 = vmax.f32 %v1986_v1, 0.0  ;;  %v1966_v7 = vmul.f32 %v3598_v58, %v1895_v2  ;;  %v1964_v8 = vmul.f32 %v3598_v58, %v1885_v3 }
 0x237   :  { %v1989_v9 = vadd.f32 %v3603_v59, %v1966_v7  ;;  %v1987_v10 = vadd.f32 %v3603_v59, %v1964_v8  ;;  %v2025_v11 = vmul.f32 %v3612_v4, %v2002_v6  ;;  %v2027_v17 = vmul.f32 %v3612_v4, %v2004_v5 }
 0x238   :  { %v1905_v12 = vpop.permute.xlu1 %1904  ;;  %v1900_v13 = vpop.permute.xlu0 %1899 }
 0x239   :  { %v2003_v14 = vmax.f32 %v1987_v10, 0.0  ;;  %v1968_v15 = vmul.f32 %v3598_v58, %v1905_v12  ;;  %v1967_v16 = vmul.f32 %v3598_v58, %v1900_v13  ;;  %2041 = vadd.xlane.f32.xlu0 %v2025_v11  ;;  %v2005_v18 = vmax.f32 %v1989_v9, 0.0 }
 0x23b   :  { %v1991_v19 = vadd.f32 %v3603_v59, %v1968_v15  ;;  %v1990_v20 = vadd.f32 %v3603_v59, %v1967_v16  ;;  %v2026_v21 = vmul.f32 %v3612_v4, %v2003_v14  ;;  %v2028_v27 = vmul.f32 %v3612_v4, %v2005_v18 }
 0x23c   :  { %v1915_v22 = vpop.permute.xlu1 %1914  ;;  %v1910_v23 = vpop.permute.xlu0 %1909  ;;  %v3658_v15 = vstv %s2073_s4 }
 0x23d   :  { %v2006_v24 = vmax.f32 %v1990_v20, 0.0  ;;  %v1970_v25 = vmul.f32 %v3598_v58, %v1915_v22  ;;  %v1969_v26 = vmul.f32 %v3598_v58, %v1910_v23  ;;  %2045 = vadd.xlane.f32.xlu0 %v2027_v17  ;;  %2043 = vadd.xlane.f32.xlu1 %v2026_v21  ;;  %v2007_v28 = vmax.f32 %v1991_v19, 0.0 }
 0x23f   :  { %v1993_v29 = vadd.f32 %v3603_v59, %v1970_v25  ;;  %v1992_v30 = vadd.f32 %v3603_v59, %v1969_v26  ;;  %v2029_v31 = vmul.f32 %v3612_v4, %v2006_v24  ;;  %v2030_v40 = vmul.f32 %v3612_v4, %v2007_v28 }
 0x240   :  { %v1925_v32 = vpop.permute.xlu1 %1924  ;;  %v1920_v33 = vpop.permute.xlu0 %1919 }
 0x241   :  { %v2008_v34 = vmax.f32 %v1992_v30, 0.0  ;;  %v1972_v35 = vmul.f32 %v3598_v58, %v1925_v32  ;;  %v1971_v36 = vmul.f32 %v3598_v58, %v1920_v33  ;;  %2047 = vadd.xlane.f32.xlu0 %v2028_v27  ;;  %2049 = vadd.xlane.f32.xlu1 %v2029_v31  ;;  %v2009_v37 = vmax.f32 %v1993_v29, 0.0 }
 0x243   :  { %v1995_v38 = vadd.f32 %v3603_v59, %v1972_v35  ;;  %v1994_v39 = vadd.f32 %v3603_v59, %v1971_v36  ;;  %v2031_v41 = vmul.f32 %v3612_v4, %v2008_v34  ;;  %v2032_v47 = vmul.f32 %v3612_v4, %v2009_v37 }
 0x244   :  { %v1935_v42 = vpop.permute.xlu1 %1934  ;;  %v1930_v43 = vpop.permute.xlu0 %1929 }
 0x245   :  { %v2010_v44 = vmax.f32 %v1994_v39, 0.0  ;;  %v1974_v45 = vmul.f32 %v3598_v58, %v1935_v42  ;;  %v1973_v46 = vmul.f32 %v3598_v58, %v1930_v43  ;;  %2051 = vadd.xlane.f32.xlu0 %v2030_v40  ;;  %2053 = vadd.xlane.f32.xlu1 %v2031_v41  ;;  %v2011_v48 = vmax.f32 %v1995_v38, 0.0 }
 0x247   :  { %v1997_v49 = vadd.f32 %v3603_v59, %v1974_v45  ;;  %v1996_v50 = vadd.f32 %v3603_v59, %v1973_v46  ;;  %v2033_v51 = vmul.f32 %v3612_v4, %v2010_v44  ;;  %v2034_v62 = vmul.f32 %v3612_v4, %v2011_v48 }
 0x248   :  { %v1945_v52 = vpop.permute.xlu1 %1944  ;;  %v1940_v53 = vpop.permute.xlu0 %1939 }
 0x249   :  { %v2012_v54 = vmax.f32 %v1996_v50, 0.0  ;;  %v1976_v55 = vmul.f32 %v3598_v58, %v1945_v52  ;;  %v1975_v56 = vmul.f32 %v3598_v58, %v1940_v53  ;;  %2055 = vadd.xlane.f32.xlu0 %v2032_v47  ;;  %2057 = vadd.xlane.f32.xlu1 %v2033_v51  ;;  %v2013_v57 = vmax.f32 %v1997_v49, 0.0 }
 0x24b   :  { %v1999_v60 = vadd.f32 %v3603_v59, %v1976_v55  ;;  %v1998_v61 = vadd.f32 %v3603_v59, %v1975_v56  ;;  %v2035_v63 = vmul.f32 %v3612_v4, %v2012_v54  ;;  %v2036_v6 = vmul.f32 %v3612_v4, %v2013_v57 }
 0x24c   :  { %v1955_v0 = vpop.permute.xlu1 %1954  ;;  %v1950_v1 = vpop.permute.xlu0 %1949 }
 0x24d   :  { %v2014_v2 = vmax.f32 %v1998_v61, 0.0  ;;  %v1978_v3 = vmul.f32 %v3598_v58, %v1955_v0  ;;  %v1977_v5 = vmul.f32 %v3598_v58, %v1950_v1  ;;  %2059 = vadd.xlane.f32.xlu0 %v2034_v62  ;;  %2061 = vadd.xlane.f32.xlu1 %v2035_v63  ;;  %v2015_v7 = vmax.f32 %v1999_v60, 0.0 }
 0x24f   :  { %v2001_v8 = vadd.f32 %v3603_v59, %v1978_v3  ;;  %v2000_v9 = vadd.f32 %v3603_v59, %v1977_v5  ;;  %v2037_v10 = vmul.f32 %v3612_v4, %v2014_v2  ;;  %v2038_v13 = vmul.f32 %v3612_v4, %v2015_v7 }
 0x251   :  { %v2016_v11 = vmax.f32 %v2000_v9, 0.0  ;;  %2063 = vadd.xlane.f32.xlu0 %v2036_v6  ;;  %2065 = vadd.xlane.f32.xlu1 %v2037_v10  ;;  %v2017_v12 = vmax.f32 %v2001_v8, 0.0 }
 0x253   :  { %v2039_v14 = vmul.f32 %v3612_v4, %v2016_v11  ;;  %v2040_v58 = vmul.f32 %v3612_v4, %v2017_v12 }
 0x255   :  { %2067 = vadd.xlane.f32.xlu0 %v2038_v13  ;;  %2069 = vadd.xlane.f32.xlu1 %v2039_v14 }
 0x259   :  { %2071 = vadd.xlane.f32.xlu0 %v2040_v58 }
 0x2c6   :  { %v2042_v16 = vpop.xlane.xlu0 %2041 }
 0x2c7   :  { %v2075_v59 = vadd.f32 %v3658_v15, %v2042_v16 }
 0x2c9   :  { %2092 = vst.msk [vmem:[%s3811_s7] sm:$0xff] %vm36_vm0, %v2075_v59  ;;  %v3116_v17 = vmul.f32 -1.442695, %v2075_v59 }
 0x2ca   :  { %v2044_v18 = vpop.xlane.xlu1 %2043  ;;  %v2046_v19 = vpop.xlane.xlu0 %2045 }
 0x2cb   :  { %3195 = vpow2.f32 %v3116_v17  ;;  %v2076_v20 = vadd.f32 %v3658_v15, %v2044_v18  ;;  %v2077_v4 = vadd.f32 %v3658_v15, %v2046_v19 }
 0x2cd   :  { %2093 = vst.msk [vmem:[%s3811_s7 + $0x8] sm:$0xff] %vm36_vm0, %v2076_v20  ;;  %v3117_v21 = vmul.f32 -1.442695, %v2076_v20  ;;  %2094 = vst.msk [vmem:[%s3811_s7 + $0x10] sm:$0xff] %vm36_vm0, %v2077_v4  ;;  %v3118_v22 = vmul.f32 -1.442695, %v2077_v4 }
 0x2ce   :  { %v2050_v23 = vpop.xlane.xlu1 %2049  ;;  %v2048_v24 = vpop.xlane.xlu0 %2047 }
 0x2cf   :  { %3197 = vpow2.f32 %v3117_v21  ;;  %v2079_v25 = vadd.f32 %v3658_v15, %v2050_v23  ;;  %v2078_v26 = vadd.f32 %v3658_v15, %v2048_v24 }
 0x2d0   :  { %3199 = vpow2.f32 %v3118_v22 }
 0x2d1   :  { %2096 = vst.msk [vmem:[%s3811_s7 + $0x20] sm:$0xff] %vm36_vm0, %v2079_v25  ;;  %v3120_v27 = vmul.f32 -1.442695, %v2079_v25  ;;  %2095 = vst.msk [vmem:[%s3811_s7 + $0x18] sm:$0xff] %vm36_vm0, %v2078_v26  ;;  %v3119_v28 = vmul.f32 -1.442695, %v2078_v26 }
 0x2d2   :  { %v2054_v29 = vpop.xlane.xlu1 %2053  ;;  %v2052_v30 = vpop.xlane.xlu0 %2051 }
 0x2d3   :  { %3201 = vpow2.f32 %v3120_v27  ;;  %v2081_v31 = vadd.f32 %v3658_v15, %v2054_v29  ;;  %v2080_v32 = vadd.f32 %v3658_v15, %v2052_v30 }
 0x2d4   :  { %3203 = vpow2.f32 %v3119_v28 }
 0x2d5   :  { %v3196_v33 = vpop.eup %3195  ;;  %2098 = vst.msk [vmem:[%s3811_s7 + $0x30] sm:$0xff] %vm36_vm0, %v2081_v31  ;;  %v3122_v34 = vmul.f32 -1.442695, %v2081_v31  ;;  %2097 = vst.msk [vmem:[%s3811_s7 + $0x28] sm:$0xff] %vm36_vm0, %v2080_v32  ;;  %v3121_v35 = vmul.f32 -1.442695, %v2080_v32 }
 0x2d6   :  { %v2156_v36 = vadd.f32 1.0, %v3196_v33  ;;  %v2058_v37 = vpop.xlane.xlu1 %2057  ;;  %v2056_v38 = vpop.xlane.xlu0 %2055 }
 0x2d7   :  { %3205 = vpow2.f32 %v3122_v34  ;;  %v2083_v39 = vadd.f32 %v3658_v15, %v2058_v37  ;;  %v2082_v40 = vadd.f32 %v3658_v15, %v2056_v38 }
 0x2d8   :  { %3207 = vrcp.f32 %v2156_v36 }
 0x2d9   :  { %v3198_v41 = vpop.eup %3197  ;;  %3209 = vpow2.f32 %v3121_v35  ;;  %2100 = vst.msk [vmem:[%s3811_s7 + $0x40] sm:$0xff] %vm36_vm0, %v2083_v39  ;;  %v3124_v42 = vmul.f32 -1.442695, %v2083_v39  ;;  %2099 = vst.msk [vmem:[%s3811_s7 + $0x38] sm:$0xff] %vm36_vm0, %v2082_v40  ;;  %v3123_v45 = vmul.f32 -1.442695, %v2082_v40 }
 0x2da   :  { %v3200_v43 = vpop.eup %3199  ;;  %v2157_v44 = vadd.f32 1.0, %v3198_v41  ;;  %v2062_v46 = vpop.xlane.xlu1 %2061 }
 0x2db   :  { %v2060_v47 = vpop.xlane.xlu0 %2059  ;;  %v2158_v48 = vadd.f32 1.0, %v3200_v43  ;;  %3211 = vpow2.f32 %v3124_v42  ;;  %v2085_v49 = vadd.f32 %v3658_v15, %v2062_v46 }
 0x2dc   :  { %v2084_v50 = vadd.f32 %v3658_v15, %v2060_v47  ;;  %3213 = vrcp.f32 %v2157_v44 }
 0x2dd   :  { %v3202_v51 = vpop.eup %3201  ;;  %3215 = vrcp.f32 %v2158_v48  ;;  %2102 = vst.msk [vmem:[%s3811_s7 + $0x50] sm:$0xff] %vm36_vm0, %v2085_v49  ;;  %v3126_v52 = vmul.f32 -1.442695, %v2085_v49 }
 0x2de   :  { %2101 = vst.msk [vmem:[%s3811_s7 + $0x48] sm:$0xff] %vm36_vm0, %v2084_v50  ;;  %v3204_v53 = vpop.eup %3203  ;;  %v2160_v54 = vadd.f32 1.0, %v3202_v51  ;;  %3217 = vpow2.f32 %v3123_v45  ;;  %v3125_v55 = vmul.f32 -1.442695, %v2084_v50  ;;  %v2066_v56 = vpop.xlane.xlu1 %2065 }
 0x2df   :  { %v2064_v57 = vpop.xlane.xlu0 %2063  ;;  %v2159_v60 = vadd.f32 1.0, %v3204_v53  ;;  %3219 = vpow2.f32 %v3126_v52  ;;  %v2087_v61 = vadd.f32 %v3658_v15, %v2066_v56 }
 0x2e0   :  { %v2086_v62 = vadd.f32 %v3658_v15, %v2064_v57  ;;  %3221 = vrcp.f32 %v2160_v54 }
 0x2e1   :  { %v3206_v63 = vpop.eup %3205  ;;  %3223 = vrcp.f32 %v2159_v60  ;;  %2104 = vst.msk [vmem:[%s3811_s7 + $0x60] sm:$0xff] %vm36_vm0, %v2087_v61  ;;  %v3128_v0 = vmul.f32 -1.442695, %v2087_v61 }
 0x2e2   :  { %2103 = vst.msk [vmem:[%s3811_s7 + $0x58] sm:$0xff] %vm36_vm0, %v2086_v62  ;;  %v3127_v1 = vmul.f32 -1.442695, %v2086_v62  ;;  %v3208_v2 = vpop.eup %3207  ;;  %v2162_v3 = vadd.f32 1.0, %v3206_v63  ;;  %3225 = vpow2.f32 %v3125_v55  ;;  %v2070_v5 = vpop.xlane.xlu1 %2069 }
 0x2e3   :  { %v2068_v6 = vpop.xlane.xlu0 %2067  ;;  %v3210_v7 = vpop.eup %3209  ;;  %2204 = vst.msk [vmem:[%s3812_s8] sm:$0xff] %vm36_vm0, %v3208_v2  ;;  %3227 = vpow2.f32 %v3128_v0  ;;  %v2089_v8 = vadd.f32 %v3658_v15, %v2070_v5 }
 0x2e4   :  { %v2088_v9 = vadd.f32 %v3658_v15, %v2068_v6  ;;  %3229 = vrcp.f32 %v2162_v3  ;;  %v2161_v10 = vadd.f32 1.0, %v3210_v7 }
 0x2e5   :  { %v3212_v11 = vpop.eup %3211  ;;  %3231 = vpow2.f32 %v3127_v1  ;;  %2106 = vst.msk [vmem:[%s3811_s7 + $0x70] sm:$0xff] %vm36_vm0, %v2089_v8  ;;  %v3130_v12 = vmul.f32 -1.442695, %v2089_v8 }
 0x2e6   :  { %2105 = vst.msk [vmem:[%s3811_s7 + $0x68] sm:$0xff] %vm36_vm0, %v2088_v9  ;;  %v3129_v13 = vmul.f32 -1.442695, %v2088_v9  ;;  %v3214_v14 = vpop.eup %3213  ;;  %3233 = vrcp.f32 %v2161_v10  ;;  %v2164_v58 = vadd.f32 1.0, %v3212_v11 }
 0x2e7   :  { %v2072_v16 = vpop.xlane.xlu0 %2071  ;;  %v3216_v59 = vpop.eup %3215  ;;  %2205 = vst.msk [vmem:[%s3812_s8 + $0x8] sm:$0xff] %vm36_vm0, %v3214_v14  ;;  %3235 = vpow2.f32 %v3130_v12 }
 0x2e8   :  { %v2090_v17 = vadd.f32 %v3658_v15, %v2072_v16  ;;  %v3218_v18 = vpop.eup %3217  ;;  %2206 = vst.msk [vmem:[%s3812_s8 + $0x10] sm:$0xff] %vm36_vm0, %v3216_v59  ;;  %3237 = vrcp.f32 %v2164_v58 }
 0x2e9   :  { %v3220_v19 = vpop.eup %3219  ;;  %v2163_v20 = vadd.f32 1.0, %v3218_v18  ;;  %3239 = vpow2.f32 %v3129_v13 }
 0x2ea   :  { %2107 = vst.msk [vmem:[%s3811_s7 + $0x78] sm:$0xff] %vm36_vm0, %v2090_v17  ;;  %v3131_v4 = vmul.f32 -1.442695, %v2090_v17  ;;  %v3222_v21 = vpop.eup %3221  ;;  %v2166_v22 = vadd.f32 1.0, %v3220_v19 }
 0x2eb   :  { %v3224_v23 = vpop.eup %3223  ;;  %2208 = vst.msk [vmem:[%s3812_s8 + $0x20] sm:$0xff] %vm36_vm0, %v3222_v21  ;;  %3241 = vrcp.f32 %v2163_v20 }
 0x2ec   :  { %v3226_v15 = vpop.eup %3225  ;;  %2207 = vst.msk [vmem:[%s3812_s8 + $0x18] sm:$0xff] %vm36_vm0, %v3224_v23  ;;  %3243 = vrcp.f32 %v2166_v22 }
 0x2ed   :  { %v3228_v24 = vpop.eup %3227  ;;  %v2165_v25 = vadd.f32 1.0, %v3226_v15  ;;  %3245 = vpow2.f32 %v3131_v4 }
 0x2ee   :  { %v3230_v26 = vpop.eup %3229  ;;  %v2168_v27 = vadd.f32 1.0, %v3228_v24 }
 0x2ef   :  { %v3232_v28 = vpop.eup %3231  ;;  %2210 = vst.msk [vmem:[%s3812_s8 + $0x30] sm:$0xff] %vm36_vm0, %v3230_v26  ;;  %3247 = vrcp.f32 %v2165_v25 }
 0x2f0   :  { %v3234_v29 = vpop.eup %3233  ;;  %3249 = vrcp.f32 %v2168_v27  ;;  %v2167_v30 = vadd.f32 1.0, %v3232_v28 }
 0x2f1   :  { %v3236_v31 = vpop.eup %3235  ;;  %2209 = vst.msk [vmem:[%s3812_s8 + $0x28] sm:$0xff] %vm36_vm0, %v3234_v29 }
 0x2f2   :  { %v3238_v32 = vpop.eup %3237  ;;  %3251 = vrcp.f32 %v2167_v30  ;;  %v2170_v33 = vadd.f32 1.0, %v3236_v31 }
 0x2f3   :  { %v3240_v34 = vpop.eup %3239  ;;  %2212 = vst.msk [vmem:[%s3812_s8 + $0x40] sm:$0xff] %vm36_vm0, %v3238_v32 }
 0x2f4   :  { %3253 = vrcp.f32 %v2170_v33  ;;  %v2169_v35 = vadd.f32 1.0, %v3240_v34 }
 0x2f5   :  { %v3242_v36 = vpop.eup %3241 }
 0x2f6   :  { %v3244_v37 = vpop.eup %3243  ;;  %2211 = vst.msk [vmem:[%s3812_s8 + $0x38] sm:$0xff] %vm36_vm0, %v3242_v36  ;;  %3255 = vrcp.f32 %v2169_v35 }
 0x2f7   :  { %v3246_v38 = vpop.eup %3245  ;;  %2214 = vst.msk [vmem:[%s3812_s8 + $0x50] sm:$0xff] %vm36_vm0, %v3244_v37 }
 0x2f8   :  { %v2171_v39 = vadd.f32 1.0, %v3246_v38 }
 0x2f9   :  { %v3248_v40 = vpop.eup %3247 }
 0x2fa   :  { %v3250_v41 = vpop.eup %3249  ;;  %2213 = vst.msk [vmem:[%s3812_s8 + $0x48] sm:$0xff] %vm36_vm0, %v3248_v40  ;;  %3257 = vrcp.f32 %v2171_v39 }
 0x2fb   :  { %2216 = vst.msk [vmem:[%s3812_s8 + $0x60] sm:$0xff] %vm36_vm0, %v3250_v41 }
 0x2fc   :  { %v3252_v42 = vpop.eup %3251 }
 0x2fd   :  { %2215 = vst.msk [vmem:[%s3812_s8 + $0x58] sm:$0xff] %vm36_vm0, %v3252_v42 }
 0x2fe   :  { %v3254_v43 = vpop.eup %3253 }
 0x2ff   :  { %2218 = vst.msk [vmem:[%s3812_s8 + $0x70] sm:$0xff] %vm36_vm0, %v3254_v43 }
 0x300   :  { %v3256_v44 = vpop.eup %3255 }
 0x301   :  { %2217 = vst.msk [vmem:[%s3812_s8 + $0x68] sm:$0xff] %vm36_vm0, %v3256_v44 }
 0x304   :  { %v3258_v45 = vpop.eup %3257 }
 0x305   :  { %2219 = vst.msk [vmem:[%s3812_s8 + $0x78] sm:$0xff] %vm36_vm0, %v3258_v45 }
 0x306   :  { %2228 = vsyncmov [#allocation4] }
 0x309   :  { %s2229_s0 = vpop.sfrf %2228 }
 0x30a   :  { %p3132_p8 = scmp.ne.s32.totalorder %s2229_s0, 0 }
 0x30c   :  { %2233 = shalt.err (%p3132_p8)  }
 0x30d   :  { %2235 = vsyncmov [#allocation4 + $0x1] }
 0x310   :  { %s2236_s6 = vpop.sfrf %2235 }
 0x311   :  { %p3133_p9 = scmp.ne.s32.totalorder %s2236_s6, 0 }
 0x313   :  { %2240 = shalt.err (%p3133_p9)  }
 0x314   :  { %2242 = vsyncmov [#allocation4 + $0x2] }
 0x317   :  { %s2243_s13 = vpop.sfrf %2242 }
 0x318   :  { %p3134_p10 = scmp.ne.s32.totalorder %s2243_s13, 0 }
 0x31a   :  { %2247 = shalt.err (%p3134_p10)  }
 0x31b   :  { %2249 = vsyncmov [#allocation4 + $0x3] }
 0x31e   :  { %s2250_s14 = vpop.sfrf %2249 }
 0x31f   :  { %p3135_p11 = scmp.ne.s32.totalorder %s2250_s14, 0 }
 0x321   :  { %2254 = shalt.err (%p3135_p11)  }
 0x322   :  { %2256 = vsyncmov [#allocation4 + $0x4] }
 0x325   :  { %s2257_s15 = vpop.sfrf %2256 }
 0x326   :  { %p3136_p12 = scmp.ne.s32.totalorder %s2257_s15, 0 }
 0x328   :  { %2261 = shalt.err (%p3136_p12)  }
 0x329   :  { %2263 = vsyncmov [#allocation4 + $0x5] }
 0x32c   :  { %s2264_s8 = vpop.sfrf %2263 }
 0x32d   :  { %p3137_p13 = scmp.ne.s32.totalorder %s2264_s8, 0 }
 0x32f   :  { %2268 = shalt.err (%p3137_p13)  }
 0x330   :  { %2270 = vsyncmov [#allocation4 + $0x6] }
 0x333   :  { %s2271_s18 = vpop.sfrf %2270 }
 0x334   :  { %p3138_p0 = scmp.ne.s32.totalorder %s2271_s18, 0 }
 0x336   :  { %2275 = shalt.err (%p3138_p0)  }
 0x337   :  { %2277 = vsyncmov [#allocation4 + $0x7] }
 0x33a   :  { %s2278_s19 = vpop.sfrf %2277 }
 0x33b   :  { %p3139_p1 = scmp.ne.s32.totalorder %s2278_s19, 0 }
 0x33d   :  { %2282 = shalt.err (%p3139_p1)  }
 0x33e   :  { %2284 = vsyncmov [#allocation4 + $0x8] }
 0x341   :  { %s2285_s16 = vpop.sfrf %2284 }
 0x342   :  { %p3140_p2 = scmp.ne.s32.totalorder %s2285_s16, 0 }
 0x344   :  { %2289 = shalt.err (%p3140_p2)  }
 0x345   :  { %2291 = vsyncmov [#allocation4 + $0x9] }
 0x348   :  { %s2292_s7 = vpop.sfrf %2291 }
 0x349   :  { %p3141_p3 = scmp.ne.s32.totalorder %s2292_s7, 0 }
 0x34b   :  { %2296 = shalt.err (%p3141_p3)  }
 0x34c   :  { %2298 = vsyncmov [#allocation4 + $0xa] }
 0x34f   :  { %s2299_s17 = vpop.sfrf %2298 }
 0x350   :  { %p3142_p4 = scmp.ne.s32.totalorder %s2299_s17, 0 }
 0x352   :  { %2303 = shalt.err (%p3142_p4)  }
 0x353   :  { %2305 = vsyncmov [#allocation4 + $0xb] }
 0x356   :  { %s2306_s10 = vpop.sfrf %2305 }
 0x357   :  { %p3143_p5 = scmp.ne.s32.totalorder %s2306_s10, 0 }
 0x359   :  { %2310 = shalt.err (%p3143_p5)  }
 0x35a   :  { %2312 = vsyncmov [#allocation4 + $0xc] }
 0x35d   :  { %s2313_s21 = vpop.sfrf %2312 }
 0x35e   :  { %p3144_p6 = scmp.ne.s32.totalorder %s2313_s21, 0 }
 0x360   :  { %2317 = shalt.err (%p3144_p6)  }
 0x361   :  { %2319 = vsyncmov [#allocation4 + $0xd] }
 0x364   :  { %s2320_s9 = vpop.sfrf %2319 }
 0x365   :  { %p3145_p7 = scmp.ne.s32.totalorder %s2320_s9, 0 }
 0x367   :  { %2324 = shalt.err (%p3145_p7)  }
 0x368   :  { %2326 = vsyncmov [#allocation4 + $0xe] }
 0x36b   :  { %s2327_s20 = vpop.sfrf %2326 }
 0x36c   :  { %p3146_p8 = scmp.ne.s32.totalorder %s2327_s20, 0 }
 0x36e   :  { %2331 = shalt.err (%p3146_p8)  }
 0x36f   :  { %2333 = vsyncmov [#allocation4 + $0xf] }
 0x372   :  { %s2334_s22 = vpop.sfrf %2333 }
 0x373   :  { %p3147_p9 = scmp.ne.s32.totalorder %s2334_s22, 0 }
 0x375   :  { %2338 = shalt.err (%p3147_p9)  }
 0x376   :  { %2339 = vsyncmov [#allocation5] }
 0x379   :  { %s2340_s23 = vpop.sfrf %2339 }
 0x37a   :  { %p3148_p10 = scmp.ne.s32.totalorder %s2340_s23, 0 }
 0x37c   :  { %2344 = shalt.err (%p3148_p10)  }
 0x37d   :  { %2346 = vsyncmov [#allocation5 + $0x1] }
 0x380   :  { %s2347_s11 = vpop.sfrf %2346 }
 0x381   :  { %p3149_p11 = scmp.ne.s32.totalorder %s2347_s11, 0 }
 0x383   :  { %2351 = shalt.err (%p3149_p11)  }
 0x384   :  { %2353 = vsyncmov [#allocation5 + $0x2] }
 0x387   :  { %s2354_s29 = vpop.sfrf %2353 }
 0x388   :  { %p3150_p12 = scmp.ne.s32.totalorder %s2354_s29, 0 }
 0x38a   :  { %2358 = shalt.err (%p3150_p12)  }
 0x38b   :  { %2360 = vsyncmov [#allocation5 + $0x3] }
 0x38e   :  { %s2361_s1 = vpop.sfrf %2360 }
 0x38f   :  { %p3151_p13 = scmp.ne.s32.totalorder %s2361_s1, 0 }
 0x391   :  { %2365 = shalt.err (%p3151_p13)  }
 0x392   :  { %2367 = vsyncmov [#allocation5 + $0x4] }
 0x395   :  { %s2368_s28 = vpop.sfrf %2367 }
 0x396   :  { %p3152_p0 = scmp.ne.s32.totalorder %s2368_s28, 0 }
 0x398   :  { %2372 = shalt.err (%p3152_p0)  }
 0x399   :  { %2374 = vsyncmov [#allocation5 + $0x5] }
 0x39c   :  { %s2375_s2 = vpop.sfrf %2374 }
 0x39d   :  { %p3153_p1 = scmp.ne.s32.totalorder %s2375_s2, 0 }
 0x39f   :  { %2379 = shalt.err (%p3153_p1)  }
 0x3a0   :  { %2381 = vsyncmov [#allocation5 + $0x6] }
 0x3a3   :  { %s2382_s26 = vpop.sfrf %2381 }
 0x3a4   :  { %p3154_p2 = scmp.ne.s32.totalorder %s2382_s26, 0 }
 0x3a6   :  { %2386 = shalt.err (%p3154_p2)  }
 0x3a7   :  { %2388 = vsyncmov [#allocation5 + $0x7] }
 0x3aa   :  { %s2389_s27 = vpop.sfrf %2388 }
 0x3ab   :  { %p3155_p3 = scmp.ne.s32.totalorder %s2389_s27, 0 }
 0x3ad   :  { %2393 = shalt.err (%p3155_p3)  }
 0x3ae   :  { %2395 = vsyncmov [#allocation5 + $0x8] }
 0x3b1   :  { %s2396_s3 = vpop.sfrf %2395 }
 0x3b2   :  { %p3156_p4 = scmp.ne.s32.totalorder %s2396_s3, 0 }
 0x3b4   :  { %2400 = shalt.err (%p3156_p4)  }
 0x3b5   :  { %2402 = vsyncmov [#allocation5 + $0x9] }
 0x3b8   :  { %s2403_s4 = vpop.sfrf %2402 }
 0x3b9   :  { %p3157_p5 = scmp.ne.s32.totalorder %s2403_s4, 0 }
 0x3bb   :  { %2407 = shalt.err (%p3157_p5)  }
 0x3bc   :  { %2409 = vsyncmov [#allocation5 + $0xa] }
 0x3bf   :  { %s2410_s5 = vpop.sfrf %2409 }
 0x3c0   :  { %p3158_p6 = scmp.ne.s32.totalorder %s2410_s5, 0 }
 0x3c2   :  { %2414 = shalt.err (%p3158_p6)  }
 0x3c3   :  { %2416 = vsyncmov [#allocation5 + $0xb] }
 0x3c6   :  { %s2417_s24 = vpop.sfrf %2416 }
 0x3c7   :  { %p3159_p7 = scmp.ne.s32.totalorder %s2417_s24, 0 }
 0x3c9   :  { %2421 = shalt.err (%p3159_p7)  }
 0x3ca   :  { %2423 = vsyncmov [#allocation5 + $0xc] }
 0x3cd   :  { %s2424_s25 = vpop.sfrf %2423 }
 0x3ce   :  { %p3160_p8 = scmp.ne.s32.totalorder %s2424_s25, 0 }
 0x3d0   :  { %2428 = shalt.err (%p3160_p8)  }
 0x3d1   :  { %2430 = vsyncmov [#allocation5 + $0xd] }
 0x3d4   :  { %s2431_s30 = vpop.sfrf %2430 }
 0x3d5   :  { %p3161_p9 = scmp.ne.s32.totalorder %s2431_s30, 0 }
 0x3d7   :  { %2435 = shalt.err (%p3161_p9)  }
 0x3d8   :  { %2437 = vsyncmov [#allocation5 + $0xe] }
 0x3db   :  { %s2438_s12 = vpop.sfrf %2437 }
 0x3dc   :  { %p3162_p10 = scmp.ne.s32.totalorder %s2438_s12, 0 }
 0x3de   :  { %2442 = shalt.err (%p3162_p10)  }
 0x3df   :  { %2444 = vsyncmov [#allocation5 + $0xf] }
 0x3e2   :  { %s2445_s0 = vpop.sfrf %2444 }
 0x3e3   :  { %p3163_p11 = scmp.ne.s32.totalorder %s2445_s0, 0 }
 0x3e5   :  { %2449 = shalt.err (%p3163_p11)  }

</bundles_post_ra>
